<compile_context>
chip_gen: v5e
topology: v5e:2x2
jax: 0.10.0
libtpu: 0.0.40
codegen_flags: <defaults>
</compile_context>

<pallas_src>
import jax
import jax.numpy as jnp
from jax.experimental import pallas as pl
from jax.experimental.pallas import tpu as pltpu

_SLOPE = 0.01      # nn.LeakyReLU default negative_slope
_LANE = 128        # TPU lane width
_SUBLANE = 8       # f32 sublane count
# Full-precision f32 matmul to match PyTorch numerics; drop to DEFAULT on v5e if MXU-bound.
_MM_PRECISION = jax.lax.Precision.HIGHEST


def _round_up(n, m):
    return (n + m - 1) // m * m


def _round_down(n, m):
    return (n // m) * m


def _leaky(v):
    return jnp.where(v > 0, v, _SLOPE * v)


def _pad2(a, rows, cols):
    return jnp.pad(a, ((0, rows - a.shape[0]), (0, cols - a.shape[1])))


# ---------------------------------------------------------------- kernels
def _fused2_kernel(x_ref, w1_ref, b1_ref, w2_ref, b2_ref, o_ref):
    """Row tile of LeakyReLU(LeakyReLU(x@W1+b1)@W2+b2); h stays in VMEM/vregs."""
    h = jnp.dot(x_ref[...], w1_ref[...],
                preferred_element_type=jnp.float32, precision=_MM_PRECISION)
    h = _leaky(h + b1_ref[...])
    y = jnp.dot(h, w2_ref[...],
                preferred_element_type=jnp.float32, precision=_MM_PRECISION)
    o_ref[...] = _leaky(y + b2_ref[...])


def _fused1_kernel(x_ref, w_ref, b_ref, o_ref):
    """Row tile of LeakyReLU(x@W + b)."""
    y = jnp.dot(x_ref[...], w_ref[...],
                preferred_element_type=jnp.float32, precision=_MM_PRECISION)
    o_ref[...] = _leaky(y + b_ref[...])


# ---------------------------------------------------------------- launcher
def fused_mlp_lrelu(x, layers, *, tile_m=None):
    """layers: list of (W [in,out], b [out]), 1 or 2 entries; LeakyReLU after each.
    One row-tiled Pallas kernel for the whole chain. x keeps its true K; intermediate
    widths are zero-padded to 128 (inert); final output is true width (no slice)."""
    assert len(layers) in (1, 2)
    x = x.astype(jnp.float32)          # no-op when already f32
    m, k = x.shape
    n_layers = len(layers)

    # --- weight prep (tiny vs. x traffic). Layer-0 K stays true (matches unpadded x);
    # intermediate output dims padded to 128 (zero cols/rows -> mathematically inert);
    # final layer output kept at true hidden_dim.
    prepped = []
    in_dim = k
    out_dim = None
    for li, (w, b) in enumerate(layers):
        din, dout = w.shape
        assert din <= in_dim
        is_last = li == n_layers - 1
        dout_p = dout if is_last else _round_up(dout, _LANE)
        wp = _pad2(w.astype(jnp.float32), in_dim, dout_p)
        bp = jnp.pad(b.astype(jnp.float32), (0, dout_p - dout)).reshape(1, dout_p)
        prepped.append((wp, bp))
        in_dim = dout_p
        out_dim = dout

    # --- tile_m from real VMEM capacity (v7x: 64 MiB/TC, v5e/v6e: 128 MiB).
    mid_width = sum(int(wp.shape[1]) for wp, _ in prepped[:-1])          # 0 for 1 layer
    per_row_bytes = 4 * (2 * k + mid_width + 2 * out_dim)                # 2x = double-buffered tiles
    weight_bytes = 8 * sum(int(wp.size) + int(bp.size) for wp, bp in prepped)  # 2x buffers (f32)
    try:
        vmem_cap = int(pltpu.get_tpu_info().vmem_capacity_bytes)
    except Exception:
        vmem_cap = 64 * 1024 * 1024                                      # conservative (v7x)
    if tile_m is None:
        budget = vmem_cap // 2 - weight_bytes                            # headroom for scratch/spills
        tile_m = min(2048, max(_SUBLANE, budget // max(per_row_bytes, 1)))
    if m >= 2 * _SUBLANE:
        # >=2 grid steps so the "parallel" row axis shards across both v7x TensorCores.
        tile_m = min(tile_m, _round_up(pl.cdiv(m, 2), _SUBLANE))
    tile_m = min(tile_m, _round_up(m, _SUBLANE))
    tile_m = max(_SUBLANE, _round_down(int(tile_m), _SUBLANE))
    grid = pl.cdiv(m, tile_m)

    vmem_limit = int((weight_bytes + per_row_bytes * tile_m) * 1.5) + (2 << 20)
    vmem_limit = min(max(vmem_limit, 4 << 20), vmem_cap)

    flops = sum(2 * m * w.shape[0] * w.shape[1] for w, _ in layers)
    bytes_accessed = 4 * (m * k + m * out_dim) \
        + 4 * sum(int(w.size) + int(b.size) for w, b in layers)
    cost = pl.CostEstimate(flops=flops, transcendentals=0, bytes_accessed=bytes_accessed)

    in_specs = [pl.BlockSpec((tile_m, k), lambda i: (i, 0))]             # true-K x tile
    args = [x]
    for wp, bp in prepped:
        in_specs.append(pl.BlockSpec(wp.shape, lambda i: (0, 0)))        # resident weights
        in_specs.append(pl.BlockSpec(bp.shape, lambda i: (0, 0)))
        args.extend([wp, bp])

    kernel = _fused2_kernel if n_layers == 2 else _fused1_kernel
    return pl.pallas_call(
        kernel,
        out_shape=jax.ShapeDtypeStruct((m, out_dim), jnp.float32),
        grid=(grid,),
        in_specs=in_specs,
        out_specs=pl.BlockSpec((tile_m, out_dim), lambda i: (i, 0)),     # true-width output, no slice
        compiler_params=pltpu.CompilerParams(
            dimension_semantics=("parallel",),
            vmem_limit_bytes=int(vmem_limit)),
        cost_estimate=cost,
    )(*args)


# ---------------------------------------------------------------- module
class FeatureEncoderPallas:
    """JAX/Pallas equivalent of SEBOT FeatureEncoder.forward.
    Weights are stored [in, out] (transpose of torch nn.Linear.weight)."""

    def __init__(self, params, args):
        self.args = args
        self.prop_num = args["prop_num"]
        self.tweet_num = args["tweet_num"]
        self.cat_num = args["cat_num"]
        self.des_num = args["des_num"]
        self.input_dim = args["input_dim"]
        self.hidden_dim = args["hidden_dim"]
        self.w_in = params["w_in"]          # [input_dim, hidden_dim]
        self.b_in = params["b_in"]

        if args["dataset"] == "twibot-20":
            q = self.input_dim // 4
            total_in = self.prop_num + self.tweet_num + self.cat_num + self.des_num
            # Fold the four segment encoders into one block-permuted weight so the
            # reference concat never materializes:
            #   x columns : [ num_prop | tweet | cat_prop | des ]
            #   out cols  : [ d (des)  | t (tweet) | n (num_prop) | c (cat_prop) ]
            # On v6e/v7x the zero blocks are free (kernel is HBM-bound).
            np_, tw, ct = self.prop_num, self.tweet_num, self.cat_num
            w1 = jnp.zeros((total_in, self.input_dim), jnp.float32)
            w1 = w1.at[np_ + tw + ct:, 0:q].set(params["w_des"])
            w1 = w1.at[np_:np_ + tw, q:2 * q].set(params["w_tweet"])
            w1 = w1.at[0:np_, 2 * q:3 * q].set(params["w_num"])
            w1 = w1.at[np_ + tw:np_ + tw + ct, 3 * q:4 * q].set(params["w_cat"])
            b1 = jnp.concatenate([params["b_des"], params["b_tweet"],
                                  params["b_num"], params["b_cat"]])
            self.w1, self.b1 = w1, b1

    def __call__(self, x):
        if self.args["dataset"] == "twibot-20":
            return fused_mlp_lrelu(x, [(self.w1, self.b1), (self.w_in, self.b_in)])
        return fused_mlp_lrelu(x, [(self.w_in, self.b_in)])


# ---------------------------------------------------------------- pure-JAX reference
def feature_encoder_ref(params, x, args):
    def ll(z, w, b):
        y = z @ w + b
        return jnp.where(y > 0, y, _SLOPE * y)

    if args["dataset"] == "twibot-20":
        np_, tw, ct = args["prop_num"], args["tweet_num"], args["cat_num"]
        num_prop = x[:, :np_]
        tweet = x[:, np_:np_ + tw]
        cat_prop = x[:, np_ + tw:np_ + tw + ct]
        des = x[:, np_ + tw + ct:]
        d = ll(des, params["w_des"], params["b_des"])
        t = ll(tweet, params["w_tweet"], params["b_tweet"])
        n = ll(num_prop, params["w_num"], params["b_num"])
        c = ll(cat_prop, params["w_cat"], params["b_cat"])
        x = jnp.concatenate([d, t, n, c], axis=1)
    return ll(x, params["w_in"], params["b_in"])


# ---------------------------------------------------------------- demo / self-test
if __name__ == "__main__":
    args = dict(dataset="twibot-20", prop_num=6, tweet_num=16, cat_num=2,
                des_num=24, input_dim=32, hidden_dim=32, dropout=0.3)
    N = 600  # multi-tile grid + boundary-block masking get exercised
    total_in = args["prop_num"] + args["tweet_num"] + args["cat_num"] + args["des_num"]
    q = args["input_dim"] // 4

    key = jax.random.PRNGKey(0)
    ks = jax.random.split(key, 12)

    def w(k, shape):
        return 0.1 * jax.random.normal(k, shape, jnp.float32)

    params = {
        "w_des":   w(ks[0], (args["des_num"], q)),    "b_des":   w(ks[1], (q,)),
        "w_tweet": w(ks[2], (args["tweet_num"], q)),  "b_tweet": w(ks[3], (q,)),
        "w_num":   w(ks[4], (args["prop_num"], q)),   "b_num":   w(ks[5], (q,)),
        "w_cat":   w(ks[6], (args["cat_num"], q)),    "b_cat":   w(ks[7], (q,)),
        "w_in":    w(ks[8], (args["input_dim"], args["hidden_dim"])),
        "b_in":    w(ks[9], (args["hidden_dim"],)),
    }

    # twibot-20 path: segment split + 4 branch encoders + concat + input encoder
    x = jax.random.normal(ks[10], (N, total_in), jnp.float32)
    enc = FeatureEncoderPallas(params, args)
    out = jax.block_until_ready(enc(x))
    ref = feature_encoder_ref(params, x, args)
    assert out.shape == (N, args["hidden_dim"])
    assert jnp.allclose(out, ref, atol=1e-4, rtol=1e-4), float(jnp.max(jnp.abs(out - ref)))

    # non-twibot-20 path (e.g. 'mgtab'): only linear_relu_input
    args_m = dict(args, dataset="mgtab")
    xm = jax.random.normal(ks[11], (N, args["input_dim"]), jnp.float32)
    enc_m = FeatureEncoderPallas(params, args_m)
    out_m = jax.block_until_ready(enc_m(xm))
    ref_m = feature_encoder_ref(params, xm, args_m)
    assert out_m.shape == (N, args["hidden_dim"])
    assert jnp.allclose(out_m, ref_m, atol=1e-4, rtol=1e-4)

    print("KERNEL_OK")
</pallas_src>

<mosaic_0001>
module attributes {stable_mosaic.version = 11 : i64} {
  func.func @_fused2_kernel(%arg0: i32, %arg1: memref<304x48xf32, #tpu.memory_space<vmem>>, %arg2: memref<48x128xf32, #tpu.memory_space<vmem>>, %arg3: memref<1x128xf32, #tpu.memory_space<vmem>>, %arg4: memref<128x32xf32, #tpu.memory_space<vmem>>, %arg5: memref<1x32xf32, #tpu.memory_space<vmem>>, %arg6: memref<304x32xf32, #tpu.memory_space<vmem>>) attributes {dimension_semantics = [#tpu.dimension_semantics<parallel>], iteration_bounds = array<i64: 2>, scalar_prefetch = 0 : i64, scratch_operands = 0 : i64, tpu.core_type = #tpu.core_type<tc>, window_params = [{transform_indices = @transform_0, window_bounds = array<i64: 304, 48>}, {pipeline_mode = #tpu.pipeline_mode<synchronous>, transform_indices = @transform_1, window_bounds = array<i64: 48, 128>}, {pipeline_mode = #tpu.pipeline_mode<synchronous>, transform_indices = @transform_2, window_bounds = array<i64: 1, 128>}, {pipeline_mode = #tpu.pipeline_mode<synchronous>, transform_indices = @transform_3, window_bounds = array<i64: 128, 32>}, {pipeline_mode = #tpu.pipeline_mode<synchronous>, transform_indices = @transform_4, window_bounds = array<i64: 1, 32>}, {transform_indices = @transform_5, window_bounds = array<i64: 304, 32>}]} {
    %c0 = arith.constant 0 : index
    %c0_0 = arith.constant 0 : index
    %0 = vector.load %arg1[%c0, %c0_0] : memref<304x48xf32, #tpu.memory_space<vmem>>, vector<304x48xf32>
    %c0_1 = arith.constant 0 : index
    %c0_2 = arith.constant 0 : index
    %1 = vector.load %arg2[%c0_1, %c0_2] : memref<48x128xf32, #tpu.memory_space<vmem>>, vector<48x128xf32>
    %cst = arith.constant dense<0.000000e+00> : vector<304x128xf32>
    %2 = tpu.matmul %0, %1, %cst {dimension_numbers = #tpu.dot_dimension_numbers<[1], [0], [0], [1], [0, 0, 1, 1], [], []>, precision = #tpu.contract_precision<fp32>} : vector<304x48xf32>, vector<48x128xf32>, vector<304x128xf32> -> vector<304x128xf32>
    %c0_3 = arith.constant 0 : index
    %c0_4 = arith.constant 0 : index
    %3 = vector.load %arg3[%c0_3, %c0_4] : memref<1x128xf32, #tpu.memory_space<vmem>>, vector<1x128xf32>
    %4 = vector.broadcast %3 : vector<1x128xf32> to vector<304x128xf32>
    %5 = arith.addf %2, %4 : vector<304x128xf32>
    %cst_5 = arith.constant 0.000000e+00 : f32
    %6 = vector.broadcast %cst_5 : f32 to vector<304x128xf32>
    %7 = arith.cmpf ogt, %5, %6 : vector<304x128xf32>
    %cst_6 = arith.constant 0.00999999977 : f32
    %8 = vector.broadcast %cst_6 : f32 to vector<304x128xf32>
    %9 = arith.mulf %8, %5 : vector<304x128xf32>
    %10 = arith.select %7, %5, %9 : vector<304x128xi1>, vector<304x128xf32>
    %c0_7 = arith.constant 0 : index
    %c0_8 = arith.constant 0 : index
    %11 = vector.load %arg4[%c0_7, %c0_8] : memref<128x32xf32, #tpu.memory_space<vmem>>, vector<128x32xf32>
    %cst_9 = arith.constant dense<0.000000e+00> : vector<304x32xf32>
    %12 = tpu.matmul %10, %11, %cst_9 {dimension_numbers = #tpu.dot_dimension_numbers<[1], [0], [0], [1], [0, 0, 1, 1], [], []>, precision = #tpu.contract_precision<fp32>} : vector<304x128xf32>, vector<128x32xf32>, vector<304x32xf32> -> vector<304x32xf32>
    %c0_10 = arith.constant 0 : index
    %c0_11 = arith.constant 0 : index
    %13 = vector.load %arg5[%c0_10, %c0_11] : memref<1x32xf32, #tpu.memory_space<vmem>>, vector<1x32xf32>
    %14 = vector.broadcast %13 : vector<1x32xf32> to vector<304x32xf32>
    %15 = arith.addf %12, %14 : vector<304x32xf32>
    %cst_12 = arith.constant 0.000000e+00 : f32
    %16 = vector.broadcast %cst_12 : f32 to vector<304x32xf32>
    %17 = arith.cmpf ogt, %15, %16 : vector<304x32xf32>
    %cst_13 = arith.constant 0.00999999977 : f32
    %18 = vector.broadcast %cst_13 : f32 to vector<304x32xf32>
    %19 = arith.mulf %18, %15 : vector<304x32xf32>
    %20 = arith.select %17, %15, %19 : vector<304x32xi1>, vector<304x32xf32>
    %c0_14 = arith.constant 0 : index
    %c0_15 = arith.constant 0 : index
    %21 = vector.load %arg6[%c0_14, %c0_15] : memref<304x32xf32, #tpu.memory_space<vmem>>, vector<304x32xf32>
    tpu.vector_store %arg6[%c0_14, %c0_15], %20 {strides = array<i32>} : memref<304x32xf32, #tpu.memory_space<vmem>>, vector<304x32xf32>,
    return
  }
  func.func @transform_0(%arg0: i32) -> (i32, i32) {
    %c0_i32 = arith.constant 0 : i32
    %c0_i32_0 = arith.constant 0 : i32
    return %arg0, %c0_i32 : i32, i32
  }
  func.func @transform_1(%arg0: i32) -> (i32, i32) {
    %c0_i32 = arith.constant 0 : i32
    %c0_i32_0 = arith.constant 0 : i32
    %c0_i32_1 = arith.constant 0 : i32
    return %c0_i32, %c0_i32_0 : i32, i32
  }
  func.func @transform_2(%arg0: i32) -> (i32, i32) {
    %c0_i32 = arith.constant 0 : i32
    %c0_i32_0 = arith.constant 0 : i32
    %c0_i32_1 = arith.constant 0 : i32
    return %c0_i32, %c0_i32_0 : i32, i32
  }
  func.func @transform_3(%arg0: i32) -> (i32, i32) {
    %c0_i32 = arith.constant 0 : i32
    %c0_i32_0 = arith.constant 0 : i32
    %c0_i32_1 = arith.constant 0 : i32
    return %c0_i32, %c0_i32_0 : i32, i32
  }
  func.func @transform_4(%arg0: i32) -> (i32, i32) {
    %c0_i32 = arith.constant 0 : i32
    %c0_i32_0 = arith.constant 0 : i32
    %c0_i32_1 = arith.constant 0 : i32
    return %c0_i32, %c0_i32_0 : i32, i32
  }
  func.func @transform_5(%arg0: i32) -> (i32, i32) {
    %c0_i32 = arith.constant 0 : i32
    %c0_i32_0 = arith.constant 0 : i32
    return %arg0, %c0_i32 : i32, i32
  }
}

</mosaic_0001>

<bundles_post_ra>
// kernel: tpu_custom_call.1
= control target key start
LH: loop header
LB: loop body
LE: loop exit
PB: predicated region body
PF: predicated region fallthrough
CT: control target
= control target key end

     0   :  { %s4117_s18 = smov 0   ;;  %s4119_s19 = smov 0   ;;  %s6289_s0 = inlined_call_operand.vmem [shape: f32[600,48], index: 0, kind: input, shape index: {}]   ;;  %s6290_s1 = inlined_call_operand.vmem [shape: f32[48,128], index: 1, kind: input, shape index: {}]   ;;  %s6291_s2 = inlined_call_operand.vmem [shape: f32[1,128], index: 2, kind: input, shape index: {}]   ;;  %s6292_s3 = inlined_call_operand.vmem [shape: f32[128,32], index: 3, kind: input, shape index: {}]   ;;  %s6293_s4 = inlined_call_operand.vmem [shape: f32[1,32], index: 4, kind: input, shape index: {}]   ;;  %s6294_s5 = inlined_call_operand.vmem [shape: f32[600,32], index: 5, kind: output, shape index: {}]  }
   0x1   :  { %s4121_s20 = smov 0  }
   0x2 LB: > { %s4130_s21 = sadd.s32 4294967295, %s4053_s20   ;;  %s4132_s22 = sadd.s32 1, %s4053_s20   ;;  %s4053_s20 = sphi %s4121_s20, %s6795_s20   ;;  %s4049_s19 = sphi %s4119_s19, %s6794_s19   ;;  %s4045_s18 = sphi %s4117_s18, %s6793_s18  }
   0x3   : > { %s129_s23 = ssub.s32 %s4053_s20, %s4132_s22  ;;  %s132_s24 = sadd.s32 1, %s4049_s19 }
   0x4   : > { %p130_p0 = scmp.eq.s32.totalorder %s129_s23, 0  ;;  %p142_p1 = scmp.ne.s32.totalorder %s4049_s19, %s4045_s18 }
   0x5   : > { %p143_p2 = scmp.eq.s32.totalorder %s4130_s21, 1  ;;  %p3885_p3 = scmp.ge.s32.totalorder %s4053_s20, 1 }
   0x6   : > { %s4140_s25 = scalar_select %p130_p0, %s4049_s19, %s132_s24  }
   0x7   : > { %p4142_p4 = por %p143_p2, %p142_p1  ;;  %p196_p5 = scmp.lt.s32.totalorder %s4053_s20, 3 }
   0x9   : > { %p197_p6 = pnand %p3885_p3, %p196_p5 }
   0xb   : > { %200 = sbr.rel (%p197_p6) target bundleno = 1287 (0x507), region = 40 }
  0x10   : > { %v289_v0 = vld [vmem:[%s6290_s1 + $0x28] sm:$0xff]  ;;  %v288_v1 = vld [vmem:[%s6290_s1 + $0x20] sm:$0xff]  ;;  %v287_v2 = vld [vmem:[%s6290_s1 + $0x18] sm:$0xff]  ;;  %s4156_s8 = smul.u32 38, %s4130_s21  ;;  %vm294_vm0 = vcmask 392192   ;;  %s224_s7 = sand.u32 1, %s4045_s18  }
  0x11   : > { %v4158_v3 = vand.u32 4294901760, %v289_v0  ;;  %v4160_v4 = vand.u32 4294901760, %v288_v1  ;;  %v4162_v5 = vand.u32 4294901760, %v287_v2  ;;  %v286_v6 = vld [vmem:[%s6290_s1 + $0x10] sm:$0xff]  ;;  %v285_v7 = vld [vmem:[%s6290_s1 + $0x8] sm:$0xff]  ;;  %v284_v8 = vld [vmem:[%s6290_s1] sm:$0xff] }
  0x12   : > { %v4173_v9 = vand.u32 4294901760, %v286_v6  ;;  %v4175_v10 = vand.u32 4294901760, %v285_v7  ;;  %v4177_v11 = vand.u32 4294901760, %v284_v8  ;;  %p232_p7 = scmp.lt.s32.totalorder %s4156_s8, 74  ;;  %s3905_s9 = smul.u32 304, %s224_s7 }
  0x13   : > { %v4181_v12 = vsub.f32 %v289_v0, %v4158_v3  ;;  %420 = vmatpush.msra.mxu0 %v4158_v3  ;;  %v4185_v13 = vsub.f32 %v288_v1, %v4160_v4  ;;  %1165 = vmatpush.msra.mxu3 %v4158_v3  ;;  %v4189_v14 = vsub.f32 %v287_v2, %v4162_v5  ;;  %s3550_s10 = ssub.s32 (%p4142_p4), 75, %s4156_s8  ;;  %s3902_s11 = smul.u32 (%p4142_p4), 304, %s4130_s21 }
  0x14   : > { %v4192_v15 = vsub.f32 %v286_v6, %v4173_v9  ;;  %v4195_v16 = vsub.f32 %v285_v7, %v4175_v10  ;;  %v4198_v17 = vsub.f32 %v284_v8, %v4177_v11  ;;  %s233_s15 = scalar_select %p232_p7, %s4156_s8, 74 }
  0x15   : > { %947 = vmatpush.msra.mxu2 %v4181_v12  ;;  %422 = vmatpush.msra.mxu0 %v4160_v4  ;;  %v748_v18 = vand.u32 4294901760, %v4181_v12  ;;  %v754_v19 = vand.u32 4294901760, %v4185_v13  ;;  %v760_v20 = vand.u32 4294901760, %v4189_v14  ;;  %s5912_s18 = scalar_lea.vmem [#allocation2], %s3905_s9   ;;  %p3551_p8 = scmp.lt.s32.totalorder (%p4142_p4), %s3550_s10, 38 }
  0x16   : > { %1167 = vmatpush.msra.mxu3 %v4160_v4  ;;  %v766_v21 = vand.u32 4294901760, %v4192_v15  ;;  %s3886_s16 = sshll.u32 %s233_s15, 3  ;;  %v772_v25 = vand.u32 4294901760, %v4195_v16  ;;  %v778_v27 = vand.u32 4294901760, %v4198_v17  ;;  %s6154_s14 = scalar_lea.vmem (%p4142_p4), %s6294_s5, %s3902_s11  }
  0x17   : > { %950 = vmatpush.msra.mxu2 %v4185_v13  ;;  %v749_v22 = vsub.f32 %v4181_v12, %v748_v18  ;;  %424 = vmatpush.msra.mxu0 %v4162_v5  ;;  %v755_v23 = vsub.f32 %v4185_v13, %v754_v19  ;;  %v761_v24 = vsub.f32 %v4189_v14, %v760_v20  ;;  %s4218_s23 = scalar_lea.vmem %s6289_s0, %s3886_s16 }
  0x18   : > { %1169 = vmatpush.msra.mxu3 %v4162_v5  ;;  %v246_v26 = vld [vmem:[%s4218_s23] sm:$0xff]  ;;  %v247_v28 = vld [vmem:[%s4218_s23 + $0x8] sm:$0xff]  ;;  %v767_v31 = vsub.f32 %v4192_v15, %v766_v21  ;;  %v248_v34 = vld [vmem:[%s4218_s23 + $0x10] sm:$0xff]  ;;  %v773_v36 = vsub.f32 %v4195_v16, %v772_v25  ;;  %v779_v41 = vsub.f32 %v4198_v17, %v778_v27 }
  0x19   : > { %v750_v29 = vand.u32 4294901760, %v749_v22  ;;  %953 = vmatpush.msra.mxu2 %v4189_v14  ;;  %v756_v30 = vand.u32 4294901760, %v755_v23  ;;  %426 = vmatpush.msra.mxu0 %v4173_v9  ;;  %v296_v32 = vsel %vm294_vm0, %v246_v26, 0  ;;  %v762_v35 = vand.u32 4294901760, %v761_v24  ;;  %v249_v51 = vld [vmem:[%s4218_s23 + $0x18] sm:$0xff]  ;;  %v250_v58 = vld [vmem:[%s4218_s23 + $0x20] sm:$0xff] }
  0x1a   : > { %1171 = vmatpush.msra.mxu3 %v4173_v9  ;;  %v4232_v33 = vand.u32 4294901760, %v296_v32  ;;  %v299_v37 = vsel %vm294_vm0, %v247_v28, 0  ;;  %v768_v40 = vand.u32 4294901760, %v767_v31  ;;  %v302_v42 = vsel %vm294_vm0, %v248_v34, 0  ;;  %v251_v1 = vld [vmem:[%s4218_s23 + $0x28] sm:$0xff]  ;;  %v252_v8 = vld [vmem:[%s4218_s23 + $0x30] sm:$0xff] }
  0x1b   : > { %751 = vmatpush.msra.mxu1 %v750_v29  ;;  %956 = vmatpush.msra.mxu2 %v4192_v15  ;;  %v4241_v39 = vand.u32 4294901760, %v299_v37  ;;  %v774_v45 = vand.u32 4294901760, %v773_v36  ;;  %v4250_v48 = vand.u32 4294901760, %v302_v42  ;;  %v780_v49 = vand.u32 4294901760, %v779_v41  ;;  %v253_v15 = vld [vmem:[%s4218_s23 + $0x38] sm:$0xff]  ;;  %v254_v22 = vld [vmem:[%s4218_s23 + $0x40] sm:$0xff] }
  0x1c   : > { %428 = vmatpush.msra.mxu0 %v4175_v10  ;;  %1173 = vmatpush.msra.mxu3 %v4175_v10  ;;  %v432_v38 = vsub.f32 %v296_v32, %v4232_v33  ;;  %v305_v54 = vsel %vm294_vm0, %v249_v51, 0  ;;  %v308_v61 = vsel %vm294_vm0, %v250_v58, 0  ;;  %v255_v29 = vld [vmem:[%s4218_s23 + $0x48] sm:$0xff] }
  0x1d   : > { %757 = vmatpush.msra.mxu1 %v756_v30  ;;  %959 = vmatpush.msra.mxu2 %v4195_v16  ;;  %v440_v44 = vsub.f32 %v299_v37, %v4241_v39  ;;  %v448_v53 = vsub.f32 %v302_v42, %v4250_v48  ;;  %v4261_v57 = vand.u32 4294901760, %v305_v54  ;;  %v4271_v0 = vand.u32 4294901760, %v308_v61  ;;  %v256_v37 = vld [vmem:[%s4218_s23 + $0x50] sm:$0xff] }
  0x1e   : > { %430 = vmatpush.msra.mxu0 %v4177_v11  ;;  %1175 = vmatpush.msra.mxu3 %v4177_v11  ;;  %v433_v43 = vand.u32 4294901760, %v432_v38  ;;  %v323_v32 = vsel %vm294_vm0, %v255_v29, 0  ;;  %v326_v41 = vsel %vm294_vm0, %v256_v37, 0 }
  0x1f   : > { %763 = vmatpush.msra.mxu1 %v762_v35  ;;  %962 = vmatpush.msra.mxu2 %v4198_v17  ;;  %v441_v47 = vand.u32 4294901760, %v440_v44  ;;  %v449_v56 = vand.u32 4294901760, %v448_v53  ;;  %v456_v60 = vsub.f32 %v305_v54, %v4261_v57  ;;  %v4302_v36 = vand.u32 4294901760, %v323_v32 }
  0x20   : > { %965 = vmatmul.f32.vlgmr.msra.gmra.mxu2 %v432_v38  ;;  %v434_v46 = vsub.f32 %v432_v38, %v433_v43  ;;  %1179 = vmatmul.f32.vlgmr.msra.gmra.mxu3 %v433_v43 }
  0x21   : > { %769 = vmatpush.msra.mxu1 %v768_v40  ;;  %1418 = vmatpush.msrb.mxu0 %v748_v18  ;;  %v442_v52 = vsub.f32 %v440_v44, %v441_v47  ;;  %v450_v59 = vsub.f32 %v448_v53, %v449_v56  ;;  %v457_v63 = vand.u32 4294901760, %v456_v60  ;;  %v317_v18 = vsel %vm294_vm0, %v253_v15, 0 }
  0x22   : > { %v435_v50 = vand.u32 4294901760, %v434_v46  ;;  %v504_v40 = vsub.f32 %v323_v32, %v4302_v36 }
  0x23   : > { %775 = vmatpush.msra.mxu1 %v774_v45  ;;  %1422 = vmatpush.msrb.mxu0 %v754_v19  ;;  %v443_v55 = vand.u32 4294901760, %v442_v52  ;;  %v451_v62 = vand.u32 4294901760, %v450_v59  ;;  %v458_v2 = vsub.f32 %v456_v60, %v457_v63  ;;  %v257_v45 = vld [vmem:[%s4218_s23 + $0x58] sm:$0xff] }
  0x24   : > { %436 = vmatmul.f32.vlgmr.msra.gmra.mxu0 %v435_v50  ;;  %v505_v43 = vand.u32 4294901760, %v504_v40 }
  0x25   : > { %781 = vmatpush.msra.mxu1 %v780_v49  ;;  %1426 = vmatpush.msrb.mxu0 %v760_v20  ;;  %v329_v49 = vsel %vm294_vm0, %v257_v45, 0  ;;  %v264_v45 = vld [vmem:[%s4218_s23 + $0x90] sm:$0xff] }
  0x26   : > { %783 = vmatmul.f32.vlgmr.msra.gmra.mxu1 %v4232_v33  ;;  %v506_v46 = vsub.f32 %v504_v40, %v505_v43  ;;  %v4314_v52 = vand.u32 4294901760, %v329_v49 }
  0x27   : > { %1603 = vmatpush.msrb.mxu1 %v4158_v3  ;;  %1430 = vmatpush.msrb.mxu0 %v766_v21  ;;  %v464_v3 = vsub.f32 %v308_v61, %v4271_v0  ;;  %v4290_v21 = vand.u32 4294901760, %v317_v18  ;;  %v259_v61 = vld [vmem:[%s4218_s23 + $0x68] sm:$0xff] }
  0x28   : > { %970 = vmatmul.f32.gmra.mxu2 %v440_v44  ;;  %1185 = vmatmul.f32.gmra.mxu3 %v441_v47  ;;  %v4308_v44 = vand.u32 4294901760, %v326_v41  ;;  %v507_v50 = vand.u32 4294901760, %v506_v46 }
  0x29   : > { %1605 = vmatpush.msrb.mxu1 %v4160_v4  ;;  %1434 = vmatpush.msrb.mxu0 %v772_v25  ;;  %v311_v4 = vsel %vm294_vm0, %v251_v1, 0  ;;  %v465_v6 = vand.u32 4294901760, %v464_v3  ;;  %v488_v24 = vsub.f32 %v317_v18, %v4290_v21  ;;  %v320_v25 = vsel %vm294_vm0, %v254_v22, 0  ;;  %v262_v22 = vld [vmem:[%s4218_s23 + $0x80] sm:$0xff] }
  0x2a   : > { %v4278_v7 = vand.u32 4294901760, %v311_v4  ;;  %v4296_v28 = vand.u32 4294901760, %v320_v25  ;;  %v512_v47 = vsub.f32 %v326_v41, %v4308_v44  ;;  %v335_v1 = vsel %vm294_vm0, %v259_v61, 0  ;;  %v265_v61 = vld [vmem:[%s4218_s23 + $0x98] sm:$0xff] }
  0x2b   : > { %1607 = vmatpush.msrb.mxu1 %v4162_v5  ;;  %1438 = vmatpush.msrb.mxu0 %v778_v27  ;;  %v459_v5 = vand.u32 4294901760, %v458_v2  ;;  %v489_v27 = vand.u32 4294901760, %v488_v24 }
  0x2c   : > { %444 = vmatmul.f32.gmra.mxu0 %v443_v55  ;;  %v496_v31 = vsub.f32 %v320_v25, %v4296_v28  ;;  %v513_v51 = vand.u32 4294901760, %v512_v47  ;;  %v520_v55 = vsub.f32 %v329_v49, %v4314_v52  ;;  %v344_v25 = vsel %vm294_vm0, %v262_v22, 0  ;;  %v266_v22 = vld [vmem:[%s4218_s23 + $0xa0] sm:$0xff] }
  0x2d   : > { %1609 = vmatpush.msrb.mxu1 %v4173_v9  ;;  %v466_v9 = vsub.f32 %v464_v3, %v465_v6  ;;  %v490_v30 = vsub.f32 %v488_v24, %v489_v27  ;;  %v4344_v29 = vand.u32 4294901760, %v344_v25 }
  0x2e   : > { %787 = vmatmul.f32.gmra.mxu1 %v4241_v39  ;;  %v497_v35 = vand.u32 4294901760, %v496_v31  ;;  %v514_v54 = vsub.f32 %v512_v47, %v513_v51  ;;  %v521_v59 = vand.u32 4294901760, %v520_v55 }
  0x2f   : > { %1611 = vmatpush.msrb.mxu1 %v4175_v10  ;;  %v472_v10 = vsub.f32 %v311_v4, %v4278_v7  ;;  %v467_v12 = vand.u32 4294901760, %v466_v9  ;;  %v491_v34 = vand.u32 4294901760, %v490_v30  ;;  %v4326_v4 = vand.u32 4294901760, %v335_v1  ;;  %v263_v30 = vld [vmem:[%s4218_s23 + $0x88] sm:$0xff] }
  0x30   : > { %975 = vmatmul.f32.gmra.mxu2 %v448_v53  ;;  %1191 = vmatmul.f32.gmra.mxu3 %v449_v56  ;;  %v498_v38 = vsub.f32 %v496_v31, %v497_v35  ;;  %v258_v53 = vld [vmem:[%s4218_s23 + $0x60] sm:$0xff]  ;;  %v515_v58 = vand.u32 4294901760, %v514_v54  ;;  %v560_v32 = vsub.f32 %v344_v25, %v4344_v29 }
  0x31   : > { %1613 = vmatpush.msrb.mxu1 %v4177_v11  ;;  %v314_v11 = vsel %vm294_vm0, %v252_v8, 0  ;;  %v473_v13 = vand.u32 4294901760, %v472_v10  ;;  %v332_v56 = vsel %vm294_vm0, %v258_v53, 0  ;;  %v536_v8 = vsub.f32 %v335_v1, %v4326_v4  ;;  %v4374_v53 = vld [vmem:[%s6291_s2] ss:$0 sm:$0xff] }
  0x32   : > { %v4284_v14 = vand.u32 4294901760, %v314_v11  ;;  %v499_v42 = vand.u32 4294901760, %v498_v38  ;;  %v561_v41 = vand.u32 4294901760, %v560_v32 }
  0x33   : > { %v474_v16 = vsub.f32 %v472_v10, %v473_v13 }
  0x34   : > { %452 = vmatmul.f32.gmra.mxu0 %v451_v62  ;;  %v480_v17 = vsub.f32 %v314_v11, %v4284_v14  ;;  %v522_v62 = vsub.f32 %v520_v55, %v521_v59  ;;  %v537_v11 = vand.u32 4294901760, %v536_v8 }
  0x35   : > { %v475_v19 = vand.u32 4294901760, %v474_v16 }
  0x36   : > { %791 = vmatmul.f32.gmra.mxu1 %v4250_v48  ;;  %v481_v20 = vand.u32 4294901760, %v480_v17  ;;  %v523_v2 = vand.u32 4294901760, %v522_v62  ;;  %v538_v15 = vsub.f32 %v536_v8, %v537_v11 }
  0x38   : > { %980 = vmatmul.f32.gmra.mxu2 %v456_v60  ;;  %1197 = vmatmul.f32.gmra.mxu3 %v457_v63  ;;  %v482_v23 = vsub.f32 %v480_v17, %v481_v20  ;;  %v4320_v60 = vand.u32 4294901760, %v332_v56  ;;  %v539_v18 = vand.u32 4294901760, %v538_v15 }
  0x3a   : > { %v483_v26 = vand.u32 4294901760, %v482_v23  ;;  %v528_v63 = vsub.f32 %v332_v56, %v4320_v60 }
  0x3c   : > { %460 = vmatmul.f32.gmra.mxu0 %v459_v5  ;;  %v260_v5 = vld [vmem:[%s4218_s23 + $0x70] sm:$0xff] }
  0x3d   : > { %v338_v9 = vsel %vm294_vm0, %v260_v5, 0 }
  0x3e   : > { %795 = vmatmul.f32.gmra.mxu1 %v4261_v57 }
  0x40   : > { %985 = vmatmul.f32.gmra.mxu2 %v464_v3  ;;  %1203 = vmatmul.f32.gmra.mxu3 %v465_v6  ;;  %v529_v3 = vand.u32 4294901760, %v528_v63 }
  0x42   : > { %v530_v6 = vsub.f32 %v528_v63, %v529_v3 }
  0x44   : > { %468 = vmatmul.f32.gmra.mxu0 %v467_v12  ;;  %v4332_v12 = vand.u32 4294901760, %v338_v9 }
  0x46   : > { %799 = vmatmul.f32.gmra.mxu1 %v4271_v0  ;;  %v544_v16 = vsub.f32 %v338_v9, %v4332_v12  ;;  %v1895_v9 = vld [vmem:[%s6292_s3 + $0x70] sm:$0xff] }
  0x48   : > { %990 = vmatmul.f32.gmra.mxu2 %v472_v10  ;;  %1209 = vmatmul.f32.gmra.mxu3 %v473_v13  ;;  %v531_v10 = vand.u32 4294901760, %v530_v6  ;;  %v261_v13 = vld [vmem:[%s4218_s23 + $0x78] sm:$0xff]  ;;  %v353_v6 = vsel %vm294_vm0, %v265_v61, 0 }
  0x4c   : > { %476 = vmatmul.f32.gmra.mxu0 %v475_v19  ;;  %v545_v19 = vand.u32 4294901760, %v544_v16 }
  0x4e   : > { %803 = vmatmul.f32.gmra.mxu1 %v4278_v7  ;;  %v546_v23 = vsub.f32 %v544_v16, %v545_v19 }
  0x50   : > { %995 = vmatmul.f32.gmra.mxu2 %v480_v17  ;;  %1215 = vmatmul.f32.gmra.mxu3 %v481_v20  ;;  %v341_v17 = vsel %vm294_vm0, %v261_v13, 0 }
  0x51   : > { %v4338_v20 = vand.u32 4294901760, %v341_v17 }
  0x54   : > { %484 = vmatmul.f32.gmra.mxu0 %v483_v26  ;;  %v547_v26 = vand.u32 4294901760, %v546_v23 }
  0x56   : > { %807 = vmatmul.f32.gmra.mxu1 %v4284_v14 }
  0x58   : > { %1000 = vmatmul.f32.gmra.mxu2 %v488_v24  ;;  %1221 = vmatmul.f32.gmra.mxu3 %v489_v27  ;;  %v552_v24 = vsub.f32 %v341_v17, %v4338_v20 }
  0x5a   : > { %v553_v27 = vand.u32 4294901760, %v552_v24 }
  0x5c   : > { %492 = vmatmul.f32.gmra.mxu0 %v491_v34  ;;  %v1896_v34 = vld [vmem:[%s6292_s3 + $0x78] sm:$0xff] }
  0x5d   : > { %v4352_v37 = vand.u32 4294901760, %v1896_v34 }
  0x5e   : > { %811 = vmatmul.f32.gmra.mxu1 %v4290_v21 }
  0x5f   : > { %1902 = vmatpush.msrb.mxu2 %v4352_v37  ;;  %v4357_v38 = vsub.f32 %v1896_v34, %v4352_v37  ;;  %2727 = vmatpush.msra.mxu1 %v4352_v37 }
  0x60   : > { %1005 = vmatmul.f32.gmra.mxu2 %v496_v31  ;;  %1227 = vmatmul.f32.gmra.mxu3 %v497_v35  ;;  %v554_v31 = vsub.f32 %v552_v24, %v553_v27  ;;  %v347_v35 = vsel %vm294_vm0, %v263_v30, 0 }
  0x61   : > { %2489 = vmatpush.msra.mxu0 %v4357_v38 }
  0x64   : > { %500 = vmatmul.f32.gmra.mxu0 %v499_v42  ;;  %v4360_v42 = vand.u32 4294901760, %v347_v35 }
  0x66   : > { %815 = vmatmul.f32.gmra.mxu1 %v4296_v28  ;;  %v568_v49 = vsub.f32 %v347_v35, %v4360_v42 }
  0x68   : > { %1010 = vmatmul.f32.gmra.mxu2 %v504_v40  ;;  %1233 = vmatmul.f32.gmra.mxu3 %v505_v43  ;;  %v555_v40 = vand.u32 4294901760, %v554_v31  ;;  %v6298_v43 = vand.u32 4294901760, %v4357_v38 }
  0x6a   : > { %v2241_v46 = vsub.f32 %v4357_v38, %v6298_v43 }
  0x6c   : > { %508 = vmatmul.f32.gmra.mxu0 %v507_v50  ;;  %v350_v50 = vsel %vm294_vm0, %v264_v45, 0 }
  0x6d   : > { %v4376_v56 = vand.u32 4294901760, %v350_v50 }
  0x6e   : > { %819 = vmatmul.f32.gmra.mxu1 %v4302_v36 }
  0x6f   : > { %v576_v5 = vsub.f32 %v350_v50, %v4376_v56 }
  0x70   : > { %1015 = vmatmul.f32.gmra.mxu2 %v512_v47  ;;  %1239 = vmatmul.f32.gmra.mxu3 %v513_v51  ;;  %v562_v47 = vsub.f32 %v560_v32, %v561_v41  ;;  %v2242_v51 = vand.u32 4294901760, %v2241_v46 }
  0x71   : > { %v577_v15 = vand.u32 4294901760, %v576_v5 }
  0x72   : > { %2243 = vmatpush.msrb.mxu3 %v2242_v51  ;;  %v563_v54 = vand.u32 4294901760, %v562_v47  ;;  %v267_v51 = vld [vmem:[%s4218_s23 + $0xa8] sm:$0xff] }
  0x73   : > { %v578_v30 = vsub.f32 %v576_v5, %v577_v15 }
  0x74   : > { %516 = vmatmul.f32.gmra.mxu0 %v515_v58 }
  0x75   : > { %v579_v45 = vand.u32 4294901760, %v578_v30 }
  0x76   : > { %823 = vmatmul.f32.gmra.mxu1 %v4308_v44 }
  0x78   : > { %1020 = vmatmul.f32.gmra.mxu2 %v520_v55  ;;  %1245 = vmatmul.f32.gmra.mxu3 %v521_v59  ;;  %v569_v55 = vand.u32 4294901760, %v568_v49 }
  0x7c   : > { %524 = vmatmul.f32.gmra.mxu0 %v523_v2 }
  0x7e   : > { %827 = vmatmul.f32.gmra.mxu1 %v4314_v52 }
  0x80   : > { %1025 = vmatmul.f32.gmra.mxu2 %v528_v63  ;;  %1251 = vmatmul.f32.gmra.mxu3 %v529_v3  ;;  %v570_v3 = vsub.f32 %v568_v49, %v569_v55 }
  0x82   : > { %v571_v13 = vand.u32 4294901760, %v570_v3 }
  0x84   : > { %532 = vmatmul.f32.gmra.mxu0 %v531_v10  ;;  %v4386_v10 = vand.u32 4294901760, %v1895_v9 }
  0x86   : > { %831 = vmatmul.f32.gmra.mxu1 %v4320_v60  ;;  %1904 = vmatpush.msrb.mxu2 %v4386_v10 }
  0x87   : > { %2729 = vmatpush.msra.mxu1 %v4386_v10 }
  0x88   : > { %1030 = vmatmul.f32.gmra.mxu2 %v536_v8  ;;  %1257 = vmatmul.f32.gmra.mxu3 %v537_v11 }
  0x8c   : > { %540 = vmatmul.f32.gmra.mxu0 %v539_v18  ;;  %v4394_v18 = vsub.f32 %v1895_v9, %v4386_v10 }
  0x8e   : > { %835 = vmatmul.f32.gmra.mxu1 %v4326_v4  ;;  %v6297_v25 = vand.u32 4294901760, %v4394_v18  ;;  %2492 = vmatpush.msra.mxu0 %v4394_v18 }
  0x90   : > { %1035 = vmatmul.f32.gmra.mxu2 %v544_v16  ;;  %1263 = vmatmul.f32.gmra.mxu3 %v545_v19  ;;  %v4390_v16 = vand.u32 4294901760, %v353_v6  ;;  %v2247_v34 = vsub.f32 %v4394_v18, %v6297_v25 }
  0x92   : > { %v584_v31 = vsub.f32 %v353_v6, %v4390_v16 }
  0x94   : > { %548 = vmatmul.f32.gmra.mxu0 %v547_v26  ;;  %v585_v46 = vand.u32 4294901760, %v584_v31 }
  0x96   : > { %839 = vmatmul.f32.gmra.mxu1 %v4332_v12  ;;  %v586_v61 = vsub.f32 %v584_v31, %v585_v46 }
  0x98   : > { %1040 = vmatmul.f32.gmra.mxu2 %v552_v24  ;;  %1269 = vmatmul.f32.gmra.mxu3 %v553_v27  ;;  %v587_v3 = vand.u32 4294901760, %v586_v61 }
  0x9c   : > { %556 = vmatmul.f32.gmra.mxu0 %v555_v40  ;;  %v2248_v40 = vand.u32 4294901760, %v2247_v34 }
  0x9e   : > { %843 = vmatmul.f32.gmra.mxu1 %v4338_v20  ;;  %2249 = vmatpush.msrb.mxu3 %v2248_v40 }
  0xa0   : > { %1045 = vmatmul.f32.gmra.mxu2 %v560_v32  ;;  %1275 = vmatmul.f32.gmra.mxu3 %v561_v41  ;;  %v356_v32 = vsel %vm294_vm0, %v266_v22, 0 }
  0xa1   : > { %v437_v58 = vpop.f32.mrf.mxu0  ;;  %v4409_v47 = vand.u32 4294901760, %v356_v32 }
  0xa2   : > { %v438_v59 = vadd.f32 %v4374_v53, %v437_v58 }
  0xa3   : > { %v784_v62 = vpop.f32.mrf.mxu1  ;;  %v966_v63 = vpop.f32.mrf.mxu2 }
  0xa4   : > { %v785_v1 = vadd.f32 %v784_v62, %v438_v59  ;;  %564 = vmatmul.f32.gmra.mxu0 %v563_v54  ;;  %v1180_v2 = vpop.f32.mrf.mxu3  ;;  %v592_v62 = vsub.f32 %v356_v32, %v4409_v47 }
  0xa6   : > { %v967_v8 = vadd.f32 %v966_v63, %v785_v1  ;;  %847 = vmatmul.f32.gmra.mxu1 %v4344_v29  ;;  %v359_v63 = vsel %vm294_vm0, %v267_v51, 0 }
  0xa7   : > { %v4418_v6 = vand.u32 4294901760, %v359_v63 }
  0xa8   : > { %v4388_v11 = vadd.f32 %v1180_v2, %v967_v8  ;;  %1050 = vmatmul.f32.gmra.mxu2 %v568_v49  ;;  %1281 = vmatmul.f32.gmra.mxu3 %v569_v55 }
  0xa9   : > { %v445_v17 = vpop.f32.mrf.mxu0  ;;  %6453 = vst [vmem:[#allocation3_spill] sm:$0xff] %v4418_v6 }
  0xaa   : > { %v446_v19 = vadd.f32 %v4374_v53, %v445_v17 }
  0xab   : > { %v788_v23 = vpop.f32.mrf.mxu1  ;;  %v971_v24 = vpop.f32.mrf.mxu2 }
  0xac   : > { %v789_v26 = vadd.f32 %v788_v23, %v446_v19  ;;  %572 = vmatmul.f32.gmra.mxu0 %v571_v13  ;;  %v1186_v27 = vpop.f32.mrf.mxu3  ;;  %v268_v13 = vld [vmem:[%s4218_s23 + $0xb0] sm:$0xff] }
  0xad   : > { %v362_v30 = vsel %vm294_vm0, %v268_v13, 0 }
  0xae   : > { %v972_v35 = vadd.f32 %v971_v24, %v789_v26  ;;  %851 = vmatmul.f32.gmra.mxu1 %v4360_v42 }
  0xb0   : > { %v4407_v41 = vadd.f32 %v1186_v27, %v972_v35  ;;  %1055 = vmatmul.f32.gmra.mxu2 %v576_v5  ;;  %1287 = vmatmul.f32.gmra.mxu3 %v577_v15  ;;  %v593_v5 = vand.u32 4294901760, %v592_v62  ;;  %v1894_v15 = vld [vmem:[%s6292_s3 + $0x68] sm:$0xff]  ;;  %v600_v27 = vsub.f32 %v359_v63, %v4418_v6 }
  0xb1   : > { %v453_v49 = vpop.f32.mrf.mxu0  ;;  %v4425_v22 = vand.u32 4294901760, %v1894_v15 }
  0xb2   : > { %v454_v50 = vadd.f32 %v4374_v53, %v453_v49  ;;  %v594_v26 = vsub.f32 %v592_v62, %v593_v5 }
  0xb3   : > { %v792_v54 = vpop.f32.mrf.mxu1  ;;  %v976_v55 = vpop.f32.mrf.mxu2  ;;  %1906 = vmatpush.msrb.mxu2 %v4425_v22  ;;  %2731 = vmatpush.msra.mxu1 %v4425_v22 }
  0xb4   : > { %v793_v58 = vadd.f32 %v792_v54, %v454_v50  ;;  %580 = vmatmul.f32.gmra.mxu0 %v579_v45  ;;  %v1192_v59 = vpop.f32.mrf.mxu3  ;;  %v595_v40 = vand.u32 4294901760, %v594_v26  ;;  %v601_v45 = vand.u32 4294901760, %v600_v27  ;;  %v269_v54 = vld [vmem:[%s4218_s23 + $0xb8] sm:$0xff] }
  0xb6   : > { %v977_v1 = vadd.f32 %v976_v55, %v793_v58  ;;  %855 = vmatmul.f32.gmra.mxu1 %v4376_v56  ;;  %v602_v63 = vsub.f32 %v600_v27, %v601_v45 }
  0xb8   : > { %v4416_v2 = vadd.f32 %v1192_v59, %v977_v1  ;;  %1060 = vmatmul.f32.gmra.mxu2 %v584_v31  ;;  %1293 = vmatmul.f32.gmra.mxu3 %v585_v46  ;;  %v4431_v31 = vsub.f32 %v1894_v15, %v4425_v22  ;;  %v4439_v46 = vand.u32 4294901760, %v362_v30 }
  0xb9   : > { %v461_v8 = vpop.f32.mrf.mxu0 }
  0xba   : > { %v462_v9 = vadd.f32 %v4374_v53, %v461_v8  ;;  %v6296_v34 = vand.u32 4294901760, %v4431_v31  ;;  %2495 = vmatpush.msra.mxu0 %v4431_v31  ;;  %6454 = vst [vmem:[#allocation4_spill] sm:$0xff] %v4439_v46  ;;  %v608_v1 = vsub.f32 %v362_v30, %v4439_v46 }
  0xbb   : > { %v796_v17 = vpop.f32.mrf.mxu1  ;;  %v981_v19 = vpop.f32.mrf.mxu2 }
  0xbc   : > { %v797_v23 = vadd.f32 %v796_v17, %v462_v9  ;;  %588 = vmatmul.f32.gmra.mxu0 %v587_v3  ;;  %v1198_v24 = vpop.f32.mrf.mxu3  ;;  %v2253_v50 = vsub.f32 %v4431_v31, %v6296_v34  ;;  %v365_v3 = vsel %vm294_vm0, %v269_v54, 0  ;;  %v603_v9 = vand.u32 4294901760, %v602_v63 }
  0xbd   : > { %v609_v13 = vand.u32 4294901760, %v608_v1  ;;  %v4451_v15 = vand.u32 4294901760, %v365_v3 }
  0xbe   : > { %v982_v32 = vadd.f32 %v981_v19, %v797_v23  ;;  %859 = vmatmul.f32.gmra.mxu1 %v4390_v16  ;;  %v2254_v59 = vand.u32 4294901760, %v2253_v50  ;;  %v270_v23 = vld [vmem:[%s4218_s23 + $0xc0] sm:$0xff] }
  0xbf   : > { %6455 = vst [vmem:[#allocation5_spill] sm:$0xff] %v4451_v15 }
  0xc0   : > { %v4437_v35 = vadd.f32 %v1198_v24, %v982_v32  ;;  %1065 = vmatmul.f32.gmra.mxu2 %v592_v62  ;;  %1299 = vmatmul.f32.gmra.mxu3 %v593_v5 }
  0xc1   : > { %v469_v49 = vpop.f32.mrf.mxu0  ;;  %2255 = vmatpush.msrb.mxu3 %v2254_v59 }
  0xc2   : > { %v470_v51 = vadd.f32 %v4374_v53, %v469_v49  ;;  %v616_v49 = vsub.f32 %v365_v3, %v4451_v15 }
  0xc3   : > { %v800_v55 = vpop.f32.mrf.mxu1  ;;  %v986_v58 = vpop.f32.mrf.mxu2 }
  0xc4   : > { %v801_v61 = vadd.f32 %v800_v55, %v470_v51  ;;  %596 = vmatmul.f32.gmra.mxu0 %v595_v40  ;;  %v1204_v62 = vpop.f32.mrf.mxu3  ;;  %v610_v40 = vsub.f32 %v608_v1, %v609_v13  ;;  %v617_v59 = vand.u32 4294901760, %v616_v49 }
  0xc6   : > { %v987_v5 = vadd.f32 %v986_v58, %v801_v61  ;;  %863 = vmatmul.f32.gmra.mxu1 %v4409_v47  ;;  %v611_v58 = vand.u32 4294901760, %v610_v40 }
  0xc8   : > { %v4449_v8 = vadd.f32 %v1204_v62, %v987_v5  ;;  %1070 = vmatmul.f32.gmra.mxu2 %v600_v27  ;;  %1305 = vmatmul.f32.gmra.mxu3 %v601_v45  ;;  %v1893_v27 = vld [vmem:[%s6292_s3 + $0x60] sm:$0xff]  ;;  %v368_v45 = vsel %vm294_vm0, %v270_v23, 0  ;;  %v271_v5 = vld [vmem:[%s4218_s23 + $0xc8] sm:$0xff]  ;;  %v618_v23 = vsub.f32 %v616_v49, %v617_v59 }
  0xc9   : > { %v477_v17 = vpop.f32.mrf.mxu0  ;;  %v4460_v50 = vand.u32 4294901760, %v1893_v27  ;;  %v4470_v61 = vand.u32 4294901760, %v368_v45 }
  0xca   : > { %v478_v19 = vadd.f32 %v4374_v53, %v477_v17 }
  0xcb   : > { %v804_v24 = vpop.f32.mrf.mxu1  ;;  %v991_v26 = vpop.f32.mrf.mxu2  ;;  %1908 = vmatpush.msrb.mxu2 %v4460_v50  ;;  %v4465_v54 = vsub.f32 %v1893_v27, %v4460_v50  ;;  %2733 = vmatpush.msra.mxu1 %v4460_v50  ;;  %6456 = vst [vmem:[#allocation6_spill] sm:$0xff] %v4470_v61  ;;  %v619_v27 = vand.u32 4294901760, %v618_v23 }
  0xcc   : > { %v805_v30 = vadd.f32 %v804_v24, %v478_v19  ;;  %604 = vmatmul.f32.gmra.mxu0 %v603_v9  ;;  %v1210_v32 = vpop.f32.mrf.mxu3  ;;  %v624_v24 = vsub.f32 %v368_v45, %v4470_v61 }
  0xcd   : > { %v6295_v63 = vand.u32 4294901760, %v4465_v54  ;;  %2498 = vmatpush.msra.mxu0 %v4465_v54 }
  0xce   : > { %v992_v51 = vadd.f32 %v991_v26, %v805_v30  ;;  %867 = vmatmul.f32.gmra.mxu1 %v4418_v6  ;;  %v371_v26 = vsel %vm294_vm0, %v271_v5, 0 }
  0xcf   : > { %v2259_v19 = vsub.f32 %v4465_v54, %v6295_v63 }
  0xd0   : > { %v4468_v55 = vadd.f32 %v1210_v32, %v992_v51  ;;  %1075 = vmatmul.f32.gmra.mxu2 %v608_v1  ;;  %1311 = vmatmul.f32.gmra.mxu3 %v609_v13  ;;  %v625_v51 = vand.u32 4294901760, %v624_v24 }
  0xd1   : > { %v485_v62 = vpop.f32.mrf.mxu0  ;;  %v2260_v30 = vand.u32 4294901760, %v2259_v19 }
  0xd2   : > { %v486_v3 = vadd.f32 %v4374_v53, %v485_v62  ;;  %v4484_v62 = vand.u32 4294901760, %v371_v26  ;;  %v626_v19 = vsub.f32 %v624_v24, %v625_v51 }
  0xd3   : > { %v808_v9 = vpop.f32.mrf.mxu1  ;;  %v996_v17 = vpop.f32.mrf.mxu2  ;;  %2261 = vmatpush.msrb.mxu3 %v2260_v30 }
  0xd4   : > { %v809_v1 = vadd.f32 %v808_v9, %v486_v3  ;;  %612 = vmatmul.f32.gmra.mxu0 %v611_v58  ;;  %v1216_v13 = vpop.f32.mrf.mxu3  ;;  %6458 = vst [vmem:[#allocation8_spill] sm:$0xff] %v4484_v62  ;;  %v272_v9 = vld [vmem:[%s4218_s23 + $0xd0] sm:$0xff]  ;;  %v627_v23 = vand.u32 4294901760, %v626_v19 }
  0xd6   : > { %v997_v32 = vadd.f32 %v996_v17, %v809_v1  ;;  %871 = vmatmul.f32.gmra.mxu1 %v4439_v46  ;;  %v632_v1 = vsub.f32 %v371_v26, %v4484_v62 }
  0xd8   : > { %v4482_v40 = vadd.f32 %v1216_v13, %v997_v32  ;;  %1080 = vmatmul.f32.gmra.mxu2 %v616_v49  ;;  %1317 = vmatmul.f32.gmra.mxu3 %v617_v59  ;;  %v374_v49 = vsel %vm294_vm0, %v272_v9, 0  ;;  %v633_v30 = vand.u32 4294901760, %v632_v1 }
  0xd9   : > { %v493_v58 = vpop.f32.mrf.mxu0  ;;  %v4493_v32 = vand.u32 4294901760, %v374_v49 }
  0xda   : > { %6457 = vst [vmem:[#allocation7_spill] sm:$0xff] %v4482_v40  ;;  %v494_v3 = vadd.f32 %v4374_v53, %v493_v58 }
  0xdb   : > { %v812_v45 = vpop.f32.mrf.mxu1  ;;  %v1001_v63 = vpop.f32.mrf.mxu2  ;;  %6460 = vst [vmem:[#allocation10_spill] sm:$0xff] %v4493_v32  ;;  %v640_v19 = vsub.f32 %v374_v49, %v4493_v32 }
  0xdc   : > { %v813_v5 = vadd.f32 %v812_v45, %v494_v3  ;;  %620 = vmatmul.f32.gmra.mxu0 %v619_v27  ;;  %v1222_v17 = vpop.f32.mrf.mxu3  ;;  %v1892_v27 = vld [vmem:[%s6292_s3 + $0x58] sm:$0xff] }
  0xdd   : > { %v4498_v3 = vand.u32 4294901760, %v1892_v27  ;;  %v641_v49 = vand.u32 4294901760, %v640_v19 }
  0xde   : > { %v1002_v13 = vadd.f32 %v1001_v63, %v813_v5  ;;  %875 = vmatmul.f32.gmra.mxu1 %v4451_v15  ;;  %v273_v63 = vld [vmem:[%s4218_s23 + $0xd8] sm:$0xff]  ;;  %v274_v15 = vld [vmem:[%s4218_s23 + $0xe0] sm:$0xff] }
  0xdf   : > { %1910 = vmatpush.msrb.mxu2 %v4498_v3  ;;  %2735 = vmatpush.msra.mxu1 %v4498_v3 }
  0xe0   : > { %v4491_v59 = vadd.f32 %v1222_v17, %v1002_v13  ;;  %1085 = vmatmul.f32.gmra.mxu2 %v624_v24  ;;  %1323 = vmatmul.f32.gmra.mxu3 %v625_v51  ;;  %v4504_v24 = vsub.f32 %v1892_v27, %v4498_v3  ;;  %v634_v17 = vsub.f32 %v632_v1, %v633_v30  ;;  %v377_v13 = vsel %vm294_vm0, %v273_v63, 0 }
  0xe1   : > { %v501_v58 = vpop.f32.mrf.mxu0 }
  0xe2   : > { %6459 = vst [vmem:[#allocation9_spill] sm:$0xff] %v4491_v59  ;;  %v502_v26 = vadd.f32 %v4374_v53, %v501_v58  ;;  %v6303_v58 = vand.u32 4294901760, %v4504_v24  ;;  %2501 = vmatpush.msra.mxu0 %v4504_v24 }
  0xe3   : > { %v816_v9 = vpop.f32.mrf.mxu1  ;;  %v1006_v45 = vpop.f32.mrf.mxu2 }
  0xe4   : > { %v817_v51 = vadd.f32 %v816_v9, %v502_v26  ;;  %628 = vmatmul.f32.gmra.mxu0 %v627_v23  ;;  %v1228_v5 = vpop.f32.mrf.mxu3  ;;  %v2265_v27 = vsub.f32 %v4504_v24, %v6303_v58  ;;  %v635_v23 = vand.u32 4294901760, %v634_v17  ;;  %v4517_v9 = vand.u32 4294901760, %v377_v13 }
  0xe6   : > { %v1007_v34 = vadd.f32 %v1006_v45, %v817_v51  ;;  %879 = vmatmul.f32.gmra.mxu1 %v4470_v61  ;;  %6462 = vst [vmem:[#allocation12_spill] sm:$0xff] %v4517_v9  ;;  %v2266_v25 = vand.u32 4294901760, %v2265_v27 }
  0xe8   : > { %v4515_v26 = vadd.f32 %v1228_v5, %v1007_v34  ;;  %1090 = vmatmul.f32.gmra.mxu2 %v632_v1  ;;  %1329 = vmatmul.f32.gmra.mxu3 %v633_v30  ;;  %v642_v34 = vsub.f32 %v640_v19, %v641_v49  ;;  %v648_v1 = vsub.f32 %v377_v13, %v4517_v9  ;;  %v380_v30 = vsel %vm294_vm0, %v274_v15, 0  ;;  %v1891_v13 = vld [vmem:[%s6292_s3 + $0x50] sm:$0xff] }
  0xe9   : > { %v509_v63 = vpop.f32.mrf.mxu0  ;;  %2267 = vmatpush.msrb.mxu3 %v2266_v25 }
  0xea   : > { %6461 = vst [vmem:[#allocation11_spill] sm:$0xff] %v4515_v26  ;;  %v510_v43 = vadd.f32 %v4374_v53, %v509_v63  ;;  %v643_v27 = vand.u32 4294901760, %v642_v34  ;;  %v649_v63 = vand.u32 4294901760, %v648_v1  ;;  %v4526_v26 = vand.u32 4294901760, %v380_v30 }
  0xeb   : > { %v820_v45 = vpop.f32.mrf.mxu1  ;;  %v1011_v51 = vpop.f32.mrf.mxu2 }
  0xec   : > { %v821_v61 = vadd.f32 %v820_v45, %v510_v43  ;;  %636 = vmatmul.f32.gmra.mxu0 %v635_v23  ;;  %v1234_v58 = vpop.f32.mrf.mxu3  ;;  %6464 = vst [vmem:[#allocation14_spill] sm:$0xff] %v4526_v26  ;;  %v275_v23 = vld [vmem:[%s4218_s23 + $0xe8] sm:$0xff]  ;;  %v4533_v45 = vand.u32 4294901760, %v1891_v13 }
  0xed   : > { %v383_v34 = vsel %vm294_vm0, %v275_v23, 0 }
  0xee   : > { %v1012_v5 = vadd.f32 %v1011_v51, %v821_v61  ;;  %883 = vmatmul.f32.gmra.mxu1 %v4484_v62  ;;  %v650_v51 = vsub.f32 %v648_v1, %v649_v63  ;;  %1912 = vmatpush.msrb.mxu2 %v4533_v45 }
  0xef   : > { %2737 = vmatpush.msra.mxu1 %v4533_v45 }
  0xf0   : > { %v4524_v17 = vadd.f32 %v1234_v58, %v1012_v5  ;;  %1095 = vmatmul.f32.gmra.mxu2 %v640_v19  ;;  %1335 = vmatmul.f32.gmra.mxu3 %v641_v49  ;;  %v656_v49 = vsub.f32 %v380_v30, %v4526_v26  ;;  %v4539_v5 = vsub.f32 %v1891_v13, %v4533_v45  ;;  %v651_v30 = vand.u32 4294901760, %v650_v51 }
  0xf1   : > { %v517_v43 = vpop.f32.mrf.mxu0 }
  0xf2   : > { %6463 = vst [vmem:[#allocation13_spill] sm:$0xff] %v4524_v17  ;;  %v518_v25 = vadd.f32 %v4374_v53, %v517_v43  ;;  %2504 = vmatpush.msra.mxu0 %v4539_v5  ;;  %v657_v23 = vand.u32 4294901760, %v656_v49 }
  0xf3   : > { %v824_v15 = vpop.f32.mrf.mxu1  ;;  %v1016_v61 = vpop.f32.mrf.mxu2 }
  0xf4   : > { %v825_v58 = vadd.f32 %v824_v15, %v518_v25  ;;  %644 = vmatmul.f32.gmra.mxu0 %v643_v27  ;;  %v1240_v19 = vpop.f32.mrf.mxu3  ;;  %v6310_v25 = vand.u32 4294901760, %v4539_v5  ;;  %v4547_v15 = vand.u32 4294901760, %v383_v34 }
  0xf6   : > { %v1017_v43 = vadd.f32 %v1016_v61, %v825_v58  ;;  %887 = vmatmul.f32.gmra.mxu1 %v4493_v32  ;;  %6466 = vst [vmem:[#allocation16_spill] sm:$0xff] %v4547_v15  ;;  %v2271_v13 = vsub.f32 %v4539_v5, %v6310_v25  ;;  %v276_v58 = vld [vmem:[%s4218_s23 + $0xf0] sm:$0xff] }
  0xf7   : > { %v386_v51 = vsel %vm294_vm0, %v276_v58, 0 }
  0xf8   : > { %v4545_v27 = vadd.f32 %v1240_v19, %v1017_v43  ;;  %1100 = vmatmul.f32.gmra.mxu2 %v648_v1  ;;  %1341 = vmatmul.f32.gmra.mxu3 %v649_v63  ;;  %v2272_v59 = vand.u32 4294901760, %v2271_v13  ;;  %v658_v19 = vsub.f32 %v656_v49, %v657_v23  ;;  %v664_v63 = vsub.f32 %v383_v34, %v4547_v15 }
  0xf9   : > { %v525_v62 = vpop.f32.mrf.mxu0  ;;  %v4559_v13 = vand.u32 4294901760, %v386_v51 }
  0xfa   : > { %6465 = vst [vmem:[#allocation15_spill] sm:$0xff] %v4545_v27  ;;  %v526_v61 = vadd.f32 %v4374_v53, %v525_v62  ;;  %2273 = vmatpush.msrb.mxu3 %v2272_v59  ;;  %v659_v62 = vand.u32 4294901760, %v658_v19  ;;  %v665_v27 = vand.u32 4294901760, %v664_v63 }
  0xfb   : > { %v828_v32 = vpop.f32.mrf.mxu1  ;;  %v1021_v17 = vpop.f32.mrf.mxu2  ;;  %6468 = vst [vmem:[#allocation18_spill] sm:$0xff] %v4559_v13 }
  0xfc   : > { %v829_v46 = vadd.f32 %v828_v32, %v526_v61  ;;  %652 = vmatmul.f32.gmra.mxu0 %v651_v30  ;;  %v1246_v1 = vpop.f32.mrf.mxu3  ;;  %v277_v61 = vld [vmem:[%s4218_s23 + $0xf8] sm:$0xff] }
  0xfd   : > { %v389_v58 = vsel %vm294_vm0, %v277_v61, 0 }
  0xfe   : > { %v1022_v43 = vadd.f32 %v1021_v17, %v829_v46  ;;  %891 = vmatmul.f32.gmra.mxu1 %v4517_v9  ;;  %v666_v46 = vsub.f32 %v664_v63, %v665_v27  ;;  %v672_v17 = vsub.f32 %v386_v51, %v4559_v13 }
 0x100   : > { %v4557_v25 = vadd.f32 %v1246_v1, %v1022_v43  ;;  %1105 = vmatmul.f32.gmra.mxu2 %v656_v49  ;;  %1347 = vmatmul.f32.gmra.mxu3 %v657_v23  ;;  %v1890_v23 = vld [vmem:[%s6292_s3 + $0x48] sm:$0xff]  ;;  %v673_v43 = vand.u32 4294901760, %v672_v17 }
 0x101   : > { %v533_v32 = vpop.f32.mrf.mxu0  ;;  %v4569_v1 = vand.u32 4294901760, %v1890_v23 }
 0x102   : > { %6467 = vst [vmem:[#allocation17_spill] sm:$0xff] %v4557_v25  ;;  %v534_v30 = vadd.f32 %v4374_v53, %v533_v32 }
 0x103   : > { %v832_v40 = vpop.f32.mrf.mxu1  ;;  %v1026_v34 = vpop.f32.mrf.mxu2  ;;  %1914 = vmatpush.msrb.mxu2 %v4569_v1  ;;  %2739 = vmatpush.msra.mxu1 %v4569_v1 }
 0x104   : > { %v833_v6 = vadd.f32 %v832_v40, %v534_v30  ;;  %660 = vmatmul.f32.gmra.mxu0 %v659_v62  ;;  %v1252_v59 = vpop.f32.mrf.mxu3  ;;  %v667_v40 = vand.u32 4294901760, %v666_v46  ;;  %v4573_v62 = vand.u32 4294901760, %v389_v58  ;;  %v278_v30 = vld [vmem:[%s4218_s23 + $0x100] sm:$0xff] }
 0x106   : > { %v1027_v49 = vadd.f32 %v1026_v34, %v833_v6  ;;  %895 = vmatmul.f32.gmra.mxu1 %v4526_v26  ;;  %6470 = vst [vmem:[#allocation20_spill] sm:$0xff] %v4573_v62  ;;  %v4577_v6 = vsub.f32 %v1890_v23, %v4569_v1  ;;  %v680_v46 = vsub.f32 %v389_v58, %v4573_v62  ;;  %v392_v23 = vsel %vm294_vm0, %v278_v30, 0  ;;  %v279_v30 = vld [vmem:[%s4218_s23 + $0x108] sm:$0xff] }
 0x108   : > { %v4571_v19 = vadd.f32 %v1252_v59, %v1027_v49  ;;  %1110 = vmatmul.f32.gmra.mxu2 %v664_v63  ;;  %1353 = vmatmul.f32.gmra.mxu3 %v665_v27  ;;  %v6317_v63 = vand.u32 4294901760, %v4577_v6  ;;  %v674_v59 = vsub.f32 %v672_v17, %v673_v43 }
 0x109   : > { %v541_v51 = vpop.f32.mrf.mxu0  ;;  %2507 = vmatpush.msra.mxu0 %v4577_v6 }
 0x10a   : > { %6469 = vst [vmem:[#allocation19_spill] sm:$0xff] %v4571_v19  ;;  %v542_v32 = vadd.f32 %v4374_v53, %v541_v51  ;;  %v2277_v53 = vsub.f32 %v4577_v6, %v6317_v63 }
 0x10b   : > { %v836_v61 = vpop.f32.mrf.mxu1  ;;  %v1031_v34 = vpop.f32.mrf.mxu2 }
 0x10c   : > { %v837_v27 = vadd.f32 %v836_v61, %v542_v32  ;;  %668 = vmatmul.f32.gmra.mxu0 %v667_v40  ;;  %v1258_v49 = vpop.f32.mrf.mxu3  ;;  %v2278_v26 = vand.u32 4294901760, %v2277_v53  ;;  %v675_v32 = vand.u32 4294901760, %v674_v59  ;;  %v681_v40 = vand.u32 4294901760, %v680_v46 }
 0x10d   : > { %v4592_v61 = vand.u32 4294901760, %v392_v23 }
 0x10e   : > { %v1032_v51 = vadd.f32 %v1031_v34, %v837_v27  ;;  %899 = vmatmul.f32.gmra.mxu1 %v4547_v15  ;;  %2279 = vmatpush.msrb.mxu3 %v2278_v26  ;;  %v682_v34 = vsub.f32 %v680_v46, %v681_v40  ;;  %v1889_v26 = vld [vmem:[%s6292_s3 + $0x40] sm:$0xff] }
 0x10f   : > { %6472 = vst [vmem:[#allocation22_spill] sm:$0xff] %v4592_v61  ;;  %v688_v27 = vsub.f32 %v392_v23, %v4592_v61 }
 0x110   : > { %v4590_v19 = vadd.f32 %v1258_v49, %v1032_v51  ;;  %1115 = vmatmul.f32.gmra.mxu2 %v672_v17  ;;  %1359 = vmatmul.f32.gmra.mxu3 %v673_v43  ;;  %v395_v49 = vsel %vm294_vm0, %v279_v30, 0  ;;  %v683_v17 = vand.u32 4294901760, %v682_v34  ;;  %v4609_v51 = vand.u32 4294901760, %v1889_v26 }
 0x111   : > { %v4594_v58 = vpop.f32.mrf.mxu0  ;;  %v689_v43 = vand.u32 4294901760, %v688_v27  ;;  %v4602_v59 = vand.u32 4294901760, %v395_v49 }
 0x112   : > { %6471 = vst [vmem:[#allocation21_spill] sm:$0xff] %v4590_v19  ;;  %1916 = vmatpush.msrb.mxu2 %v4609_v51  ;;  %2741 = vmatpush.msra.mxu1 %v4609_v51 }
 0x113   : > { %6473 = vst [vmem:[#allocation23_spill] sm:$0xff] %v4594_v58  ;;  %v4597_v9 = vpop.f32.mrf.mxu1  ;;  %v696_v30 = vsub.f32 %v395_v49, %v4602_v59 }
 0x114   : > { %6474 = vst [vmem:[#allocation24_spill] sm:$0xff] %v4597_v9  ;;  %676 = vmatmul.f32.gmra.mxu0 %v675_v32  ;;  %v280_v32 = vld [vmem:[%s4218_s23 + $0x110] sm:$0xff] }
 0x115   : > { %6475 = vst [vmem:[#allocation25_spill] sm:$0xff] %v4602_v59  ;;  %v398_v34 = vsel %vm294_vm0, %v280_v32, 0  ;;  %v281_v32 = vld [vmem:[%s4218_s23 + $0x118] sm:$0xff] }
 0x116   : > { %903 = vmatmul.f32.gmra.mxu1 %v4559_v13 }
 0x118   : > { %1120 = vmatmul.f32.gmra.mxu2 %v680_v46  ;;  %1365 = vmatmul.f32.gmra.mxu3 %v681_v40  ;;  %v4616_v46 = vsub.f32 %v1889_v26, %v4609_v51  ;;  %v690_v40 = vsub.f32 %v688_v27, %v689_v43 }
 0x119   : > { %v4607_v53 = vpop.f32.mrf.mxu0 }
 0x11a   : > { %6476 = vst [vmem:[#allocation26_spill] sm:$0xff] %v4607_v53  ;;  %v6324_v63 = vand.u32 4294901760, %v4616_v46  ;;  %2510 = vmatpush.msra.mxu0 %v4616_v46  ;;  %v691_v13 = vand.u32 4294901760, %v690_v40 }
 0x11b   : > { %v4612_v23 = vpop.f32.mrf.mxu1 }
 0x11c   : > { %6477 = vst [vmem:[#allocation27_spill] sm:$0xff] %v4612_v23  ;;  %684 = vmatmul.f32.gmra.mxu0 %v683_v17  ;;  %v2283_v26 = vsub.f32 %v4616_v46, %v6324_v63  ;;  %v697_v23 = vand.u32 4294901760, %v696_v30  ;;  %v4627_v17 = vand.u32 4294901760, %v398_v34  ;;  %v401_v63 = vsel %vm294_vm0, %v281_v32, 0 }
 0x11d   : > { %v4637_v40 = vand.u32 4294901760, %v401_v63 }
 0x11e   : > { %907 = vmatmul.f32.gmra.mxu1 %v4573_v62  ;;  %6478 = vst [vmem:[#allocation28_spill] sm:$0xff] %v4627_v17  ;;  %v2284_v49 = vand.u32 4294901760, %v2283_v26  ;;  %v698_v62 = vsub.f32 %v696_v30, %v697_v23  ;;  %v704_v19 = vsub.f32 %v398_v34, %v4627_v17  ;;  %v282_v26 = vld [vmem:[%s4218_s23 + $0x120] sm:$0xff]  ;;  %v1888_v34 = vld [vmem:[%s6292_s3 + $0x38] sm:$0xff] }
 0x11f   : > { %6481 = vst [vmem:[#allocation31_spill] sm:$0xff] %v4637_v40 }
 0x120   : > { %1125 = vmatmul.f32.gmra.mxu2 %v688_v27  ;;  %1371 = vmatmul.f32.gmra.mxu3 %v689_v43  ;;  %v699_v27 = vand.u32 4294901760, %v698_v62  ;;  %v705_v43 = vand.u32 4294901760, %v704_v19  ;;  %v404_v62 = vsel %vm294_vm0, %v282_v26, 0 }
 0x121   : > { %v4629_v15 = vpop.f32.mrf.mxu0  ;;  %2285 = vmatpush.msrb.mxu3 %v2284_v49  ;;  %v712_v49 = vsub.f32 %v401_v63, %v4637_v40 }
 0x122   : > { %6479 = vst [vmem:[#allocation29_spill] sm:$0xff] %v4629_v15 }
 0x123   : > { %v4632_v53 = vpop.f32.mrf.mxu1  ;;  %v713_v32 = vand.u32 4294901760, %v712_v49 }
 0x124   : > { %6480 = vst [vmem:[#allocation30_spill] sm:$0xff] %v4632_v53  ;;  %692 = vmatmul.f32.gmra.mxu0 %v691_v13  ;;  %v706_v13 = vsub.f32 %v704_v19, %v705_v43 }
 0x126   : > { %911 = vmatmul.f32.gmra.mxu1 %v4592_v61  ;;  %v707_v63 = vand.u32 4294901760, %v706_v13 }
 0x128   : > { %1130 = vmatmul.f32.gmra.mxu2 %v696_v30  ;;  %1377 = vmatmul.f32.gmra.mxu3 %v697_v23  ;;  %v4649_v23 = vand.u32 4294901760, %v1888_v34 }
 0x129   : > { %v4639_v15 = vpop.f32.mrf.mxu0 }
 0x12a   : > { %6482 = vst [vmem:[#allocation32_spill] sm:$0xff] %v4639_v15  ;;  %1918 = vmatpush.msrb.mxu2 %v4649_v23  ;;  %v4654_v30 = vsub.f32 %v1888_v34, %v4649_v23  ;;  %2743 = vmatpush.msra.mxu1 %v4649_v23 }
 0x12b   : > { %v4642_v9 = vpop.f32.mrf.mxu1 }
 0x12c   : > { %6483 = vst [vmem:[#allocation33_spill] sm:$0xff] %v4642_v9  ;;  %700 = vmatmul.f32.gmra.mxu0 %v699_v27  ;;  %v4657_v27 = vand.u32 4294901760, %v404_v62  ;;  %v6329_v26 = vand.u32 4294901760, %v4654_v30 }
 0x12d   : > { %2513 = vmatpush.msra.mxu0 %v4654_v30 }
 0x12e   : > { %915 = vmatmul.f32.gmra.mxu1 %v4602_v59  ;;  %6484 = vst [vmem:[#allocation34_spill] sm:$0xff] %v4657_v27  ;;  %v283_v59 = vld [vmem:[%s4218_s23 + $0x128] sm:$0xff]  ;;  %v2289_v34 = vsub.f32 %v4654_v30, %v6329_v26 }
 0x12f   : > { %v407_v13 = vsel %vm294_vm0, %v283_v59, 0 }
 0x130   : > { %1135 = vmatmul.f32.gmra.mxu2 %v704_v19  ;;  %1383 = vmatmul.f32.gmra.mxu3 %v705_v43  ;;  %v714_v19 = vsub.f32 %v712_v49, %v713_v32  ;;  %v720_v43 = vsub.f32 %v404_v62, %v4657_v27  ;;  %v2290_v15 = vand.u32 4294901760, %v2289_v34  ;;  %v4672_v58 = vand.u32 4294901760, %v407_v13 }
 0x131   : > { %v4659_v61 = vpop.f32.mrf.mxu0 }
 0x132   : > { %6485 = vst [vmem:[#allocation35_spill] sm:$0xff] %v4659_v61  ;;  %2291 = vmatpush.msrb.mxu3 %v2290_v15  ;;  %v715_v61 = vand.u32 4294901760, %v714_v19  ;;  %v721_v53 = vand.u32 4294901760, %v720_v43  ;;  %v728_v62 = vsub.f32 %v407_v13, %v4672_v58  ;;  %v1887_v15 = vld [vmem:[%s6292_s3 + $0x30] sm:$0xff] }
 0x133   : > { %v4664_v9 = vpop.f32.mrf.mxu1  ;;  %6487 = vst [vmem:[#allocation37_spill] sm:$0xff] %v4672_v58  ;;  %v4683_v59 = vand.u32 4294901760, %v1887_v15 }
 0x134   : > { %6486 = vst [vmem:[#allocation36_spill] sm:$0xff] %v4664_v9  ;;  %708 = vmatmul.f32.gmra.mxu0 %v707_v63  ;;  %v722_v63 = vsub.f32 %v720_v43, %v721_v53 }
 0x135   : > { %1920 = vmatpush.msrb.mxu2 %v4683_v59  ;;  %2745 = vmatpush.msra.mxu1 %v4683_v59 }
 0x136   : > { %919 = vmatmul.f32.gmra.mxu1 %v4627_v17 }
 0x138   : > { %1140 = vmatmul.f32.gmra.mxu2 %v712_v49  ;;  %1389 = vmatmul.f32.gmra.mxu3 %v713_v32  ;;  %v723_v49 = vand.u32 4294901760, %v722_v63  ;;  %v729_v32 = vand.u32 4294901760, %v728_v62 }
 0x139   : > { %v4674_v9 = vpop.f32.mrf.mxu0 }
 0x13a   : > { %6488 = vst [vmem:[#allocation38_spill] sm:$0xff] %v4674_v9 }
 0x13b   : > { %v4676_v25 = vpop.f32.mrf.mxu1 }
 0x13c   : > { %6489 = vst [vmem:[#allocation39_spill] sm:$0xff] %v4676_v25  ;;  %716 = vmatmul.f32.gmra.mxu0 %v715_v61  ;;  %v4689_v61 = vsub.f32 %v1887_v15, %v4683_v59 }
 0x13e   : > { %923 = vmatmul.f32.gmra.mxu1 %v4637_v40  ;;  %v6332_v13 = vand.u32 4294901760, %v4689_v61  ;;  %2516 = vmatpush.msra.mxu0 %v4689_v61 }
 0x140   : > { %1145 = vmatmul.f32.gmra.mxu2 %v720_v43  ;;  %1395 = vmatmul.f32.gmra.mxu3 %v721_v53  ;;  %v730_v43 = vsub.f32 %v728_v62, %v729_v32  ;;  %v2295_v53 = vsub.f32 %v4689_v61, %v6332_v13  ;;  %v1886_v13 = vld [vmem:[%s6292_s3 + $0x28] sm:$0xff] }
 0x141   : > { %v4685_v34 = vpop.f32.mrf.mxu0 }
 0x142   : > { %6490 = vst [vmem:[#allocation40_spill] sm:$0xff] %v4685_v34  ;;  %v2296_v63 = vand.u32 4294901760, %v2295_v53  ;;  %v731_v15 = vand.u32 4294901760, %v730_v43  ;;  %v4712_v53 = vand.u32 4294901760, %v1886_v13 }
 0x143   : > { %v4692_v19 = vpop.f32.mrf.mxu1 }
 0x144   : > { %6491 = vst [vmem:[#allocation41_spill] sm:$0xff] %v4692_v19  ;;  %724 = vmatmul.f32.gmra.mxu0 %v723_v49  ;;  %2297 = vmatpush.msrb.mxu3 %v2296_v63 }
 0x145   : > { %1922 = vmatpush.msrb.mxu2 %v4712_v53  ;;  %2747 = vmatpush.msra.mxu1 %v4712_v53 }
 0x146   : > { %927 = vmatmul.f32.gmra.mxu1 %v4657_v27 }
 0x148   : > { %1150 = vmatmul.f32.gmra.mxu2 %v728_v62  ;;  %1401 = vmatmul.f32.gmra.mxu3 %v729_v32  ;;  %v4717_v62 = vsub.f32 %v1886_v13, %v4712_v53 }
 0x149   : > { %v4700_v26 = vpop.f32.mrf.mxu0 }
 0x14a   : > { %6492 = vst [vmem:[#allocation42_spill] sm:$0xff] %v4700_v26  ;;  %v6335_v32 = vand.u32 4294901760, %v4717_v62  ;;  %2519 = vmatpush.msra.mxu0 %v4717_v62 }
 0x14b   : > { %v4702_v40 = vpop.f32.mrf.mxu1 }
 0x14c   : > { %6493 = vst [vmem:[#allocation43_spill] sm:$0xff] %v4702_v40  ;;  %732 = vmatmul.f32.gmra.mxu0 %v731_v15  ;;  %v2301_v63 = vsub.f32 %v4717_v62, %v6335_v32 }
 0x14e   : > { %931 = vmatmul.f32.gmra.mxu1 %v4672_v58  ;;  %v2302_v58 = vand.u32 4294901760, %v2301_v63 }
 0x150   : > { %2303 = vmatpush.msrb.mxu3 %v2302_v58 }
 0x151   : > { %v4705_v49 = vpop.f32.mrf.mxu0 }
 0x152   : > { %6494 = vst [vmem:[#allocation44_spill] sm:$0xff] %v4705_v49 }
 0x153   : > { %v4710_v19 = vpop.f32.mrf.mxu1 }
 0x154   : > { %6495 = vst [vmem:[#allocation45_spill] sm:$0xff] %v4710_v19  ;;  %1440 = vmatmul.f32.vlgmr.msrb.gmra.mxu0 %v4232_v33 }
 0x156   : > { %1615 = vmatmul.f32.vlgmr.msrb.gmra.mxu1 %v4232_v33 }
 0x159   : > { %v4723_v43 = vpop.f32.mrf.mxu0 }
 0x15a   : > { %6496 = vst [vmem:[#allocation46_spill] sm:$0xff] %v4723_v43  ;;  %v1885_v43 = vld [vmem:[%s6292_s3 + $0x20] sm:$0xff] }
 0x15b   : > { %v4728_v15 = vpop.f32.mrf.mxu1  ;;  %v4740_v19 = vand.u32 4294901760, %v1885_v43 }
 0x15c   : > { %6497 = vst [vmem:[#allocation47_spill] sm:$0xff] %v4728_v15  ;;  %1444 = vmatmul.f32.gmra.mxu0 %v4241_v39 }
 0x15d   : > { %1924 = vmatpush.msrb.mxu2 %v4740_v19  ;;  %v4745_v58 = vsub.f32 %v1885_v43, %v4740_v19  ;;  %2749 = vmatpush.msra.mxu1 %v4740_v19  ;;  %v4759_v43 = vpop.f32.mrf.mxu3 }
 0x15e   : > { %1619 = vmatmul.f32.gmra.mxu1 %v4241_v39 }
 0x15f   : > { %v6336_v63 = vand.u32 4294901760, %v4745_v58  ;;  %2522 = vmatpush.msra.mxu0 %v4745_v58 }
 0x161   : > { %v4732_v13 = vpop.f32.mrf.mxu0 }
 0x162   : > { %6498 = vst [vmem:[#allocation48_spill] sm:$0xff] %v4732_v13 }
 0x163   : > { %v4734_v33 = vpop.f32.mrf.mxu1 }
 0x164   : > { %6499 = vst [vmem:[#allocation49_spill] sm:$0xff] %v4734_v33  ;;  %1448 = vmatmul.f32.gmra.mxu0 %v4250_v48  ;;  %v2307_v33 = vsub.f32 %v4745_v58, %v6336_v63  ;;  %v1884_v63 = vld [vmem:[%s6292_s3 + $0x18] sm:$0xff] }
 0x166   : > { %1623 = vmatmul.f32.gmra.mxu1 %v4250_v48  ;;  %v2308_v48 = vand.u32 4294901760, %v2307_v33 }
 0x168   : > { %2309 = vmatpush.msrb.mxu3 %v2308_v48  ;;  %v4776_v48 = vpop.f32.mrf.mxu3 }
 0x169   : > { %v4748_v39 = vpop.f32.mrf.mxu0 }
 0x16a   : > { %6500 = vst [vmem:[#allocation50_spill] sm:$0xff] %v4748_v39 }
 0x16b   : > { %v4752_v32 = vpop.f32.mrf.mxu1 }
 0x16c   : > { %6501 = vst [vmem:[#allocation51_spill] sm:$0xff] %v4752_v32  ;;  %1452 = vmatmul.f32.gmra.mxu0 %v4261_v57  ;;  %v4767_v32 = vpop.f32.mrf.mxu2 }
 0x16e   : > { %1627 = vmatmul.f32.gmra.mxu1 %v4261_v57  ;;  %v4774_v57 = vand.u32 4294901760, %v1884_v63 }
 0x170   : > { %1926 = vmatpush.msrb.mxu2 %v4774_v57  ;;  %2751 = vmatpush.msra.mxu1 %v4774_v57  ;;  %v4798_v49 = vpop.f32.mrf.mxu3 }
 0x171   : > { %v4761_v13 = vpop.f32.mrf.mxu0 }
 0x172   : > { %6502 = vst [vmem:[#allocation52_spill] sm:$0xff] %v4761_v13 }
 0x173   : > { %v4763_v39 = vpop.f32.mrf.mxu1 }
 0x174   : > { %6503 = vst [vmem:[#allocation53_spill] sm:$0xff] %v4763_v39  ;;  %1456 = vmatmul.f32.gmra.mxu0 %v4271_v0  ;;  %v4782_v39 = vsub.f32 %v1884_v63, %v4774_v57  ;;  %v4794_v27 = vpop.f32.mrf.mxu2 }
 0x176   : > { %1631 = vmatmul.f32.gmra.mxu1 %v4271_v0  ;;  %v6339_v0 = vand.u32 4294901760, %v4782_v39  ;;  %2525 = vmatpush.msra.mxu0 %v4782_v39 }
 0x179   : > { %v4772_v33 = vpop.f32.mrf.mxu0 }
 0x17a   : > { %6504 = vst [vmem:[#allocation54_spill] sm:$0xff] %v4772_v33  ;;  %v2313_v33 = vsub.f32 %v4782_v39, %v6339_v0 }
 0x17b   : > { %v4778_v15 = vpop.f32.mrf.mxu1 }
 0x17c   : > { %6505 = vst [vmem:[#allocation55_spill] sm:$0xff] %v4778_v15  ;;  %1460 = vmatmul.f32.gmra.mxu0 %v4278_v7  ;;  %v2314_v13 = vand.u32 4294901760, %v2313_v33 }
 0x17e   : > { %1635 = vmatmul.f32.gmra.mxu1 %v4278_v7  ;;  %2315 = vmatpush.msrb.mxu3 %v2314_v13  ;;  %v1883_v7 = vld [vmem:[%s6292_s3 + $0x10] sm:$0xff] }
 0x17f   : > { %v4809_v33 = vand.u32 4294901760, %v1883_v7 }
 0x181   : > { %v4792_v15 = vpop.f32.mrf.mxu0  ;;  %1928 = vmatpush.msrb.mxu2 %v4809_v33  ;;  %v4816_v13 = vsub.f32 %v1883_v7, %v4809_v33  ;;  %2753 = vmatpush.msra.mxu1 %v4809_v33 }
 0x182   : > { %6506 = vst [vmem:[#allocation56_spill] sm:$0xff] %v4792_v15  ;;  %v4811_v15 = vpop.f32.mrf.mxu2 }
 0x183   : > { %v4796_v63 = vpop.f32.mrf.mxu1  ;;  %2528 = vmatpush.msra.mxu0 %v4816_v13 }
 0x184   : > { %6507 = vst [vmem:[#allocation57_spill] sm:$0xff] %v4796_v63  ;;  %1464 = vmatmul.f32.gmra.mxu0 %v4284_v14 }
 0x186   : > { %1639 = vmatmul.f32.gmra.mxu1 %v4284_v14  ;;  %v4819_v14 = vpop.f32.mrf.mxu3 }
 0x189   : > { %v4802_v40 = vpop.f32.mrf.mxu0 }
 0x18a   : > { %6508 = vst [vmem:[#allocation58_spill] sm:$0xff] %v4802_v40  ;;  %v6342_v40 = vand.u32 4294901760, %v4816_v13  ;;  %v4832_v17 = vpop.f32.mrf.mxu2 }
 0x18b   : > { %v4807_v0 = vpop.f32.mrf.mxu1 }
 0x18c   : > { %6509 = vst [vmem:[#allocation59_spill] sm:$0xff] %v4807_v0  ;;  %1468 = vmatmul.f32.gmra.mxu0 %v4290_v21  ;;  %v2319_v63 = vsub.f32 %v4816_v13, %v6342_v40 }
 0x18e   : > { %1643 = vmatmul.f32.gmra.mxu1 %v4290_v21  ;;  %v2320_v7 = vand.u32 4294901760, %v2319_v63  ;;  %v4835_v21 = vpop.f32.mrf.mxu3  ;;  %v1882_v63 = vld [vmem:[%s6292_s3 + $0x8] sm:$0xff] }
 0x18f   : > { %6512 = vst [vmem:[#allocation62_spill] sm:$0xff] %v4835_v21  ;;  %v4846_v40 = vand.u32 4294901760, %v1882_v63 }
 0x190   : > { %2321 = vmatpush.msrb.mxu3 %v2320_v7 }
 0x191   : > { %v4824_v0 = vpop.f32.mrf.mxu0  ;;  %1930 = vmatpush.msrb.mxu2 %v4846_v40  ;;  %2755 = vmatpush.msra.mxu1 %v4846_v40 }
 0x192   : > { %6510 = vst [vmem:[#allocation60_spill] sm:$0xff] %v4824_v0  ;;  %v4848_v7 = vpop.f32.mrf.mxu2 }
 0x193   : > { %v4829_v26 = vpop.f32.mrf.mxu1 }
 0x194   : > { %6511 = vst [vmem:[#allocation61_spill] sm:$0xff] %v4829_v26  ;;  %1472 = vmatmul.f32.gmra.mxu0 %v4296_v28 }
 0x196   : > { %1647 = vmatmul.f32.gmra.mxu1 %v4296_v28  ;;  %v4854_v28 = vsub.f32 %v1882_v63, %v4846_v40 }
 0x198   : > { %2531 = vmatpush.msra.mxu0 %v4854_v28 }
 0x199   : > { %v4837_v34 = vpop.f32.mrf.mxu0 }
 0x19a   : > { %6513 = vst [vmem:[#allocation63_spill] sm:$0xff] %v4837_v34  ;;  %v6343_v34 = vand.u32 4294901760, %v4854_v28  ;;  %v4870_v21 = vpop.f32.mrf.mxu2 }
 0x19b   : > { %v4839_v25 = vpop.f32.mrf.mxu1  ;;  %6519 = vst [vmem:[#allocation69_spill] sm:$0xff] %v4870_v21  ;;  %v6527_v21 = vand.u32 4294901760, %v4431_v31 }
 0x19c   : > { %6514 = vst [vmem:[#allocation64_spill] sm:$0xff] %v4839_v25  ;;  %1476 = vmatmul.f32.gmra.mxu0 %v4302_v36  ;;  %v4857_v25 = vpop.f32.mrf.mxu3 }
 0x19d   : > { %6516 = vst [vmem:[#allocation66_spill] sm:$0xff] %v4857_v25 }
 0x19e   : > { %1651 = vmatmul.f32.gmra.mxu1 %v4302_v36 }
 0x1a1   : > { %v4850_v26 = vpop.f32.mrf.mxu0 }
 0x1a2   : > { %6515 = vst [vmem:[#allocation65_spill] sm:$0xff] %v4850_v26  ;;  %v2325_v26 = vsub.f32 %v4854_v28, %v6343_v34  ;;  %v1881_v34 = vld [vmem:[%s6292_s3] sm:$0xff] }
 0x1a3   : > { %v4859_v36 = vpop.f32.mrf.mxu1  ;;  %v4881_v9 = vand.u32 4294901760, %v1881_v34 }
 0x1a4   : > { %6517 = vst [vmem:[#allocation67_spill] sm:$0xff] %v4859_v36  ;;  %1480 = vmatmul.f32.gmra.mxu0 %v4308_v44  ;;  %v2326_v63 = vand.u32 4294901760, %v2325_v26  ;;  %v4874_v36 = vpop.f32.mrf.mxu3 }
 0x1a5   : > { %6521 = vst [vmem:[#allocation71_spill] sm:$0xff] %v4874_v36  ;;  %1932 = vmatpush.msrb.mxu2 %v4881_v9  ;;  %v2329_v26 = vsub.f32 %v1881_v34, %v4881_v9  ;;  %2757 = vmatpush.msra.mxu1 %v4881_v9  ;;  %v6526_v36 = vand.u32 4294901760, %v4394_v18  ;;  %v6531_v18 = vand.u32 4294901760, %v4504_v24 }
 0x1a6   : > { %1655 = vmatmul.f32.gmra.mxu1 %v4308_v44  ;;  %2327 = vmatpush.msrb.mxu3 %v2326_v63 }
 0x1a7   : > { %2534 = vmatpush.msra.mxu0 %v2329_v26 }
 0x1a9   : > { %v4868_v0 = vpop.f32.mrf.mxu0 }
 0x1aa   : > { %6518 = vst [vmem:[#allocation68_spill] sm:$0xff] %v4868_v0  ;;  %v2330_v0 = vand.u32 4294901760, %v2329_v26 }
 0x1ab   : > { %v4872_v25 = vpop.f32.mrf.mxu1 }
 0x1ac   : > { %6520 = vst [vmem:[#allocation70_spill] sm:$0xff] %v4872_v25  ;;  %1484 = vmatmul.f32.gmra.mxu0 %v4314_v52  ;;  %v6524_v25 = vand.u32 4294901760, %v4357_v38  ;;  %v2331_v34 = vsub.f32 %v2329_v26, %v2330_v0 }
 0x1ae   : > { %1659 = vmatmul.f32.gmra.mxu1 %v4314_v52  ;;  %2990 = vmatpush.msra.mxu2 %v6524_v25  ;;  %v4892_v52 = vpop.f32.mrf.mxu2  ;;  %v6529_v25 = vand.u32 4294901760, %v4465_v54  ;;  %v6533_v54 = vand.u32 4294901760, %v4577_v6 }
 0x1af   : > { %6525 = vst [vmem:[#allocation74_spill] sm:$0xff] %v4892_v52 }
 0x1b0   : > { %2994 = vmatpush.msra.mxu2 %v6526_v36 }
 0x1b1   : > { %v4883_v44 = vpop.f32.mrf.mxu0 }
 0x1b2   : > { %6522 = vst [vmem:[#allocation72_spill] sm:$0xff] %v4883_v44  ;;  %v4897_v44 = vpop.f32.mrf.mxu3  ;;  %2998 = vmatpush.msra.mxu2 %v6527_v21 }
 0x1b3   : > { %v4888_v63 = vpop.f32.mrf.mxu1 }
 0x1b4   : > { %6523 = vst [vmem:[#allocation73_spill] sm:$0xff] %v4888_v63  ;;  %1488 = vmatmul.f32.gmra.mxu0 %v4320_v60  ;;  %v2332_v63 = vand.u32 4294901760, %v2331_v34  ;;  %3002 = vmatpush.msra.mxu2 %v6529_v25 }
 0x1b6   : > { %1663 = vmatmul.f32.gmra.mxu1 %v4320_v60  ;;  %2333 = vmatpush.msrb.mxu3 %v2332_v63  ;;  %v6532_v60 = vand.u32 4294901760, %v4539_v5  ;;  %v4915_v31 = vpop.f32.mrf.mxu2 }
 0x1b7   : > { %3006 = vmatpush.msra.mxu2 %v6531_v18 }
 0x1b8   : > { %3205 = vmatpush.msra.mxu3 %v4352_v37 }
 0x1b9   : > { %v4902_v38 = vpop.f32.mrf.mxu0  ;;  %3010 = vmatpush.msra.mxu2 %v6532_v60 }
 0x1ba   : > { %6528 = vst [vmem:[#allocation75_spill] sm:$0xff] %v4902_v38  ;;  %3207 = vmatpush.msra.mxu3 %v4386_v10  ;;  %v4921_v37 = vpop.f32.mrf.mxu3  ;;  %v6535_v10 = vand.u32 4294901760, %v4616_v46  ;;  %v6541_v46 = vand.u32 4294901760, %v4745_v58 }
 0x1bb   : > { %v4906_v52 = vpop.f32.mrf.mxu1  ;;  %3014 = vmatpush.msra.mxu2 %v6533_v54 }
 0x1bc   : > { %6530 = vst [vmem:[#allocation76_spill] sm:$0xff] %v4906_v52  ;;  %1492 = vmatmul.f32.gmra.mxu0 %v4326_v4  ;;  %3209 = vmatpush.msra.mxu3 %v4425_v22  ;;  %v6538_v22 = vand.u32 4294901760, %v4689_v61 }
 0x1bd   : > { %3018 = vmatpush.msra.mxu2 %v6535_v10 }
 0x1be   : > { %1667 = vmatmul.f32.gmra.mxu1 %v4326_v4  ;;  %3211 = vmatpush.msra.mxu3 %v4460_v50  ;;  %v6537_v4 = vand.u32 4294901760, %v4654_v30  ;;  %v6539_v50 = vand.u32 4294901760, %v4717_v62  ;;  %v4941_v6 = vpop.f32.mrf.mxu2 }
 0x1c0   : > { %3213 = vmatpush.msra.mxu3 %v4498_v3  ;;  %3022 = vmatpush.msra.mxu2 %v6537_v4 }
 0x1c1   : > { %v4923_v24 = vpop.f32.mrf.mxu0 }
 0x1c2   : > { %6534 = vst [vmem:[#allocation77_spill] sm:$0xff] %v4923_v24  ;;  %3215 = vmatpush.msra.mxu3 %v4533_v45  ;;  %3026 = vmatpush.msra.mxu2 %v6538_v22  ;;  %v4948_v45 = vpop.f32.mrf.mxu3  ;;  %v6579_v24 = vld [vmem:[#allocation21_spill] sm:$0xff] }
 0x1c3   : > { %v4928_v5 = vpop.f32.mrf.mxu1 }
 0x1c4   : > { %6536 = vst [vmem:[#allocation78_spill] sm:$0xff] %v4928_v5  ;;  %1496 = vmatmul.f32.gmra.mxu0 %v4332_v12  ;;  %3217 = vmatpush.msra.mxu3 %v4569_v1  ;;  %v6544_v1 = vand.u32 4294901760, %v4816_v13 }
 0x1c5   : > { %3030 = vmatpush.msra.mxu2 %v6539_v50 }
 0x1c6   : > { %1671 = vmatmul.f32.gmra.mxu1 %v4332_v12  ;;  %3219 = vmatpush.msra.mxu3 %v4609_v51  ;;  %v6543_v12 = vand.u32 4294901760, %v4782_v39  ;;  %v6545_v51 = vand.u32 4294901760, %v4854_v28 }
 0x1c7   : > { %3034 = vmatpush.msra.mxu2 %v6541_v46 }
 0x1c8   : > { %3221 = vmatpush.msra.mxu3 %v4649_v23  ;;  %v4964_v23 = vpop.f32.mrf.mxu2 }
 0x1c9   : > { %v4943_v3 = vpop.f32.mrf.mxu0  ;;  %3038 = vmatpush.msra.mxu2 %v6543_v12 }
 0x1ca   : > { %6540 = vst [vmem:[#allocation79_spill] sm:$0xff] %v4943_v3  ;;  %3223 = vmatpush.msra.mxu3 %v4683_v59  ;;  %v4968_v59 = vpop.f32.mrf.mxu3 }
 0x1cb   : > { %v4950_v30 = vpop.f32.mrf.mxu1  ;;  %3042 = vmatpush.msra.mxu2 %v6544_v1 }
 0x1cc   : > { %6542 = vst [vmem:[#allocation80_spill] sm:$0xff] %v4950_v30  ;;  %1500 = vmatmul.f32.gmra.mxu0 %v4338_v20  ;;  %3225 = vmatpush.msra.mxu3 %v4712_v53  ;;  %v6575_v30 = vld [vmem:[#allocation14_spill] sm:$0xff] }
 0x1cd   : > { %3046 = vmatpush.msra.mxu2 %v6545_v51 }
 0x1ce   : > { %1675 = vmatmul.f32.gmra.mxu1 %v4338_v20  ;;  %3227 = vmatpush.msra.mxu3 %v4740_v19 }
 0x1cf   : > { %3050 = vmatpush.msra.mxu2 %v2330_v0 }
 0x1d0   : > { %3229 = vmatpush.msra.mxu3 %v4774_v57 }
 0x1d1   : > { %v1441_v61 = vpop.f32.mrf.mxu0 }
 0x1d2   : > { %v1442_v62 = vadd.f32 %v1441_v61, %v4388_v11  ;;  %3231 = vmatpush.msra.mxu3 %v4809_v33  ;;  %v4982_v33 = vpop.f32.mrf.mxu2 }
 0x1d3   : > { %v1616_v58 = vpop.f32.mrf.mxu1 }
 0x1d4   : > { %v1617_v39 = vadd.f32 %v1616_v58, %v1442_v62  ;;  %1504 = vmatmul.f32.gmra.mxu0 %v4344_v29  ;;  %3233 = vmatpush.msra.mxu3 %v4846_v40  ;;  %v4986_v40 = vpop.f32.mrf.mxu3 }
 0x1d6   : > { %vm1767_vm1 = vcmp.gt.f32.partialorder %v1617_v39, 0.0  ;;  %v1805_v20 = vmul.f32 0.01, %v1617_v39  ;;  %1679 = vmatmul.f32.gmra.mxu1 %v4344_v29  ;;  %3235 = vmatpush.msra.mxu3 %v4881_v9 }
 0x1d8   : > { %v1843_v19 = vsel %vm1767_vm1, %v1617_v39, %v1805_v20 }
 0x1d9   : > { %v4974_v53 = vand.u32 4294901760, %v1843_v19  ;;  %v1445_v11 = vpop.f32.mrf.mxu0 }
 0x1da   : > { %v1446_v57 = vadd.f32 %v1445_v11, %v4407_v41  ;;  %v5001_v54 = vpop.f32.mrf.mxu2 }
 0x1db   : > { %6546 = vst [vmem:[#allocation81_spill] sm:$0xff] %v4974_v53  ;;  %v4979_v0 = vsub.f32 %v1843_v19, %v4974_v53  ;;  %v1620_v13 = vpop.f32.mrf.mxu1  ;;  %2335 = vmatmul.f32.vlgmr.msrb.gmra.mxu3 %v4974_v53 }
 0x1dc   : > { %v1621_v21 = vadd.f32 %v1620_v13, %v1446_v57  ;;  %1508 = vmatmul.f32.gmra.mxu0 %v4360_v42  ;;  %v5007_v4 = vpop.f32.mrf.mxu3 }
 0x1dd   : > { %v6350_v29 = vand.u32 4294901760, %v4979_v0 }
 0x1de   : > { %vm1768_vm2 = vcmp.gt.f32.partialorder %v1621_v21, 0.0  ;;  %v1806_v28 = vmul.f32 0.01, %v1621_v21  ;;  %1683 = vmatmul.f32.gmra.mxu1 %v4360_v42 }
 0x1df   : > { %v1936_v41 = vsub.f32 %v4979_v0, %v6350_v29 }
 0x1e0   : > { %v1844_v9 = vsel %vm1768_vm2, %v1621_v21, %v1806_v28 }
 0x1e1   : > { %v4992_v36 = vand.u32 4294901760, %v1844_v9  ;;  %v1449_v26 = vpop.f32.mrf.mxu0  ;;  %v1937_v63 = vand.u32 4294901760, %v1936_v41 }
 0x1e2   : > { %v1450_v34 = vadd.f32 %v1449_v26, %v4416_v2  ;;  %v5022_v39 = vpop.f32.mrf.mxu2 }
 0x1e3   : > { %6547 = vst [vmem:[#allocation82_spill] sm:$0xff] %v4992_v36  ;;  %v4996_v25 = vsub.f32 %v1844_v9, %v4992_v36  ;;  %v1624_v18 = vpop.f32.mrf.mxu1  ;;  %1938 = vmatmul.f32.vlgmr.msrb.gmra.mxu2 %v1937_v63  ;;  %2339 = vmatmul.f32.gmra.mxu3 %v4992_v36  ;;  %v6569_v36 = vld [vmem:[#allocation12_spill] sm:$0xff] }
 0x1e4   : > { %v1625_v60 = vadd.f32 %v1624_v18, %v1450_v34  ;;  %1512 = vmatmul.f32.gmra.mxu0 %v4376_v56  ;;  %v5026_v13 = vpop.f32.mrf.mxu3 }
 0x1e5   : > { %v6349_v42 = vand.u32 4294901760, %v4996_v25 }
 0x1e6   : > { %vm1769_vm3 = vcmp.gt.f32.partialorder %v1625_v60, 0.0  ;;  %v1807_v10 = vmul.f32 0.01, %v1625_v60  ;;  %1687 = vmatmul.f32.gmra.mxu1 %v4376_v56 }
 0x1e7   : > { %v1944_v2 = vsub.f32 %v4996_v25, %v6349_v42 }
 0x1e8   : > { %v1845_v22 = vsel %vm1769_vm3, %v1625_v60, %v1807_v10 }
 0x1e9   : > { %v5009_v50 = vand.u32 4294901760, %v1845_v22  ;;  %v1453_v46 = vpop.f32.mrf.mxu0  ;;  %v1945_v12 = vand.u32 4294901760, %v1944_v2 }
 0x1ea   : > { %v1454_v1 = vadd.f32 %v1453_v46, %v4437_v35  ;;  %v5041_v10 = vpop.f32.mrf.mxu2 }
 0x1eb   : > { %6548 = vst [vmem:[#allocation83_spill] sm:$0xff] %v5009_v50  ;;  %v5013_v51 = vsub.f32 %v1845_v22, %v5009_v50  ;;  %v1628_v61 = vpop.f32.mrf.mxu1  ;;  %1946 = vmatmul.f32.gmra.mxu2 %v1945_v12  ;;  %2343 = vmatmul.f32.gmra.mxu3 %v5009_v50 }
 0x1ec   : > { %v1629_v56 = vadd.f32 %v1628_v61, %v1454_v1  ;;  %1516 = vmatmul.f32.gmra.mxu0 %v4390_v16  ;;  %v6551_v1 = vld [vmem:[#allocation3_spill] sm:$0xff] }
 0x1ed   : > { %v6347_v62 = vand.u32 4294901760, %v5013_v51 }
 0x1ee   : > { %vm1770_vm4 = vcmp.gt.f32.partialorder %v1629_v56, 0.0  ;;  %v1808_v58 = vmul.f32 0.01, %v1629_v56  ;;  %1691 = vmatmul.f32.gmra.mxu1 %v4390_v16 }
 0x1ef   : > { %v1952_v35 = vsub.f32 %v5013_v51, %v6347_v62  ;;  %v6560_v62 = vld [vmem:[#allocation6_spill] sm:$0xff] }
 0x1f0   : > { %v1846_v20 = vsel %vm1770_vm4, %v1629_v56, %v1808_v58 }
 0x1f1   : > { %v5024_v19 = vand.u32 4294901760, %v1846_v20  ;;  %v1457_v11 = vpop.f32.mrf.mxu0  ;;  %v1953_v57 = vand.u32 4294901760, %v1952_v35 }
 0x1f2   : > { %v1458_v21 = vadd.f32 %v1457_v11, %v4449_v8 }
 0x1f3   : > { %6549 = vst [vmem:[#allocation84_spill] sm:$0xff] %v5024_v19  ;;  %v5030_v28 = vsub.f32 %v1846_v20, %v5024_v19  ;;  %v1632_v41 = vpop.f32.mrf.mxu1  ;;  %1954 = vmatmul.f32.gmra.mxu2 %v1953_v57  ;;  %2347 = vmatmul.f32.gmra.mxu3 %v5024_v19  ;;  %v6553_v57 = vld [vmem:[#allocation7_spill] sm:$0xff] }
 0x1f4   : > { %v1633_v16 = vadd.f32 %v1632_v41, %v1458_v21  ;;  %1520 = vmatmul.f32.gmra.mxu0 %v4409_v47 }
 0x1f5   : > { %v6346_v9 = vand.u32 4294901760, %v5030_v28 }
 0x1f6   : > { %vm1771_vm5 = vcmp.gt.f32.partialorder %v1633_v16, 0.0  ;;  %v1809_v26 = vmul.f32 0.01, %v1633_v16  ;;  %1695 = vmatmul.f32.gmra.mxu1 %v4409_v47  ;;  %v5048_v47 = vpop.f32.mrf.mxu3 }
 0x1f7   : > { %v1960_v8 = vsub.f32 %v5030_v28, %v6346_v9 }
 0x1f8   : > { %v1847_v63 = vsel %vm1771_vm5, %v1633_v16, %v1809_v26  ;;  %v5063_v26 = vpop.f32.mrf.mxu2 }
 0x1f9   : > { %v5039_v34 = vand.u32 4294901760, %v1847_v63  ;;  %v1461_v18 = vpop.f32.mrf.mxu0  ;;  %v1961_v60 = vand.u32 4294901760, %v1960_v8 }
 0x1fa   : > { %v1462_v2 = vadd.f32 %v1461_v18, %v4468_v55 }
 0x1fb   : > { %6550 = vst [vmem:[#allocation85_spill] sm:$0xff] %v5039_v34  ;;  %v5045_v22 = vsub.f32 %v1847_v63, %v5039_v34  ;;  %v1636_v46 = vpop.f32.mrf.mxu1  ;;  %1962 = vmatmul.f32.gmra.mxu2 %v1961_v60  ;;  %2351 = vmatmul.f32.gmra.mxu3 %v5039_v34  ;;  %v6554_v63 = vld [vmem:[#allocation4_spill] sm:$0xff] }
 0x1fc   : > { %v1637_v12 = vadd.f32 %v1636_v46, %v1462_v2  ;;  %1524 = vmatmul.f32.gmra.mxu0 %v6551_v1 }
 0x1fd   : > { %v6345_v61 = vand.u32 4294901760, %v5045_v22 }
 0x1fe   : > { %vm1772_vm6 = vcmp.gt.f32.partialorder %v1637_v12, 0.0  ;;  %v1810_v56 = vmul.f32 0.01, %v1637_v12  ;;  %1699 = vmatmul.f32.gmra.mxu1 %v6551_v1  ;;  %v5067_v60 = vpop.f32.mrf.mxu3 }
 0x1ff   : > { %v1968_v55 = vsub.f32 %v5045_v22, %v6345_v61 }
 0x200   : > { %v1848_v58 = vsel %vm1772_vm6, %v1637_v12, %v1810_v56 }
 0x201   : > { %v5056_v35 = vand.u32 4294901760, %v1848_v58  ;;  %v1465_v20 = vpop.f32.mrf.mxu0  ;;  %v1969_v11 = vand.u32 4294901760, %v1968_v55 }
 0x202   : > { %v1466_v21 = vadd.f32 %v1465_v20, %v6553_v57 }
 0x203   : > { %6552 = vst [vmem:[#allocation3_spill] sm:$0xff] %v5056_v35  ;;  %v5060_v41 = vsub.f32 %v1848_v58, %v5056_v35  ;;  %v1640_v16 = vpop.f32.mrf.mxu1  ;;  %1970 = vmatmul.f32.gmra.mxu2 %v1969_v11  ;;  %2355 = vmatmul.f32.gmra.mxu3 %v5056_v35  ;;  %v6556_v58 = vld [vmem:[#allocation9_spill] sm:$0xff] }
 0x204   : > { %v1641_v8 = vadd.f32 %v1640_v16, %v1466_v21  ;;  %1528 = vmatmul.f32.gmra.mxu0 %v6554_v63  ;;  %v6557_v16 = vld [vmem:[#allocation5_spill] sm:$0xff] }
 0x205   : > { %v6344_v18 = vand.u32 4294901760, %v5060_v41 }
 0x206   : > { %vm1773_vm7 = vcmp.gt.f32.partialorder %v1641_v8, 0.0  ;;  %v1811_v2 = vmul.f32 0.01, %v1641_v8  ;;  %1703 = vmatmul.f32.gmra.mxu1 %v6554_v63 }
 0x207   : > { %v1976_v46 = vsub.f32 %v5060_v41, %v6344_v18  ;;  %v5082_v18 = vpop.f32.mrf.mxu2 }
 0x208   : > { %v1849_v12 = vsel %vm1773_vm7, %v1641_v8, %v1811_v2 }
 0x209   : > { %v5073_v1 = vand.u32 4294901760, %v1849_v12  ;;  %v1469_v56 = vpop.f32.mrf.mxu0  ;;  %v1977_v55 = vand.u32 4294901760, %v1976_v46  ;;  %v5088_v46 = vpop.f32.mrf.mxu3 }
 0x20a   : > { %v1470_v20 = vadd.f32 %v1469_v56, %v6556_v58 }
 0x20b   : > { %6555 = vst [vmem:[#allocation7_spill] sm:$0xff] %v5073_v1  ;;  %v5077_v11 = vsub.f32 %v1849_v12, %v5073_v1  ;;  %v1644_v57 = vpop.f32.mrf.mxu1  ;;  %1978 = vmatmul.f32.gmra.mxu2 %v1977_v55  ;;  %2359 = vmatmul.f32.gmra.mxu3 %v5073_v1 }
 0x20c   : > { %v1645_v21 = vadd.f32 %v1644_v57, %v1470_v20  ;;  %1532 = vmatmul.f32.gmra.mxu0 %v6557_v16  ;;  %v6559_v20 = vld [vmem:[#allocation11_spill] sm:$0xff] }
 0x20d   : > { %v6348_v63 = vand.u32 4294901760, %v5077_v11 }
 0x20e   : > { %vm1774_vm8 = vcmp.gt.f32.partialorder %v1645_v21, 0.0  ;;  %v1812_v8 = vmul.f32 0.01, %v1645_v21  ;;  %1707 = vmatmul.f32.gmra.mxu1 %v6557_v16 }
 0x20f   : > { %v1984_v2 = vsub.f32 %v5077_v11, %v6348_v63 }
 0x210   : > { %v1850_v12 = vsel %vm1774_vm8, %v1645_v21, %v1812_v8 }
 0x211   : > { %v5090_v56 = vand.u32 4294901760, %v1850_v12  ;;  %v1473_v55 = vpop.f32.mrf.mxu0  ;;  %v1985_v58 = vand.u32 4294901760, %v1984_v2  ;;  %v5103_v2 = vpop.f32.mrf.mxu2 }
 0x212   : > { %v1474_v57 = vadd.f32 %v1473_v55, %v6559_v20 }
 0x213   : > { %6558 = vst [vmem:[#allocation4_spill] sm:$0xff] %v5090_v56  ;;  %v5094_v61 = vsub.f32 %v1850_v12, %v5090_v56  ;;  %v1648_v9 = vpop.f32.mrf.mxu1  ;;  %1986 = vmatmul.f32.gmra.mxu2 %v1985_v58  ;;  %2363 = vmatmul.f32.gmra.mxu3 %v5090_v56 }
 0x214   : > { %v1649_v16 = vadd.f32 %v1648_v9, %v1474_v57  ;;  %1536 = vmatmul.f32.gmra.mxu0 %v6560_v62  ;;  %v5107_v9 = vpop.f32.mrf.mxu3  ;;  %v6562_v57 = vld [vmem:[#allocation13_spill] sm:$0xff] }
 0x215   : > { %v6353_v63 = vand.u32 4294901760, %v5094_v61 }
 0x216   : > { %vm1775_vm9 = vcmp.gt.f32.partialorder %v1649_v16, 0.0  ;;  %v1813_v21 = vmul.f32 0.01, %v1649_v16  ;;  %1711 = vmatmul.f32.gmra.mxu1 %v6560_v62 }
 0x217   : > { %v1992_v8 = vsub.f32 %v5094_v61, %v6353_v63  ;;  %v6563_v63 = vld [vmem:[#allocation8_spill] sm:$0xff] }
 0x218   : > { %v1851_v12 = vsel %vm1775_vm9, %v1649_v16, %v1813_v21 }
 0x219   : > { %v5105_v55 = vand.u32 4294901760, %v1851_v12  ;;  %v1477_v58 = vpop.f32.mrf.mxu0  ;;  %v1993_v20 = vand.u32 4294901760, %v1992_v8  ;;  %v5122_v1 = vpop.f32.mrf.mxu2 }
 0x21a   : > { %v1478_v42 = vadd.f32 %v1477_v58, %v6562_v57 }
 0x21b   : > { %6561 = vst [vmem:[#allocation9_spill] sm:$0xff] %v5105_v55  ;;  %v5111_v29 = vsub.f32 %v1851_v12, %v5105_v55  ;;  %v1652_v56 = vpop.f32.mrf.mxu1  ;;  %1994 = vmatmul.f32.gmra.mxu2 %v1993_v20  ;;  %2367 = vmatmul.f32.gmra.mxu3 %v5105_v55 }
 0x21c   : > { %v1653_v62 = vadd.f32 %v1652_v56, %v1478_v42  ;;  %1540 = vmatmul.f32.gmra.mxu0 %v6563_v63  ;;  %v6565_v42 = vld [vmem:[#allocation15_spill] sm:$0xff] }
 0x21d   : > { %v6362_v16 = vand.u32 4294901760, %v5111_v29 }
 0x21e   : > { %vm1776_vm10 = vcmp.gt.f32.partialorder %v1653_v62, 0.0  ;;  %v1814_v21 = vmul.f32 0.01, %v1653_v62  ;;  %1715 = vmatmul.f32.gmra.mxu1 %v6563_v63  ;;  %v5129_v63 = vpop.f32.mrf.mxu3 }
 0x21f   : > { %v2000_v8 = vsub.f32 %v5111_v29, %v6362_v16  ;;  %v6566_v16 = vld [vmem:[#allocation10_spill] sm:$0xff] }
 0x220   : > { %v1852_v58 = vsel %vm1776_vm10, %v1653_v62, %v1814_v21 }
 0x221   : > { %v5120_v12 = vand.u32 4294901760, %v1852_v58  ;;  %v1481_v57 = vpop.f32.mrf.mxu0  ;;  %v2001_v20 = vand.u32 4294901760, %v2000_v8  ;;  %v5144_v50 = vpop.f32.mrf.mxu2 }
 0x222   : > { %v1482_v56 = vadd.f32 %v1481_v57, %v6565_v42 }
 0x223   : > { %6564 = vst [vmem:[#allocation5_spill] sm:$0xff] %v5120_v12  ;;  %v5126_v55 = vsub.f32 %v1852_v58, %v5120_v12  ;;  %v1656_v35 = vpop.f32.mrf.mxu1  ;;  %2002 = vmatmul.f32.gmra.mxu2 %v2001_v20  ;;  %2371 = vmatmul.f32.gmra.mxu3 %v5120_v12  ;;  %v6568_v12 = vld [vmem:[#allocation17_spill] sm:$0xff] }
 0x224   : > { %v1657_v34 = vadd.f32 %v1656_v35, %v1482_v56  ;;  %1544 = vmatmul.f32.gmra.mxu0 %v6566_v16 }
 0x225   : > { %v6371_v62 = vand.u32 4294901760, %v5126_v55 }
 0x226   : > { %vm1777_vm11 = vcmp.gt.f32.partialorder %v1657_v34, 0.0  ;;  %v1815_v21 = vmul.f32 0.01, %v1657_v34  ;;  %1719 = vmatmul.f32.gmra.mxu1 %v6566_v16 }
 0x227   : > { %v2008_v8 = vsub.f32 %v5126_v55, %v6371_v62 }
 0x228   : > { %v1853_v58 = vsel %vm1777_vm11, %v1657_v34, %v1815_v21  ;;  %v5148_v21 = vpop.f32.mrf.mxu3 }
 0x229   : > { %v5137_v57 = vand.u32 4294901760, %v1853_v58  ;;  %v1485_v20 = vpop.f32.mrf.mxu0  ;;  %v2009_v42 = vand.u32 4294901760, %v2008_v8  ;;  %6570 = vst [vmem:[#allocation6_spill] sm:$0xff] %v5148_v21 }
 0x22a   : > { %v1486_v19 = vadd.f32 %v1485_v20, %v6568_v12 }
 0x22b   : > { %6567 = vst [vmem:[#allocation11_spill] sm:$0xff] %v5137_v57  ;;  %v5141_v35 = vsub.f32 %v1853_v58, %v5137_v57  ;;  %v1660_v56 = vpop.f32.mrf.mxu1  ;;  %2010 = vmatmul.f32.gmra.mxu2 %v2009_v42  ;;  %2375 = vmatmul.f32.gmra.mxu3 %v5137_v57 }
 0x22c   : > { %v1661_v16 = vadd.f32 %v1660_v56, %v1486_v19  ;;  %1548 = vmatmul.f32.gmra.mxu0 %v6569_v36  ;;  %v6572_v19 = vld [vmem:[#allocation19_spill] sm:$0xff] }
 0x22d   : > { %v6376_v34 = vand.u32 4294901760, %v5141_v35 }
 0x22e   : > { %vm1778_vm12 = vcmp.gt.f32.partialorder %v1661_v16, 0.0  ;;  %v1816_v8 = vmul.f32 0.01, %v1661_v16  ;;  %1723 = vmatmul.f32.gmra.mxu1 %v6569_v36  ;;  %v5164_v36 = vld [vmem:[%s6291_s2] ss:$0 sm:$0xff] }
 0x22f   : > { %v2016_v12 = vsub.f32 %v5141_v35, %v6376_v34  ;;  %v6574_v34 = vld [vmem:[#allocation23_spill] sm:$0xff] }
 0x230   : > { %v1854_v58 = vsel %vm1778_vm12, %v1661_v16, %v1816_v8  ;;  %v550_v16 = vadd.f32 %v5164_v36, %v6574_v34  ;;  %v5177_v3 = vpop.f32.mrf.mxu3 }
 0x231   : > { %v5154_v20 = vand.u32 4294901760, %v1854_v58  ;;  %v1489_v42 = vpop.f32.mrf.mxu0  ;;  %v2017_v62 = vand.u32 4294901760, %v2016_v12  ;;  %6577 = vst [vmem:[#allocation15_spill] sm:$0xff] %v5177_v3 }
 0x232   : > { %v1490_v56 = vadd.f32 %v1489_v42, %v6572_v19  ;;  %v5170_v42 = vpop.f32.mrf.mxu2  ;;  %v6576_v19 = vld [vmem:[#allocation24_spill] sm:$0xff] }
 0x233   : > { %6571 = vst [vmem:[#allocation13_spill] sm:$0xff] %v5154_v20  ;;  %v5158_v57 = vsub.f32 %v1854_v58, %v5154_v20  ;;  %v1664_v53 = vpop.f32.mrf.mxu1  ;;  %2018 = vmatmul.f32.gmra.mxu2 %v2017_v62  ;;  %2379 = vmatmul.f32.gmra.mxu3 %v5154_v20  ;;  %v841_v20 = vadd.f32 %v6576_v19, %v550_v16 }
 0x234   : > { %v1665_v8 = vadd.f32 %v1664_v53, %v1490_v56  ;;  %1552 = vmatmul.f32.gmra.mxu0 %v6575_v30 }
 0x235   : > { %6573 = vst [vmem:[#allocation8_spill] sm:$0xff] %v5158_v57  ;;  %v6379_v12 = vand.u32 4294901760, %v5158_v57 }
 0x236   : > { %vm1779_vm13 = vcmp.gt.f32.partialorder %v1665_v8, 0.0  ;;  %v1817_v58 = vmul.f32 0.01, %v1665_v8  ;;  %1727 = vmatmul.f32.gmra.mxu1 %v6575_v30  ;;  %v1037_v30 = vadd.f32 %v4767_v32, %v841_v20 }
 0x237   : > { %v2024_v62 = vsub.f32 %v5158_v57, %v6379_v12  ;;  %v6580_v12 = vld [vmem:[#allocation26_spill] sm:$0xff] }
 0x238   : > { %v1855_v34 = vsel %vm1779_vm13, %v1665_v8, %v1817_v58  ;;  %v558_v16 = vadd.f32 %v5164_v36, %v6580_v12  ;;  %v6581_v8 = vld [vmem:[#allocation16_spill] sm:$0xff] }
 0x239   : > { %v5179_v53 = vand.u32 4294901760, %v1855_v34  ;;  %v1493_v56 = vpop.f32.mrf.mxu0  ;;  %v2025_v5 = vand.u32 4294901760, %v2024_v62 }
 0x23a   : > { %v1494_v52 = vadd.f32 %v1493_v56, %v6579_v24  ;;  %v5197_v20 = vpop.f32.mrf.mxu2 }
 0x23b   : > { %6578 = vst [vmem:[#allocation10_spill] sm:$0xff] %v5179_v53  ;;  %v5183_v38 = vsub.f32 %v1855_v34, %v5179_v53  ;;  %v1668_v21 = vpop.f32.mrf.mxu1  ;;  %2026 = vmatmul.f32.gmra.mxu2 %v2025_v5  ;;  %2383 = vmatmul.f32.gmra.mxu3 %v5179_v53  ;;  %v1265_v5 = vadd.f32 %v4759_v43, %v1037_v30  ;;  %v6582_v34 = vld [vmem:[#allocation27_spill] sm:$0xff]  ;;  %v5201_v53 = vpop.f32.mrf.mxu3  ;;  %v6585_v30 = vld [vmem:[#allocation29_spill] sm:$0xff] }
 0x23c   : > { %v1669_v19 = vadd.f32 %v1668_v21, %v1494_v52  ;;  %1556 = vmatmul.f32.gmra.mxu0 %v6581_v8  ;;  %v845_v32 = vadd.f32 %v6582_v34, %v558_v16  ;;  %v566_v16 = vadd.f32 %v5164_v36, %v6585_v30 }
 0x23d   : > { %v6384_v58 = vand.u32 4294901760, %v5183_v38 }
 0x23e   : > { %vm1780_vm14 = vcmp.gt.f32.partialorder %v1669_v19, 0.0  ;;  %v1818_v62 = vmul.f32 0.01, %v1669_v19  ;;  %1731 = vmatmul.f32.gmra.mxu1 %v6581_v8  ;;  %v1042_v43 = vadd.f32 %v4794_v27, %v845_v32 }
 0x23f   : > { %v2032_v24 = vsub.f32 %v5183_v38, %v6384_v58 }
 0x240   : > { %v1856_v12 = vsel %vm1780_vm14, %v1669_v19, %v1818_v62  ;;  %v6586_v62 = vld [vmem:[#allocation18_spill] sm:$0xff] }
 0x241   : > { %v5199_v52 = vand.u32 4294901760, %v1856_v12  ;;  %v1497_v21 = vpop.f32.mrf.mxu0  ;;  %v2033_v56 = vand.u32 4294901760, %v2032_v24 }
 0x242   : > { %v1498_v3 = vadd.f32 %v1497_v21, %v1265_v5  ;;  %v6587_v21 = vld [vmem:[#allocation30_spill] sm:$0xff]  ;;  %v5220_v30 = vpop.f32.mrf.mxu2 }
 0x243   : > { %6583 = vst [vmem:[#allocation17_spill] sm:$0xff] %v5199_v52  ;;  %v5204_v8 = vsub.f32 %v1856_v12, %v5199_v52  ;;  %v1672_v57 = vpop.f32.mrf.mxu1  ;;  %2034 = vmatmul.f32.gmra.mxu2 %v2033_v56  ;;  %2387 = vmatmul.f32.gmra.mxu3 %v5199_v52  ;;  %v1271_v12 = vadd.f32 %v4776_v48, %v1042_v43  ;;  %v6590_v48 = vld [vmem:[#allocation32_spill] sm:$0xff] }
 0x244   : > { %v1673_v19 = vadd.f32 %v1672_v57, %v1498_v3  ;;  %1560 = vmatmul.f32.gmra.mxu0 %v6586_v62  ;;  %v849_v27 = vadd.f32 %v6587_v21, %v566_v16  ;;  %v574_v43 = vadd.f32 %v5164_v36, %v6590_v48  ;;  %v5229_v16 = vpop.f32.mrf.mxu3 }
 0x245   : > { %6584 = vst [vmem:[#allocation12_spill] sm:$0xff] %v5204_v8  ;;  %v6387_v24 = vand.u32 4294901760, %v5204_v8 }
 0x246   : > { %vm1781_vm15 = vcmp.gt.f32.partialorder %v1673_v19, 0.0  ;;  %v1819_v34 = vmul.f32 0.01, %v1673_v19  ;;  %1735 = vmatmul.f32.gmra.mxu1 %v6586_v62  ;;  %6591 = vst [vmem:[#allocation14_spill] sm:$0xff] %v5229_v16 }
 0x247   : > { %v2040_v5 = vsub.f32 %v5204_v8, %v6387_v24  ;;  %v1047_v24 = vadd.f32 %v4811_v15, %v849_v27  ;;  %v6593_v27 = vld [vmem:[#allocation33_spill] sm:$0xff] }
 0x248   : > { %v1857_v32 = vsel %vm1781_vm15, %v1673_v19, %v1819_v34  ;;  %v6592_v34 = vld [vmem:[#allocation20_spill] sm:$0xff] }
 0x249   : > { %v5218_v56 = vand.u32 4294901760, %v1857_v32  ;;  %v1501_v3 = vpop.f32.mrf.mxu0  ;;  %v2041_v57 = vand.u32 4294901760, %v2040_v5  ;;  %v1277_v15 = vadd.f32 %v4798_v49, %v1047_v24 }
 0x24a   : > { %v1502_v58 = vadd.f32 %v1501_v3, %v1271_v12  ;;  %v5248_v24 = vpop.f32.mrf.mxu2 }
 0x24b   : > { %6588 = vst [vmem:[#allocation19_spill] sm:$0xff] %v5218_v56  ;;  %v5223_v52 = vsub.f32 %v1857_v32, %v5218_v56  ;;  %v1676_v62 = vpop.f32.mrf.mxu1  ;;  %2042 = vmatmul.f32.gmra.mxu2 %v2041_v57  ;;  %2391 = vmatmul.f32.gmra.mxu3 %v5218_v56  ;;  %v853_v32 = vadd.f32 %v6593_v27, %v574_v43 }
 0x24c   : > { %v1677_v19 = vadd.f32 %v1676_v62, %v1502_v58  ;;  %1564 = vmatmul.f32.gmra.mxu0 %v6592_v34  ;;  %6597 = vst [vmem:[#allocation26_spill] sm:$0xff] %v5248_v24 }
 0x24d   : > { %6589 = vst [vmem:[#allocation23_spill] sm:$0xff] %v5223_v52  ;;  %v6390_v5 = vand.u32 4294901760, %v5223_v52 }
 0x24e   : > { %vm1782_vm0 = vcmp.gt.f32.partialorder %v1677_v19, 0.0  ;;  %v1820_v12 = vmul.f32 0.01, %v1677_v19  ;;  %1739 = vmatmul.f32.gmra.mxu1 %v6592_v34  ;;  %v1052_v34 = vadd.f32 %v4832_v17, %v853_v32 }
 0x24f   : > { %v2048_v21 = vsub.f32 %v5223_v52, %v6390_v5  ;;  %v6596_v5 = vld [vmem:[#allocation35_spill] sm:$0xff] }
 0x250   : > { %v1858_v3 = vsel %vm1782_vm0, %v1677_v19, %v1820_v12  ;;  %v582_v49 = vadd.f32 %v5164_v36, %v6596_v5  ;;  %v6598_v19 = vld [vmem:[#allocation22_spill] sm:$0xff]  ;;  %v1283_v27 = vadd.f32 %v4819_v14, %v1052_v34  ;;  %v6600_v5 = vld [vmem:[#allocation36_spill] sm:$0xff] }
 0x251   : > { %v5239_v57 = vand.u32 4294901760, %v1858_v3  ;;  %v1505_v58 = vpop.f32.mrf.mxu0  ;;  %v2049_v62 = vand.u32 4294901760, %v2048_v21  ;;  %v5252_v21 = vpop.f32.mrf.mxu3 }
 0x252   : > { %v1506_v48 = vadd.f32 %v1505_v58, %v1277_v15  ;;  %6599 = vst [vmem:[#allocation16_spill] sm:$0xff] %v5252_v21  ;;  %v857_v32 = vadd.f32 %v6600_v5, %v582_v49  ;;  %v6604_v49 = vld [vmem:[#allocation25_spill] sm:$0xff] }
 0x253   : > { %6594 = vst [vmem:[#allocation24_spill] sm:$0xff] %v5239_v57  ;;  %v5242_v56 = vsub.f32 %v1858_v3, %v5239_v57  ;;  %v1680_v16 = vpop.f32.mrf.mxu1  ;;  %2050 = vmatmul.f32.gmra.mxu2 %v2049_v62  ;;  %2395 = vmatmul.f32.gmra.mxu3 %v5239_v57 }
 0x254   : > { %v1681_v43 = vadd.f32 %v1680_v16, %v1506_v48  ;;  %1568 = vmatmul.f32.gmra.mxu0 %v6598_v19 }
 0x255   : > { %6595 = vst [vmem:[#allocation21_spill] sm:$0xff] %v5242_v56  ;;  %v6393_v12 = vand.u32 4294901760, %v5242_v56 }
 0x256   : > { %vm1783_vm1 = vcmp.gt.f32.partialorder %v1681_v43, 0.0  ;;  %v1821_v15 = vmul.f32 0.01, %v1681_v43  ;;  %1743 = vmatmul.f32.gmra.mxu1 %v6598_v19  ;;  %v1057_v19 = vadd.f32 %v4848_v7, %v857_v32  ;;  %v6606_v7 = vld [vmem:[#allocation62_spill] sm:$0xff] }
 0x257   : > { %v2056_v17 = vsub.f32 %v5242_v56, %v6393_v12  ;;  %v6603_v12 = vld [vmem:[#allocation38_spill] sm:$0xff] }
 0x258   : > { %v1859_v3 = vsel %vm1783_vm1, %v1681_v43, %v1821_v15  ;;  %v590_v14 = vadd.f32 %v5164_v36, %v6603_v12  ;;  %v5271_v15 = vpop.f32.mrf.mxu2  ;;  %v1289_v32 = vadd.f32 %v6606_v7, %v1057_v19  ;;  %v6610_v19 = vld [vmem:[#allocation69_spill] sm:$0xff] }
 0x259   : > { %v5260_v16 = vand.u32 4294901760, %v1859_v3  ;;  %v1509_v58 = vpop.f32.mrf.mxu0  ;;  %v2057_v62 = vand.u32 4294901760, %v2056_v17  ;;  %6605 = vst [vmem:[#allocation18_spill] sm:$0xff] %v5271_v15 }
 0x25a   : > { %v1510_v48 = vadd.f32 %v1509_v58, %v1283_v27 }
 0x25b   : > { %6601 = vst [vmem:[#allocation27_spill] sm:$0xff] %v5260_v16  ;;  %v5263_v57 = vsub.f32 %v1859_v3, %v5260_v16  ;;  %v1684_v21 = vpop.f32.mrf.mxu1  ;;  %2058 = vmatmul.f32.gmra.mxu2 %v2057_v62  ;;  %2399 = vmatmul.f32.gmra.mxu3 %v5260_v16  ;;  %v6607_v3 = vld [vmem:[#allocation39_spill] sm:$0xff] }
 0x25c   : > { %v1685_v34 = vadd.f32 %v1684_v21, %v1510_v48  ;;  %1572 = vmatmul.f32.gmra.mxu0 %v6604_v49  ;;  %v861_v12 = vadd.f32 %v6607_v3, %v590_v14 }
 0x25d   : > { %6602 = vst [vmem:[#allocation29_spill] sm:$0xff] %v5263_v57  ;;  %v6400_v43 = vand.u32 4294901760, %v5263_v57 }
 0x25e   : > { %vm1784_vm2 = vcmp.gt.f32.partialorder %v1685_v34, 0.0  ;;  %v1822_v17 = vmul.f32 0.01, %v1685_v34  ;;  %1747 = vmatmul.f32.gmra.mxu1 %v6604_v49  ;;  %v2336_v27 = vpop.f32.mrf.mxu3  ;;  %v5288_v49 = vld [vmem:[%s6293_s4] ss:$0 sm:$0xff]  ;;  %v1062_v14 = vadd.f32 %v6610_v19, %v861_v12  ;;  %v6613_v19 = vld [vmem:[#allocation66_spill] sm:$0xff] }
 0x25f   : > { %v2064_v5 = vsub.f32 %v5263_v57, %v6400_v43 }
 0x260   : > { %v1860_v21 = vsel %vm1784_vm2, %v1685_v34, %v1822_v17  ;;  %v6611_v34 = vld [vmem:[#allocation40_spill] sm:$0xff]  ;;  %v1295_v43 = vadd.f32 %v6613_v19, %v1062_v14  ;;  %v6618_v14 = vld [vmem:[#allocation42_spill] sm:$0xff] }
 0x261   : > { %v5279_v58 = vand.u32 4294901760, %v1860_v21  ;;  %v1513_v62 = vpop.f32.mrf.mxu0  ;;  %v2065_v48 = vand.u32 4294901760, %v2064_v5  ;;  %v598_v17 = vadd.f32 %v5164_v36, %v6611_v34  ;;  %v6612_v5 = vld [vmem:[#allocation28_spill] sm:$0xff]  ;;  %v6614_v34 = vld [vmem:[#allocation41_spill] sm:$0xff] }
 0x262   : > { %v1514_v16 = vadd.f32 %v1513_v62, %v1289_v32 }
 0x263   : > { %6608 = vst [vmem:[#allocation30_spill] sm:$0xff] %v5279_v58  ;;  %v5282_v56 = vsub.f32 %v1860_v21, %v5279_v58  ;;  %v1688_v52 = vpop.f32.mrf.mxu1  ;;  %2066 = vmatmul.f32.gmra.mxu2 %v2065_v48  ;;  %2403 = vmatmul.f32.gmra.mxu3 %v5279_v58 }
 0x264   : > { %v1689_v7 = vadd.f32 %v1688_v52, %v1514_v16  ;;  %1576 = vmatmul.f32.gmra.mxu0 %v6612_v5  ;;  %v865_v52 = vadd.f32 %v6614_v34, %v598_v17  ;;  %v606_v17 = vadd.f32 %v5164_v36, %v6618_v14  ;;  %v6621_v34 = vld [vmem:[#allocation43_spill] sm:$0xff] }
 0x265   : > { %6609 = vst [vmem:[#allocation32_spill] sm:$0xff] %v5282_v56  ;;  %v6407_v32 = vand.u32 4294901760, %v5282_v56 }
 0x266   : > { %vm1785_vm3 = vcmp.gt.f32.partialorder %v1689_v7, 0.0  ;;  %v1823_v3 = vmul.f32 0.01, %v1689_v7  ;;  %1751 = vmatmul.f32.gmra.mxu1 %v6612_v5  ;;  %v1939_v21 = vpop.f32.mrf.mxu2  ;;  %v2340_v62 = vpop.f32.mrf.mxu3 }
 0x267   : > { %v1940_v48 = vadd.f32 %v5288_v49, %v1939_v21  ;;  %v2072_v12 = vsub.f32 %v5282_v56, %v6407_v32  ;;  %v6617_v32 = vld [vmem:[#allocation74_spill] sm:$0xff] }
 0x268   : > { %v1861_v16 = vsel %vm1785_vm3, %v1689_v7, %v1823_v3  ;;  %v1067_v56 = vadd.f32 %v6617_v32, %v865_v52  ;;  %v6619_v3 = vld [vmem:[#allocation31_spill] sm:$0xff]  ;;  %v869_v52 = vadd.f32 %v6621_v34, %v606_v17 }
 0x269   : > { %v5302_v58 = vand.u32 4294901760, %v1861_v16  ;;  %v1517_v57 = vpop.f32.mrf.mxu0  ;;  %v2073_v15 = vand.u32 4294901760, %v2072_v12  ;;  %v5304_v8 = vadd.f32 %v2336_v27, %v1940_v48  ;;  %v6620_v48 = vld [vmem:[#allocation71_spill] sm:$0xff] }
 0x26a   : > { %v1518_v5 = vadd.f32 %v1517_v57, %v1295_v43  ;;  %v1301_v19 = vadd.f32 %v6620_v48, %v1067_v56  ;;  %v6623_v56 = vld [vmem:[#allocation44_spill] sm:$0xff] }
 0x26b   : > { %6615 = vst [vmem:[#allocation20_spill] sm:$0xff] %v5302_v58  ;;  %v5307_v24 = vsub.f32 %v1861_v16, %v5302_v58  ;;  %v1692_v21 = vpop.f32.mrf.mxu1  ;;  %2074 = vmatmul.f32.gmra.mxu2 %v2073_v15  ;;  %2407 = vmatmul.f32.gmra.mxu3 %v5302_v58  ;;  %v614_v17 = vadd.f32 %v5164_v36, %v6623_v56 }
 0x26c   : > { %6616 = vst [vmem:[#allocation33_spill] sm:$0xff] %v5304_v8  ;;  %v1693_v7 = vadd.f32 %v1692_v21, %v1518_v5  ;;  %1580 = vmatmul.f32.gmra.mxu0 %v6619_v3 }
 0x26d   : > { %v6412_v12 = vand.u32 4294901760, %v5307_v24 }
 0x26e   : > { %vm1786_vm4 = vcmp.gt.f32.partialorder %v1693_v7, 0.0  ;;  %v1824_v27 = vmul.f32 0.01, %v1693_v7  ;;  %1755 = vmatmul.f32.gmra.mxu1 %v6619_v3  ;;  %v1947_v57 = vpop.f32.mrf.mxu2  ;;  %v2344_v43 = vpop.f32.mrf.mxu3 }
 0x26f   : > { %v1948_v15 = vadd.f32 %v5288_v49, %v1947_v57  ;;  %v2080_v32 = vsub.f32 %v5307_v24, %v6412_v12  ;;  %v1072_v12 = vadd.f32 %v4915_v31, %v869_v52  ;;  %v6625_v52 = vld [vmem:[#allocation45_spill] sm:$0xff] }
 0x270   : > { %v1862_v16 = vsel %vm1786_vm4, %v1693_v7, %v1824_v27  ;;  %v6624_v27 = vld [vmem:[#allocation34_spill] sm:$0xff] }
 0x271   : > { %v5322_v5 = vand.u32 4294901760, %v1862_v16  ;;  %v1521_v21 = vpop.f32.mrf.mxu0  ;;  %v2081_v14 = vand.u32 4294901760, %v2080_v32  ;;  %v5324_v58 = vadd.f32 %v2340_v62, %v1948_v15  ;;  %v1307_v34 = vadd.f32 %v4897_v44, %v1072_v12  ;;  %v6627_v44 = vld [vmem:[#allocation46_spill] sm:$0xff] }
 0x272   : > { %v1522_v3 = vadd.f32 %v1521_v21, %v1301_v19  ;;  %v622_v12 = vadd.f32 %v5164_v36, %v6627_v44 }
 0x273   : > { %6622 = vst [vmem:[#allocation35_spill] sm:$0xff] %v5322_v5  ;;  %v5327_v8 = vsub.f32 %v1862_v16, %v5322_v5  ;;  %v1696_v57 = vpop.f32.mrf.mxu1  ;;  %2082 = vmatmul.f32.gmra.mxu2 %v2081_v14  ;;  %2411 = vmatmul.f32.gmra.mxu3 %v5322_v5  ;;  %v873_v16 = vadd.f32 %v6625_v52, %v614_v17 }
 0x274   : > { %v1697_v7 = vadd.f32 %v1696_v57, %v1522_v3  ;;  %1584 = vmatmul.f32.gmra.mxu0 %v6624_v27 }
 0x275   : > { %v6415_v32 = vand.u32 4294901760, %v5327_v8 }
 0x276   : > { %vm1787_vm5 = vcmp.gt.f32.partialorder %v1697_v7, 0.0  ;;  %v1825_v62 = vmul.f32 0.01, %v1697_v7  ;;  %1759 = vmatmul.f32.gmra.mxu1 %v6624_v27  ;;  %v1955_v15 = vpop.f32.mrf.mxu2  ;;  %v2348_v48 = vpop.f32.mrf.mxu3 }
 0x277   : > { %v1956_v19 = vadd.f32 %v5288_v49, %v1955_v15  ;;  %v2088_v31 = vsub.f32 %v5327_v8, %v6415_v32  ;;  %v1077_v32 = vadd.f32 %v4941_v6, %v873_v16  ;;  %v6629_v16 = vld [vmem:[#allocation47_spill] sm:$0xff] }
 0x278   : > { %v1863_v21 = vsel %vm1787_vm5, %v1697_v7, %v1825_v62  ;;  %v6628_v7 = vld [vmem:[#allocation37_spill] sm:$0xff] }
 0x279   : > { %v5342_v14 = vand.u32 4294901760, %v1863_v21  ;;  %v1525_v3 = vpop.f32.mrf.mxu0  ;;  %v2089_v57 = vand.u32 4294901760, %v2088_v31  ;;  %v5344_v56 = vadd.f32 %v2344_v43, %v1956_v19  ;;  %v1313_v52 = vadd.f32 %v4921_v37, %v1077_v32  ;;  %v6631_v37 = vld [vmem:[#allocation48_spill] sm:$0xff] }
 0x27a   : > { %v1526_v27 = vadd.f32 %v1525_v3, %v1307_v34  ;;  %v630_v32 = vadd.f32 %v5164_v36, %v6631_v37 }
 0x27b   : > { %6626 = vst [vmem:[#allocation22_spill] sm:$0xff] %v5342_v14  ;;  %v5347_v5 = vsub.f32 %v1863_v21, %v5342_v14  ;;  %v1700_v15 = vpop.f32.mrf.mxu1  ;;  %2090 = vmatmul.f32.gmra.mxu2 %v2089_v57  ;;  %2415 = vmatmul.f32.gmra.mxu3 %v5342_v14  ;;  %v877_v21 = vadd.f32 %v6629_v16, %v622_v12 }
 0x27c   : > { %v1701_v17 = vadd.f32 %v1700_v15, %v1526_v27  ;;  %1588 = vmatmul.f32.gmra.mxu0 %v6628_v7 }
 0x27d   : > { %v6418_v62 = vand.u32 4294901760, %v5347_v5 }
 0x27e   : > { %vm1788_vm6 = vcmp.gt.f32.partialorder %v1701_v17, 0.0  ;;  %v1826_v43 = vmul.f32 0.01, %v1701_v17  ;;  %1763 = vmatmul.f32.gmra.mxu1 %v6628_v7  ;;  %v1963_v19 = vpop.f32.mrf.mxu2  ;;  %v2352_v31 = vpop.f32.mrf.mxu3 }
 0x27f   : > { %v1964_v34 = vadd.f32 %v5288_v49, %v1963_v19  ;;  %v2096_v6 = vsub.f32 %v5347_v5, %v6418_v62  ;;  %v1082_v62 = vadd.f32 %v4964_v23, %v877_v21  ;;  %v6633_v21 = vld [vmem:[#allocation49_spill] sm:$0xff] }
 0x280   : > { %v1864_v3 = vsel %vm1788_vm6, %v1701_v17, %v1826_v43 }
 0x281   : > { %v5362_v57 = vand.u32 4294901760, %v1864_v3  ;;  %v1529_v27 = vpop.f32.mrf.mxu0  ;;  %v2097_v15 = vand.u32 4294901760, %v2096_v6  ;;  %v5364_v44 = vadd.f32 %v2348_v48, %v1964_v34  ;;  %v6632_v6 = vand.u32 4294901760, %v4979_v0 }
 0x282   : > { %v1530_v7 = vadd.f32 %v1529_v27, %v1313_v52  ;;  %v1319_v16 = vadd.f32 %v4948_v45, %v1082_v62  ;;  %v6634_v45 = vld [vmem:[#allocation50_spill] sm:$0xff] }
 0x283   : > { %6630 = vst [vmem:[#allocation36_spill] sm:$0xff] %v5362_v57  ;;  %v5367_v14 = vsub.f32 %v1864_v3, %v5362_v57  ;;  %v1704_v19 = vpop.f32.mrf.mxu1  ;;  %2098 = vmatmul.f32.gmra.mxu2 %v2097_v15  ;;  %2419 = vmatmul.f32.gmra.mxu3 %v5362_v57  ;;  %v881_v3 = vadd.f32 %v6633_v21, %v630_v32 }
 0x284   : > { %v1705_v12 = vadd.f32 %v1704_v19, %v1530_v7  ;;  %2537 = vmatmul.f32.vlgmr.msra.gmra.mxu0 %v4979_v0  ;;  %v638_v62 = vadd.f32 %v5164_v36, %v6634_v45 }
 0x285   : > { %v6421_v17 = vand.u32 4294901760, %v5367_v14 }
 0x286   : > { %vm1789_vm7 = vcmp.gt.f32.partialorder %v1705_v12, 0.0  ;;  %v1827_v48 = vmul.f32 0.01, %v1705_v12  ;;  %v1971_v43 = vpop.f32.mrf.mxu2  ;;  %v2356_v34 = vpop.f32.mrf.mxu3  ;;  %2761 = vmatmul.f32.vlgmr.msra.gmra.mxu1 %v6632_v6  ;;  %v1087_v6 = vadd.f32 %v4982_v33, %v881_v3 }
 0x287   : > { %v1972_v52 = vadd.f32 %v5288_v49, %v1971_v43  ;;  %v2104_v23 = vsub.f32 %v5367_v14, %v6421_v17 }
 0x288   : > { %v1865_v27 = vsel %vm1789_vm7, %v1705_v12, %v1827_v48  ;;  %v1325_v21 = vadd.f32 %v4968_v59, %v1087_v6  ;;  %v6637_v59 = vld [vmem:[#allocation52_spill] sm:$0xff] }
 0x289   : > { %v5383_v15 = vand.u32 4294901760, %v1865_v27  ;;  %v1533_v7 = vpop.f32.mrf.mxu0  ;;  %v2105_v19 = vand.u32 4294901760, %v2104_v23  ;;  %v5385_v37 = vadd.f32 %v2352_v31, %v1972_v52  ;;  %v6635_v23 = vand.u32 4294901760, %v4996_v25 }
 0x28a   : > { %v1534_v57 = vadd.f32 %v1533_v7, %v1319_v16  ;;  %v646_v6 = vadd.f32 %v5164_v36, %v6637_v59 }
 0x28b   : > { %v5388_v0 = vsub.f32 %v1865_v27, %v5383_v15  ;;  %v1708_v43 = vpop.f32.mrf.mxu1  ;;  %2106 = vmatmul.f32.gmra.mxu2 %v2105_v19  ;;  %2423 = vmatmul.f32.gmra.mxu3 %v5383_v15 }
 0x28c   : > { %v1709_v32 = vadd.f32 %v1708_v43, %v1534_v57  ;;  %2542 = vmatmul.f32.gmra.mxu0 %v4996_v25  ;;  %v6636_v57 = vld [vmem:[#allocation51_spill] sm:$0xff] }
 0x28d   : > { %v6422_v12 = vand.u32 4294901760, %v5388_v0  ;;  %v885_v3 = vadd.f32 %v6636_v57, %v638_v62 }
 0x28e   : > { %vm1790_vm8 = vcmp.gt.f32.partialorder %v1709_v32, 0.0  ;;  %v1828_v31 = vmul.f32 0.01, %v1709_v32  ;;  %v1979_v48 = vpop.f32.mrf.mxu2  ;;  %v2360_v52 = vpop.f32.mrf.mxu3  ;;  %2767 = vmatmul.f32.gmra.mxu1 %v6635_v23 }
 0x28f   : > { %v1980_v16 = vadd.f32 %v5288_v49, %v1979_v48  ;;  %v2112_v33 = vsub.f32 %v5388_v0, %v6422_v12  ;;  %v1092_v23 = vadd.f32 %v5001_v54, %v885_v3 }
 0x290   : > { %v1866_v27 = vsel %vm1790_vm8, %v1709_v32, %v1828_v31  ;;  %vm3503_vm8 = vcmask 261120  }
 0x291   : > { %v5404_v7 = vand.u32 4294901760, %v1866_v27  ;;  %v1537_v19 = vpop.f32.mrf.mxu0  ;;  %v2113_v43 = vand.u32 4294901760, %v2112_v33  ;;  %v5406_v45 = vadd.f32 %v2356_v34, %v1980_v16  ;;  %v6638_v33 = vand.u32 4294901760, %v5013_v51 }
 0x292   : > { %v1538_v17 = vadd.f32 %v1537_v19, %v1325_v21  ;;  %v1331_v57 = vadd.f32 %v4986_v40, %v1092_v23  ;;  %v6640_v40 = vld [vmem:[#allocation54_spill] sm:$0xff] }
 0x293   : > { %v5409_v25 = vsub.f32 %v1866_v27, %v5404_v7  ;;  %v1712_v48 = vpop.f32.mrf.mxu1  ;;  %2114 = vmatmul.f32.gmra.mxu2 %v2113_v43  ;;  %2427 = vmatmul.f32.gmra.mxu3 %v5404_v7  ;;  %v654_v23 = vadd.f32 %v5164_v36, %v6640_v40 }
 0x294   : > { %v1713_v62 = vadd.f32 %v1712_v48, %v1538_v17  ;;  %2547 = vmatmul.f32.gmra.mxu0 %v5013_v51  ;;  %v6639_v17 = vld [vmem:[#allocation53_spill] sm:$0xff] }
 0x295   : > { %v6423_v32 = vand.u32 4294901760, %v5409_v25  ;;  %v889_v3 = vadd.f32 %v6639_v17, %v646_v6 }
 0x296   : > { %vm1791_vm9 = vcmp.gt.f32.partialorder %v1713_v62, 0.0  ;;  %v1829_v34 = vmul.f32 0.01, %v1713_v62  ;;  %v1987_v31 = vpop.f32.mrf.mxu2  ;;  %v2364_v16 = vpop.f32.mrf.mxu3  ;;  %2773 = vmatmul.f32.gmra.mxu1 %v6638_v33 }
 0x297   : > { %v1988_v21 = vadd.f32 %v5288_v49, %v1987_v31  ;;  %v2120_v54 = vsub.f32 %v5409_v25, %v6423_v32  ;;  %v1097_v33 = vadd.f32 %v5022_v39, %v889_v3 }
 0x298   : > { %v1867_v27 = vsel %vm1791_vm9, %v1713_v62, %v1829_v34 }
 0x299   : > { %v5425_v19 = vand.u32 4294901760, %v1867_v27  ;;  %v1541_v43 = vpop.f32.mrf.mxu0  ;;  %v2121_v48 = vand.u32 4294901760, %v2120_v54  ;;  %v5427_v59 = vadd.f32 %v2360_v52, %v1988_v21  ;;  %v6641_v54 = vand.u32 4294901760, %v5030_v28 }
 0x29a   : > { %v1542_v12 = vadd.f32 %v1541_v43, %v1331_v57  ;;  %v1337_v17 = vadd.f32 %v5007_v4, %v1097_v33  ;;  %v6643_v4 = vld [vmem:[#allocation56_spill] sm:$0xff] }
 0x29b   : > { %v5430_v51 = vsub.f32 %v1867_v27, %v5425_v19  ;;  %v1716_v31 = vpop.f32.mrf.mxu1  ;;  %2122 = vmatmul.f32.gmra.mxu2 %v2121_v48  ;;  %2431 = vmatmul.f32.gmra.mxu3 %v5425_v19  ;;  %v662_v33 = vadd.f32 %v5164_v36, %v6643_v4 }
 0x29c   : > { %v1717_v6 = vadd.f32 %v1716_v31, %v1542_v12  ;;  %2552 = vmatmul.f32.gmra.mxu0 %v5030_v28  ;;  %v6642_v12 = vld [vmem:[#allocation55_spill] sm:$0xff] }
 0x29d   : > { %v6424_v62 = vand.u32 4294901760, %v5430_v51  ;;  %v893_v3 = vadd.f32 %v6642_v12, %v654_v23 }
 0x29e   : > { %vm1792_vm10 = vcmp.gt.f32.partialorder %v1717_v6, 0.0  ;;  %v1830_v52 = vmul.f32 0.01, %v1717_v6  ;;  %v1995_v34 = vpop.f32.mrf.mxu2  ;;  %v2368_v21 = vpop.f32.mrf.mxu3  ;;  %2779 = vmatmul.f32.gmra.mxu1 %v6641_v54 }
 0x29f   : > { %v1996_v57 = vadd.f32 %v5288_v49, %v1995_v34  ;;  %v2128_v39 = vsub.f32 %v5430_v51, %v6424_v62  ;;  %v1102_v54 = vadd.f32 %v5041_v10, %v893_v3 }
 0x2a0   : > { %v1868_v27 = vsel %vm1792_vm10, %v1717_v6, %v1830_v52 }
 0x2a1   : > { %v5446_v43 = vand.u32 4294901760, %v1868_v27  ;;  %v1545_v48 = vpop.f32.mrf.mxu0  ;;  %v2129_v31 = vand.u32 4294901760, %v2128_v39  ;;  %v5448_v40 = vadd.f32 %v2364_v16, %v1996_v57  ;;  %v6644_v39 = vand.u32 4294901760, %v5045_v22 }
 0x2a2   : > { %v1546_v32 = vadd.f32 %v1545_v48, %v1337_v17  ;;  %v1343_v12 = vadd.f32 %v5026_v13, %v1102_v54  ;;  %v6646_v13 = vld [vmem:[#allocation58_spill] sm:$0xff] }
 0x2a3   : > { %v5451_v28 = vsub.f32 %v1868_v27, %v5446_v43  ;;  %v1720_v34 = vpop.f32.mrf.mxu1  ;;  %2130 = vmatmul.f32.gmra.mxu2 %v2129_v31  ;;  %2435 = vmatmul.f32.gmra.mxu3 %v5446_v43  ;;  %v670_v54 = vadd.f32 %v5164_v36, %v6646_v13 }
 0x2a4   : > { %v1721_v23 = vadd.f32 %v1720_v34, %v1546_v32  ;;  %2557 = vmatmul.f32.gmra.mxu0 %v5045_v22  ;;  %v6645_v32 = vld [vmem:[#allocation57_spill] sm:$0xff] }
 0x2a5   : > { %v6425_v6 = vand.u32 4294901760, %v5451_v28  ;;  %v897_v3 = vadd.f32 %v6645_v32, %v662_v33 }
 0x2a6   : > { %vm1793_vm11 = vcmp.gt.f32.partialorder %v1721_v23, 0.0  ;;  %v1831_v16 = vmul.f32 0.01, %v1721_v23  ;;  %v2003_v52 = vpop.f32.mrf.mxu2  ;;  %v2372_v57 = vpop.f32.mrf.mxu3  ;;  %2785 = vmatmul.f32.gmra.mxu1 %v6644_v39 }
 0x2a7   : > { %v2004_v17 = vadd.f32 %v5288_v49, %v2003_v52  ;;  %v2136_v10 = vsub.f32 %v5451_v28, %v6425_v6  ;;  %v1107_v39 = vadd.f32 %v5063_v26, %v897_v3 }
 0x2a8   : > { %v1869_v27 = vsel %vm1793_vm11, %v1721_v23, %v1831_v16 }
 0x2a9   : > { %v5467_v48 = vand.u32 4294901760, %v1869_v27  ;;  %v1549_v31 = vpop.f32.mrf.mxu0  ;;  %v2137_v34 = vand.u32 4294901760, %v2136_v10  ;;  %v5469_v4 = vadd.f32 %v2368_v21, %v2004_v17  ;;  %v6647_v10 = vand.u32 4294901760, %v5060_v41 }
 0x2aa   : > { %v1550_v62 = vadd.f32 %v1549_v31, %v1343_v12  ;;  %v1349_v32 = vadd.f32 %v5048_v47, %v1107_v39  ;;  %v6649_v47 = vld [vmem:[#allocation60_spill] sm:$0xff] }
 0x2ab   : > { %v5472_v22 = vsub.f32 %v1869_v27, %v5467_v48  ;;  %v1724_v52 = vpop.f32.mrf.mxu1  ;;  %2138 = vmatmul.f32.gmra.mxu2 %v2137_v34  ;;  %2439 = vmatmul.f32.gmra.mxu3 %v5467_v48  ;;  %v678_v39 = vadd.f32 %v5164_v36, %v6649_v47 }
 0x2ac   : > { %v1725_v33 = vadd.f32 %v1724_v52, %v1550_v62  ;;  %2562 = vmatmul.f32.gmra.mxu0 %v5060_v41  ;;  %v6648_v62 = vld [vmem:[#allocation59_spill] sm:$0xff] }
 0x2ad   : > { %v6426_v23 = vand.u32 4294901760, %v5472_v22  ;;  %v901_v3 = vadd.f32 %v6648_v62, %v670_v54 }
 0x2ae   : > { %vm1794_vm12 = vcmp.gt.f32.partialorder %v1725_v33, 0.0  ;;  %v1832_v21 = vmul.f32 0.01, %v1725_v33  ;;  %v2011_v16 = vpop.f32.mrf.mxu2  ;;  %v2376_v17 = vpop.f32.mrf.mxu3  ;;  %2791 = vmatmul.f32.gmra.mxu1 %v6647_v10 }
 0x2af   : > { %v2012_v12 = vadd.f32 %v5288_v49, %v2011_v16  ;;  %v2144_v26 = vsub.f32 %v5472_v22, %v6426_v23  ;;  %v1112_v10 = vadd.f32 %v5082_v18, %v901_v3 }
 0x2b0   : > { %v1870_v27 = vsel %vm1794_vm12, %v1725_v33, %v1832_v21 }
 0x2b1   : > { %v5488_v31 = vand.u32 4294901760, %v1870_v27  ;;  %v1553_v34 = vpop.f32.mrf.mxu0  ;;  %v2145_v52 = vand.u32 4294901760, %v2144_v26  ;;  %v5490_v13 = vadd.f32 %v2372_v57, %v2012_v12  ;;  %v6650_v26 = vand.u32 4294901760, %v5077_v11 }
 0x2b2   : > { %v1554_v6 = vadd.f32 %v1553_v34, %v1349_v32  ;;  %v1355_v62 = vadd.f32 %v5067_v60, %v1112_v10  ;;  %v6652_v60 = vld [vmem:[#allocation63_spill] sm:$0xff] }
 0x2b3   : > { %v5493_v41 = vsub.f32 %v1870_v27, %v5488_v31  ;;  %v1728_v16 = vpop.f32.mrf.mxu1  ;;  %2146 = vmatmul.f32.gmra.mxu2 %v2145_v52  ;;  %2443 = vmatmul.f32.gmra.mxu3 %v5488_v31  ;;  %v686_v10 = vadd.f32 %v5164_v36, %v6652_v60 }
 0x2b4   : > { %v1729_v54 = vadd.f32 %v1728_v16, %v1554_v6  ;;  %2567 = vmatmul.f32.gmra.mxu0 %v5077_v11  ;;  %v6651_v6 = vld [vmem:[#allocation61_spill] sm:$0xff] }
 0x2b5   : > { %v6427_v33 = vand.u32 4294901760, %v5493_v41  ;;  %v905_v3 = vadd.f32 %v6651_v6, %v678_v39 }
 0x2b6   : > { %vm1795_vm13 = vcmp.gt.f32.partialorder %v1729_v54, 0.0  ;;  %v1833_v57 = vmul.f32 0.01, %v1729_v54  ;;  %v2019_v21 = vpop.f32.mrf.mxu2  ;;  %v2380_v12 = vpop.f32.mrf.mxu3  ;;  %2797 = vmatmul.f32.gmra.mxu1 %v6650_v26 }
 0x2b7   : > { %v2020_v32 = vadd.f32 %v5288_v49, %v2019_v21  ;;  %v2152_v18 = vsub.f32 %v5493_v41, %v6427_v33  ;;  %v1117_v26 = vadd.f32 %v5103_v2, %v905_v3 }
 0x2b8   : > { %v1871_v27 = vsel %vm1795_vm13, %v1729_v54, %v1833_v57 }
 0x2b9   : > { %v5509_v34 = vand.u32 4294901760, %v1871_v27  ;;  %v1557_v52 = vpop.f32.mrf.mxu0  ;;  %v2153_v16 = vand.u32 4294901760, %v2152_v18  ;;  %v5511_v47 = vadd.f32 %v2376_v17, %v2020_v32  ;;  %v6653_v18 = vand.u32 4294901760, %v5094_v61 }
 0x2ba   : > { %v1558_v23 = vadd.f32 %v1557_v52, %v1355_v62  ;;  %v1361_v6 = vadd.f32 %v5088_v46, %v1117_v26  ;;  %v6655_v46 = vld [vmem:[#allocation65_spill] sm:$0xff] }
 0x2bb   : > { %v5514_v11 = vsub.f32 %v1871_v27, %v5509_v34  ;;  %v1732_v21 = vpop.f32.mrf.mxu1  ;;  %2154 = vmatmul.f32.gmra.mxu2 %v2153_v16  ;;  %2447 = vmatmul.f32.gmra.mxu3 %v5509_v34  ;;  %v694_v26 = vadd.f32 %v5164_v36, %v6655_v46 }
 0x2bc   : > { %v1733_v39 = vadd.f32 %v1732_v21, %v1558_v23  ;;  %2572 = vmatmul.f32.gmra.mxu0 %v5094_v61  ;;  %v6654_v23 = vld [vmem:[#allocation64_spill] sm:$0xff] }
 0x2bd   : > { %v6428_v54 = vand.u32 4294901760, %v5514_v11  ;;  %v909_v3 = vadd.f32 %v6654_v23, %v686_v10 }
 0x2be   : > { %vm1796_vm14 = vcmp.gt.f32.partialorder %v1733_v39, 0.0  ;;  %v1834_v17 = vmul.f32 0.01, %v1733_v39  ;;  %v2027_v57 = vpop.f32.mrf.mxu2  ;;  %v2384_v32 = vpop.f32.mrf.mxu3  ;;  %2803 = vmatmul.f32.gmra.mxu1 %v6653_v18 }
 0x2bf   : > { %v2028_v62 = vadd.f32 %v5288_v49, %v2027_v57  ;;  %v2160_v2 = vsub.f32 %v5514_v11, %v6428_v54  ;;  %v1122_v18 = vadd.f32 %v5122_v1, %v909_v3 }
 0x2c0   : > { %v1872_v27 = vsel %vm1796_vm14, %v1733_v39, %v1834_v17 }
 0x2c1   : > { %v5530_v52 = vand.u32 4294901760, %v1872_v27  ;;  %v1561_v16 = vpop.f32.mrf.mxu0  ;;  %v2161_v21 = vand.u32 4294901760, %v2160_v2  ;;  %v5532_v60 = vadd.f32 %v2380_v12, %v2028_v62  ;;  %v6656_v2 = vand.u32 4294901760, %v5111_v29 }
 0x2c2   : > { %v1562_v33 = vadd.f32 %v1561_v16, %v1361_v6  ;;  %v1367_v23 = vadd.f32 %v5107_v9, %v1122_v18  ;;  %v6658_v9 = vld [vmem:[#allocation68_spill] sm:$0xff] }
 0x2c3   : > { %v5535_v61 = vsub.f32 %v1872_v27, %v5530_v52  ;;  %v1736_v57 = vpop.f32.mrf.mxu1  ;;  %2162 = vmatmul.f32.gmra.mxu2 %v2161_v21  ;;  %2451 = vmatmul.f32.gmra.mxu3 %v5530_v52  ;;  %v702_v18 = vadd.f32 %v5164_v36, %v6658_v9 }
 0x2c4   : > { %v1737_v10 = vadd.f32 %v1736_v57, %v1562_v33  ;;  %2577 = vmatmul.f32.gmra.mxu0 %v5111_v29  ;;  %v6657_v33 = vld [vmem:[#allocation67_spill] sm:$0xff] }
 0x2c5   : > { %v6429_v39 = vand.u32 4294901760, %v5535_v61  ;;  %v913_v3 = vadd.f32 %v6657_v33, %v694_v26 }
 0x2c6   : > { %vm1797_vm15 = vcmp.gt.f32.partialorder %v1737_v10, 0.0  ;;  %v1835_v12 = vmul.f32 0.01, %v1737_v10  ;;  %v2035_v17 = vpop.f32.mrf.mxu2  ;;  %v2388_v62 = vpop.f32.mrf.mxu3  ;;  %2809 = vmatmul.f32.gmra.mxu1 %v6656_v2 }
 0x2c7   : > { %v2036_v6 = vadd.f32 %v5288_v49, %v2035_v17  ;;  %v2168_v1 = vsub.f32 %v5535_v61, %v6429_v39  ;;  %v1127_v2 = vadd.f32 %v5144_v50, %v913_v3 }
 0x2c8   : > { %v1873_v27 = vsel %vm1797_vm15, %v1737_v10, %v1835_v12 }
 0x2c9   : > { %v5551_v16 = vand.u32 4294901760, %v1873_v27  ;;  %v1565_v21 = vpop.f32.mrf.mxu0  ;;  %v2169_v57 = vand.u32 4294901760, %v2168_v1  ;;  %v5553_v46 = vadd.f32 %v2384_v32, %v2036_v6  ;;  %v6659_v1 = vand.u32 4294901760, %v5126_v55 }
 0x2ca   : > { %v1566_v54 = vadd.f32 %v1565_v21, %v1367_v23  ;;  %v1373_v33 = vadd.f32 %v5129_v63, %v1127_v2  ;;  %v6662_v63 = vld [vmem:[#allocation72_spill] sm:$0xff] }
 0x2cb   : > { %v5556_v29 = vsub.f32 %v1873_v27, %v5551_v16  ;;  %v1740_v17 = vpop.f32.mrf.mxu1  ;;  %2170 = vmatmul.f32.gmra.mxu2 %v2169_v57  ;;  %2455 = vmatmul.f32.gmra.mxu3 %v5551_v16  ;;  %v710_v2 = vadd.f32 %v5164_v36, %v6662_v63 }
 0x2cc   : > { %v1741_v26 = vadd.f32 %v1740_v17, %v1566_v54  ;;  %2582 = vmatmul.f32.gmra.mxu0 %v5126_v55  ;;  %v6660_v54 = vld [vmem:[#allocation70_spill] sm:$0xff] }
 0x2cd   : > { %v6430_v10 = vand.u32 4294901760, %v5556_v29  ;;  %v917_v3 = vadd.f32 %v6660_v54, %v702_v18  ;;  %v6664_v54 = vld [vmem:[#allocation6_spill] sm:$0xff] }
 0x2ce   : > { %vm1798_vm0 = vcmp.gt.f32.partialorder %v1741_v26, 0.0  ;;  %v1836_v32 = vmul.f32 0.01, %v1741_v26  ;;  %v2043_v12 = vpop.f32.mrf.mxu2  ;;  %v2392_v6 = vpop.f32.mrf.mxu3  ;;  %2815 = vmatmul.f32.gmra.mxu1 %v6659_v1 }
 0x2cf   : > { %v2044_v23 = vadd.f32 %v5288_v49, %v2043_v12  ;;  %v2176_v50 = vsub.f32 %v5556_v29, %v6430_v10  ;;  %v1132_v1 = vadd.f32 %v5170_v42, %v917_v3 }
 0x2d0   : > { %v1874_v27 = vsel %vm1798_vm0, %v1741_v26, %v1836_v32 }
 0x2d1   : > { %v5572_v21 = vand.u32 4294901760, %v1874_v27  ;;  %v1569_v57 = vpop.f32.mrf.mxu0  ;;  %v2177_v17 = vand.u32 4294901760, %v2176_v50  ;;  %v5574_v9 = vadd.f32 %v2388_v62, %v2044_v23  ;;  %v6663_v50 = vand.u32 4294901760, %v5141_v35 }
 0x2d2   : > { %v1570_v39 = vadd.f32 %v1569_v57, %v1373_v33  ;;  %v1379_v3 = vadd.f32 %v6664_v54, %v1132_v1  ;;  %v6667_v1 = vld [vmem:[#allocation75_spill] sm:$0xff] }
 0x2d3   : > { %6661 = vst [vmem:[#allocation38_spill] sm:$0xff] %v5572_v21  ;;  %v5577_v55 = vsub.f32 %v1874_v27, %v5572_v21  ;;  %v1744_v12 = vpop.f32.mrf.mxu1  ;;  %2178 = vmatmul.f32.gmra.mxu2 %v2177_v17  ;;  %2459 = vmatmul.f32.gmra.mxu3 %v5572_v21 }
 0x2d4   : > { %v1745_v18 = vadd.f32 %v1744_v12, %v1570_v39  ;;  %2587 = vmatmul.f32.gmra.mxu0 %v5141_v35  ;;  %v6665_v39 = vld [vmem:[#allocation73_spill] sm:$0xff] }
 0x2d5   : > { %v6433_v26 = vand.u32 4294901760, %v5577_v55  ;;  %v921_v27 = vadd.f32 %v6665_v39, %v710_v2  ;;  %v718_v2 = vadd.f32 %v5164_v36, %v6667_v1 }
 0x2d6   : > { %vm1799_vm1 = vcmp.gt.f32.partialorder %v1745_v18, 0.0  ;;  %v1837_v62 = vmul.f32 0.01, %v1745_v18  ;;  %v2051_v32 = vpop.f32.mrf.mxu2  ;;  %v2396_v23 = vpop.f32.mrf.mxu3  ;;  %2821 = vmatmul.f32.gmra.mxu1 %v6663_v50 }
 0x2d7   : > { %v2052_v33 = vadd.f32 %v5288_v49, %v2051_v32  ;;  %v2184_v42 = vsub.f32 %v5577_v55, %v6433_v26  ;;  %v1137_v50 = vadd.f32 %v5197_v20, %v921_v27  ;;  %v6670_v27 = vld [vmem:[#allocation15_spill] sm:$0xff] }
 0x2d8   : > { %v1875_v57 = vsel %vm1799_vm1, %v1745_v18, %v1837_v62  ;;  %v6668_v62 = vld [vmem:[#allocation8_spill] sm:$0xff] }
 0x2d9   : > { %v5593_v17 = vand.u32 4294901760, %v1875_v57  ;;  %v1573_v12 = vpop.f32.mrf.mxu0  ;;  %v2185_v63 = vand.u32 4294901760, %v2184_v42  ;;  %v5595_v10 = vadd.f32 %v2392_v6, %v2052_v33  ;;  %v1385_v36 = vadd.f32 %v6670_v27, %v1137_v50  ;;  %v3997_v50 = vld [vmem:[%s6291_s2] ss:$0 sm:$0xff] }
 0x2da   : > { %v1574_v21 = vadd.f32 %v1573_v12, %v1379_v3  ;;  %v6669_v3 = vand.u32 4294901760, %v6668_v62 }
 0x2db   : > { %6666 = vst [vmem:[#allocation25_spill] sm:$0xff] %v5593_v17  ;;  %v5598_v35 = vsub.f32 %v1875_v57, %v5593_v17  ;;  %v1748_v32 = vpop.f32.mrf.mxu1  ;;  %2186 = vmatmul.f32.gmra.mxu2 %v2185_v63  ;;  %2463 = vmatmul.f32.gmra.mxu3 %v5593_v17 }
 0x2dc   : > { %v1749_v18 = vadd.f32 %v1748_v32, %v1574_v21  ;;  %2592 = vmatmul.f32.gmra.mxu0 %v6668_v62  ;;  %v6671_v21 = vld [vmem:[#allocation76_spill] sm:$0xff] }
 0x2dd   : > { %v6436_v42 = vand.u32 4294901760, %v5598_v35  ;;  %v925_v57 = vadd.f32 %v6671_v21, %v718_v2  ;;  %v6673_v2 = vld [vmem:[#allocation77_spill] sm:$0xff] }
 0x2de   : > { %vm1800_vm2 = vcmp.gt.f32.partialorder %v1749_v18, 0.0  ;;  %v1838_v6 = vmul.f32 0.01, %v1749_v18  ;;  %v2059_v33 = vpop.f32.mrf.mxu2  ;;  %v2400_v54 = vpop.f32.mrf.mxu3  ;;  %2827 = vmatmul.f32.gmra.mxu1 %v6669_v3 }
 0x2df   : > { %v2060_v39 = vadd.f32 %v5288_v49, %v2059_v33  ;;  %v2192_v20 = vsub.f32 %v5598_v35, %v6436_v42  ;;  %v1142_v3 = vadd.f32 %v5220_v30, %v925_v57 }
 0x2e0   : > { %v1876_v12 = vsel %vm1800_vm2, %v1749_v18, %v1838_v6  ;;  %v726_v18 = vadd.f32 %v3997_v50, %v6673_v2 }
 0x2e1   : > { %v5614_v63 = vand.u32 4294901760, %v1876_v12  ;;  %v1577_v32 = vpop.f32.mrf.mxu0  ;;  %v2193_v1 = vand.u32 4294901760, %v2192_v20  ;;  %v5616_v26 = vadd.f32 %v2396_v23, %v2060_v39  ;;  %v1391_v57 = vadd.f32 %v5201_v53, %v1142_v3  ;;  %v6679_v53 = vld [vmem:[#allocation79_spill] sm:$0xff] }
 0x2e2   : > { %v1578_v17 = vadd.f32 %v1577_v32, %v1385_v36  ;;  %v6674_v36 = vand.u32 4294901760, %v5183_v38  ;;  %v734_v3 = vadd.f32 %v3997_v50, %v6679_v53 }
 0x2e3   : > { %6672 = vst [vmem:[#allocation62_spill] sm:$0xff] %v5614_v63  ;;  %v5619_v62 = vsub.f32 %v1876_v12, %v5614_v63  ;;  %v1752_v33 = vpop.f32.mrf.mxu1  ;;  %2194 = vmatmul.f32.gmra.mxu2 %v2193_v1  ;;  %2467 = vmatmul.f32.gmra.mxu3 %v5614_v63 }
 0x2e4   : > { %v1753_v6 = vadd.f32 %v1752_v33, %v1578_v17  ;;  %2597 = vmatmul.f32.gmra.mxu0 %v5183_v38  ;;  %v6675_v17 = vld [vmem:[#allocation78_spill] sm:$0xff] }
 0x2e5   : > { %v6439_v23 = vand.u32 4294901760, %v5619_v62  ;;  %v929_v12 = vadd.f32 %v6675_v17, %v726_v18 }
 0x2e6   : > { %vm1801_vm3 = vcmp.gt.f32.partialorder %v1753_v6, 0.0  ;;  %v1839_v39 = vmul.f32 0.01, %v1753_v6  ;;  %v2067_v20 = vpop.f32.mrf.mxu2  ;;  %v2404_v27 = vpop.f32.mrf.mxu3  ;;  %2833 = vmatmul.f32.gmra.mxu1 %v6674_v36  ;;  %v6678_v36 = vld [vmem:[#allocation26_spill] sm:$0xff] }
 0x2e7   : > { %v2068_v30 = vadd.f32 %v5288_v49, %v2067_v20  ;;  %v2200_v21 = vsub.f32 %v5619_v62, %v6439_v23  ;;  %v1147_v23 = vadd.f32 %v6678_v36, %v929_v12 }
 0x2e8   : > { %v1877_v32 = vsel %vm1801_vm3, %v1753_v6, %v1839_v39  ;;  %v6680_v6 = vld [vmem:[#allocation12_spill] sm:$0xff] }
 0x2e9   : > { %v5637_v1 = vand.u32 4294901760, %v1877_v32  ;;  %v1581_v33 = vpop.f32.mrf.mxu0  ;;  %v2201_v2 = vand.u32 4294901760, %v2200_v21  ;;  %v5639_v42 = vadd.f32 %v2400_v54, %v2068_v30 }
 0x2ea   : > { %v1582_v63 = vadd.f32 %v1581_v33, %v1391_v57  ;;  %v6681_v57 = vand.u32 4294901760, %v6680_v6 }
 0x2eb   : > { %6676 = vst [vmem:[#allocation39_spill] sm:$0xff] %v5637_v1  ;;  %v5642_v38 = vsub.f32 %v1877_v32, %v5637_v1  ;;  %v1756_v20 = vpop.f32.mrf.mxu1  ;;  %2202 = vmatmul.f32.gmra.mxu2 %v2201_v2  ;;  %2471 = vmatmul.f32.gmra.mxu3 %v5637_v1  ;;  %v6682_v32 = vld [vmem:[#allocation14_spill] sm:$0xff] }
 0x2ec   : > { %6677 = vst [vmem:[#allocation69_spill] sm:$0xff] %v5639_v42  ;;  %v1757_v18 = vadd.f32 %v1756_v20, %v1582_v63  ;;  %2602 = vmatmul.f32.gmra.mxu0 %v6680_v6  ;;  %v1397_v50 = vadd.f32 %v6682_v32, %v1147_v23  ;;  %v6683_v63 = vld [vmem:[#allocation80_spill] sm:$0xff]  ;;  %v6687_v32 = vld [vmem:[#allocation23_spill] sm:$0xff] }
 0x2ed   : > { %v6442_v39 = vand.u32 4294901760, %v5642_v38  ;;  %v933_v33 = vadd.f32 %v6683_v63, %v734_v3  ;;  %v6689_v63 = vld [vmem:[#allocation16_spill] sm:$0xff] }
 0x2ee   : > { %vm1802_vm4 = vcmp.gt.f32.partialorder %v1757_v18, 0.0  ;;  %v1840_v54 = vmul.f32 0.01, %v1757_v18  ;;  %v2075_v30 = vpop.f32.mrf.mxu2  ;;  %v2408_v21 = vpop.f32.mrf.mxu3  ;;  %2839 = vmatmul.f32.gmra.mxu1 %v6681_v57  ;;  %v6686_v57 = vld [vmem:[#allocation18_spill] sm:$0xff] }
 0x2ef   : > { %v2076_v17 = vadd.f32 %v5288_v49, %v2075_v30  ;;  %v2208_v12 = vsub.f32 %v5642_v38, %v6442_v39  ;;  %v1152_v39 = vadd.f32 %v6686_v57, %v933_v33 }
 0x2f0   : > { %v1878_v2 = vsel %vm1802_vm4, %v1757_v18, %v1840_v54 }
 0x2f1   : > { %v5657_v20 = vand.u32 4294901760, %v1878_v2  ;;  %v1585_v36 = vpop.f32.mrf.mxu0  ;;  %v2209_v53 = vand.u32 4294901760, %v2208_v12  ;;  %v5659_v1 = vadd.f32 %v2404_v27, %v2076_v17  ;;  %v6688_v17 = vand.u32 4294901760, %v6687_v32 }
 0x2f2   : > { %v1586_v42 = vadd.f32 %v1585_v36, %v1397_v50  ;;  %v1403_v33 = vadd.f32 %v6689_v63, %v1152_v39 }
 0x2f3   : > { %6684 = vst [vmem:[#allocation40_spill] sm:$0xff] %v5657_v20  ;;  %v5662_v6 = vsub.f32 %v1878_v2, %v5657_v20  ;;  %v1760_v30 = vpop.f32.mrf.mxu1  ;;  %2210 = vmatmul.f32.gmra.mxu2 %v2209_v53  ;;  %2475 = vmatmul.f32.gmra.mxu3 %v5657_v20 }
 0x2f4   : > { %6685 = vst [vmem:[#allocation28_spill] sm:$0xff] %v5659_v1  ;;  %v1761_v23 = vadd.f32 %v1760_v30, %v1586_v42  ;;  %2607 = vmatmul.f32.gmra.mxu0 %v6687_v32 }
 0x2f5   : > { %v6446_v3 = vand.u32 4294901760, %v5662_v6 }
 0x2f6   : > { %vm1803_vm5 = vcmp.gt.f32.partialorder %v1761_v23, 0.0  ;;  %v1841_v18 = vmul.f32 0.01, %v1761_v23  ;;  %v2083_v54 = vpop.f32.mrf.mxu2  ;;  %v2412_v27 = vpop.f32.mrf.mxu3  ;;  %2845 = vmatmul.f32.gmra.mxu1 %v6688_v17  ;;  %v6692_v17 = vld [vmem:[#allocation21_spill] sm:$0xff] }
 0x2f7   : > { %v2084_v12 = vadd.f32 %v5288_v49, %v2083_v54  ;;  %v2216_v50 = vsub.f32 %v5662_v6, %v6446_v3 }
 0x2f8   : > { %v1879_v42 = vsel %vm1803_vm5, %v1761_v23, %v1841_v18 }
 0x2f9   : > { %v5675_v2 = vand.u32 4294901760, %v1879_v42  ;;  %v1589_v36 = vpop.f32.mrf.mxu0  ;;  %v2217_v53 = vand.u32 4294901760, %v2216_v50  ;;  %v5677_v30 = vadd.f32 %v2408_v21, %v2084_v12  ;;  %v6693_v21 = vand.u32 4294901760, %v6692_v17 }
 0x2fa   : > { %v1590_v57 = vadd.f32 %v1589_v36, %v1403_v33 }
 0x2fb   : > { %6690 = vst [vmem:[#allocation66_spill] sm:$0xff] %v5675_v2  ;;  %v5680_v20 = vsub.f32 %v1879_v42, %v5675_v2  ;;  %v1764_v32 = vpop.f32.mrf.mxu1  ;;  %2218 = vmatmul.f32.gmra.mxu2 %v2217_v53  ;;  %2479 = vmatmul.f32.gmra.mxu3 %v5675_v2 }
 0x2fc   : > { %6691 = vst [vmem:[#allocation41_spill] sm:$0xff] %v5677_v30  ;;  %v1765_v54 = vadd.f32 %v1764_v32, %v1590_v57  ;;  %2612 = vmatmul.f32.gmra.mxu0 %v6692_v17  ;;  %v6696_v32 = vld [vmem:[#allocation29_spill] sm:$0xff]  ;;  %v6746_v30 = vand.u32 4294901760, %v5598_v35 }
 0x2fd   : > { %v6445_v39 = vand.u32 4294901760, %v5680_v20 }
 0x2fe   : > { %vm1804_vm6 = vcmp.gt.f32.partialorder %v1765_v54, 0.0  ;;  %v1842_v23 = vmul.f32 0.01, %v1765_v54  ;;  %v2091_v18 = vpop.f32.mrf.mxu2  ;;  %v2416_v63 = vpop.f32.mrf.mxu3  ;;  %2851 = vmatmul.f32.gmra.mxu1 %v6693_v21 }
 0x2ff   : > { %v2092_v12 = vadd.f32 %v5288_v49, %v2091_v18  ;;  %v2224_v50 = vsub.f32 %v5680_v20, %v6445_v39  ;;  %v6697_v39 = vand.u32 4294901760, %v6696_v32 }
 0x300   : > { %v1880_v33 = vsel %vm1804_vm6, %v1765_v54, %v1842_v23 }
 0x301   : > { %v5691_v42 = vand.u32 4294901760, %v1880_v33  ;;  %v2225_v36 = vand.u32 4294901760, %v2224_v50  ;;  %v5693_v53 = vadd.f32 %v2412_v27, %v2092_v12  ;;  %v6699_v50 = vld [vmem:[#allocation81_spill] sm:$0xff] }
 0x303   : > { %6694 = vst [vmem:[#allocation74_spill] sm:$0xff] %v5691_v42  ;;  %v5696_v57 = vsub.f32 %v1880_v33, %v5691_v42  ;;  %2226 = vmatmul.f32.gmra.mxu2 %v2225_v36  ;;  %2483 = vmatmul.f32.gmra.mxu3 %v5691_v42  ;;  %v6700_v33 = vld [vmem:[#allocation32_spill] sm:$0xff] }
 0x304   : > { %6695 = vst [vmem:[#allocation42_spill] sm:$0xff] %v5693_v53  ;;  %2617 = vmatmul.f32.gmra.mxu0 %v6696_v32  ;;  %v6701_v42 = vand.u32 4294901760, %v6700_v33 }
 0x305   : > { %v6449_v17 = vand.u32 4294901760, %v5696_v57 }
 0x306   : > { %v2099_v18 = vpop.f32.mrf.mxu2  ;;  %v2420_v21 = vpop.f32.mrf.mxu3  ;;  %2857 = vmatmul.f32.gmra.mxu1 %v6697_v39 }
 0x307   : > { %v2100_v54 = vadd.f32 %v5288_v49, %v2099_v18  ;;  %v2232_v27 = vsub.f32 %v5696_v57, %v6449_v17  ;;  %v6703_v18 = vld [vmem:[#allocation82_spill] sm:$0xff] }
 0x309   : > { %v2233_v23 = vand.u32 4294901760, %v2232_v27  ;;  %v5707_v12 = vadd.f32 %v2416_v63, %v2100_v54  ;;  %v6704_v27 = vand.u32 4294901760, %v5307_v24 }
 0x30b   : > { %6698 = vst [vmem:[#allocation31_spill] sm:$0xff] %v5707_v12  ;;  %2234 = vmatmul.f32.gmra.mxu2 %v2233_v23  ;;  %3237 = vmatmul.f32.vlgmr.msra.gmra.mxu3 %v6699_v50  ;;  %v6731_v12 = vand.u32 4294901760, %v5493_v41 }
 0x30c   : > { %2622 = vmatmul.f32.gmra.mxu0 %v6700_v33  ;;  %v6707_v33 = vand.u32 4294901760, %v5327_v8 }
 0x30e   : > { %v2107_v36 = vpop.f32.mrf.mxu2  ;;  %v2424_v3 = vpop.f32.mrf.mxu3  ;;  %2863 = vmatmul.f32.gmra.mxu1 %v6701_v42  ;;  %v6706_v42 = vld [vmem:[#allocation83_spill] sm:$0xff] }
 0x30f   : > { %v2108_v39 = vadd.f32 %v5288_v49, %v2107_v36 }
 0x311   : > { %v5714_v32 = vadd.f32 %v2420_v21, %v2108_v39 }
 0x313   : > { %6702 = vst [vmem:[#allocation71_spill] sm:$0xff] %v5714_v32  ;;  %3052 = vmatmul.f32.vlgmr.msra.gmra.mxu2 %v6699_v50  ;;  %3241 = vmatmul.f32.gmra.mxu3 %v6703_v18 }
 0x314   : > { %2627 = vmatmul.f32.gmra.mxu0 %v5307_v24  ;;  %v6709_v24 = vld [vmem:[#allocation84_spill] sm:$0xff] }
 0x316   : > { %v2115_v63 = vpop.f32.mrf.mxu2  ;;  %v2428_v54 = vpop.f32.mrf.mxu3  ;;  %2869 = vmatmul.f32.gmra.mxu1 %v6704_v27 }
 0x317   : > { %v2116_v23 = vadd.f32 %v5288_v49, %v2115_v63  ;;  %v6710_v63 = vand.u32 4294901760, %v5347_v5 }
 0x319   : > { %v5722_v17 = vadd.f32 %v2424_v3, %v2116_v23  ;;  %v5738_v23 = vpop.f32.mrf.mxu0 }
 0x31b   : > { %6705 = vst [vmem:[#allocation43_spill] sm:$0xff] %v5722_v17  ;;  %3056 = vmatmul.f32.gmra.mxu2 %v6703_v18  ;;  %3245 = vmatmul.f32.gmra.mxu3 %v6706_v42 }
 0x31c   : > { %2632 = vmatmul.f32.gmra.mxu0 %v5327_v8 }
 0x31e   : > { %v2123_v21 = vpop.f32.mrf.mxu2  ;;  %v2432_v50 = vpop.f32.mrf.mxu3  ;;  %2875 = vmatmul.f32.gmra.mxu1 %v6707_v33 }
 0x31f   : > { %v2124_v36 = vadd.f32 %v5288_v49, %v2123_v21  ;;  %v5742_v21 = vpop.f32.mrf.mxu1 }
 0x321   : > { %v5730_v39 = vadd.f32 %v2428_v54, %v2124_v36  ;;  %v6712_v54 = vld [vmem:[#allocation85_spill] sm:$0xff]  ;;  %v6713_v36 = vand.u32 4294901760, %v5367_v14 }
 0x323   : > { %6708 = vst [vmem:[#allocation44_spill] sm:$0xff] %v5730_v39  ;;  %3060 = vmatmul.f32.gmra.mxu2 %v6706_v42  ;;  %3249 = vmatmul.f32.gmra.mxu3 %v6709_v24  ;;  %v6719_v39 = vand.u32 4294901760, %v5409_v25 }
 0x324   : > { %2637 = vmatmul.f32.gmra.mxu0 %v5347_v5 }
 0x326   : > { %v2131_v3 = vpop.f32.mrf.mxu2  ;;  %v2436_v18 = vpop.f32.mrf.mxu3  ;;  %2881 = vmatmul.f32.gmra.mxu1 %v6710_v63 }
 0x327   : > { %v2132_v27 = vadd.f32 %v5288_v49, %v2131_v3  ;;  %v5752_v49 = vld [vmem:[%s6293_s4] ss:$0 sm:$0xff]  ;;  %v5757_v3 = vpop.f32.mrf.mxu0  ;;  %v5762_v63 = vpop.f32.mrf.mxu1 }
 0x329   : > { %v5740_v8 = vadd.f32 %v2432_v50, %v2132_v27 }
 0x32b   : > { %6711 = vst [vmem:[#allocation34_spill] sm:$0xff] %v5740_v8  ;;  %3064 = vmatmul.f32.gmra.mxu2 %v6709_v24  ;;  %3253 = vmatmul.f32.gmra.mxu3 %v6712_v54  ;;  %v6715_v24 = vld [vmem:[#allocation3_spill] sm:$0xff] }
 0x32c   : > { %2642 = vmatmul.f32.gmra.mxu0 %v5367_v14 }
 0x32e   : > { %v2139_v42 = vpop.f32.mrf.mxu2  ;;  %v2440_v33 = vpop.f32.mrf.mxu3  ;;  %2887 = vmatmul.f32.gmra.mxu1 %v6713_v36  ;;  %v6716_v36 = vand.u32 4294901760, %v5388_v0 }
 0x32f   : > { %v2140_v5 = vadd.f32 %v5752_v49, %v2139_v42  ;;  %v5776_v17 = vpop.f32.mrf.mxu1 }
 0x331   : > { %v5755_v50 = vadd.f32 %v2436_v18, %v2140_v5  ;;  %v6718_v18 = vld [vmem:[#allocation7_spill] sm:$0xff] }
 0x333   : > { %6714 = vst [vmem:[#allocation45_spill] sm:$0xff] %v5755_v50  ;;  %3068 = vmatmul.f32.gmra.mxu2 %v6712_v54  ;;  %3257 = vmatmul.f32.gmra.mxu3 %v6715_v24  ;;  %v5772_v54 = vpop.f32.mrf.mxu0 }
 0x334   : > { %2647 = vmatmul.f32.gmra.mxu0 %v5388_v0 }
 0x336   : > { %v2147_v14 = vpop.f32.mrf.mxu2  ;;  %v2444_v27 = vpop.f32.mrf.mxu3  ;;  %2893 = vmatmul.f32.gmra.mxu1 %v6716_v36  ;;  %v6722_v36 = vand.u32 4294901760, %v5430_v51 }
 0x337   : > { %v2148_v8 = vadd.f32 %v5752_v49, %v2147_v14 }
 0x339   : > { %v5767_v42 = vadd.f32 %v2440_v33, %v2148_v8  ;;  %v6721_v8 = vld [vmem:[#allocation4_spill] sm:$0xff] }
 0x33b   : > { %6717 = vst [vmem:[#allocation46_spill] sm:$0xff] %v5767_v42  ;;  %3072 = vmatmul.f32.gmra.mxu2 %v6715_v24  ;;  %3261 = vmatmul.f32.gmra.mxu3 %v6718_v18  ;;  %v5786_v42 = vpop.f32.mrf.mxu0 }
 0x33c   : > { %2652 = vmatmul.f32.gmra.mxu0 %v5409_v25 }
 0x33e   : > { %v2155_v5 = vpop.f32.mrf.mxu2  ;;  %v2448_v50 = vpop.f32.mrf.mxu3  ;;  %2899 = vmatmul.f32.gmra.mxu1 %v6719_v39 }
 0x33f   : > { %v2156_v0 = vadd.f32 %v5752_v49, %v2155_v5  ;;  %v5789_v39 = vpop.f32.mrf.mxu1 }
 0x341   : > { %v5779_v14 = vadd.f32 %v2444_v27, %v2156_v0  ;;  %v6724_v27 = vld [vmem:[#allocation9_spill] sm:$0xff] }
 0x343   : > { %6720 = vst [vmem:[#allocation37_spill] sm:$0xff] %v5779_v14  ;;  %3076 = vmatmul.f32.gmra.mxu2 %v6718_v18  ;;  %3265 = vmatmul.f32.gmra.mxu3 %v6721_v8  ;;  %v6725_v14 = vand.u32 4294901760, %v5451_v28 }
 0x344   : > { %2657 = vmatmul.f32.gmra.mxu0 %v5430_v51 }
 0x346   : > { %v2163_v33 = vpop.f32.mrf.mxu2  ;;  %v2452_v24 = vpop.f32.mrf.mxu3  ;;  %2905 = vmatmul.f32.gmra.mxu1 %v6722_v36 }
 0x347   : > { %v2164_v25 = vadd.f32 %v5752_v49, %v2163_v33  ;;  %v5799_v36 = vpop.f32.mrf.mxu0  ;;  %v5803_v32 = vpop.f32.mrf.mxu1 }
 0x349   : > { %v5791_v5 = vadd.f32 %v2448_v50, %v2164_v25  ;;  %v6727_v50 = vld [vmem:[#allocation5_spill] sm:$0xff] }
 0x34b   : > { %6723 = vst [vmem:[#allocation47_spill] sm:$0xff] %v5791_v5  ;;  %3080 = vmatmul.f32.gmra.mxu2 %v6721_v8  ;;  %3269 = vmatmul.f32.gmra.mxu3 %v6724_v27  ;;  %v6728_v5 = vand.u32 4294901760, %v5472_v22 }
 0x34c   : > { %2662 = vmatmul.f32.gmra.mxu0 %v5451_v28 }
 0x34e   : > { %v2171_v18 = vpop.f32.mrf.mxu2  ;;  %v2456_v0 = vpop.f32.mrf.mxu3  ;;  %2911 = vmatmul.f32.gmra.mxu1 %v6725_v14 }
 0x34f   : > { %v2172_v51 = vadd.f32 %v5752_v49, %v2171_v18  ;;  %v5813_v18 = vpop.f32.mrf.mxu0 }
 0x351   : > { %v5801_v33 = vadd.f32 %v2452_v24, %v2172_v51  ;;  %v6730_v24 = vld [vmem:[#allocation11_spill] sm:$0xff] }
 0x353   : > { %6726 = vst [vmem:[#allocation48_spill] sm:$0xff] %v5801_v33  ;;  %3084 = vmatmul.f32.gmra.mxu2 %v6724_v27  ;;  %3273 = vmatmul.f32.gmra.mxu3 %v6727_v50  ;;  %v5818_v27 = vpop.f32.mrf.mxu1 }
 0x354   : > { %2667 = vmatmul.f32.gmra.mxu0 %v5472_v22 }
 0x356   : > { %v2179_v8 = vpop.f32.mrf.mxu2  ;;  %v2460_v25 = vpop.f32.mrf.mxu3  ;;  %2917 = vmatmul.f32.gmra.mxu1 %v6728_v5 }
 0x357   : > { %v2180_v28 = vadd.f32 %v5752_v49, %v2179_v8 }
 0x359   : > { %v5811_v14 = vadd.f32 %v2456_v0, %v2180_v28  ;;  %v6733_v0 = vld [vmem:[#allocation13_spill] sm:$0xff] }
 0x35b   : > { %6729 = vst [vmem:[#allocation49_spill] sm:$0xff] %v5811_v14  ;;  %3088 = vmatmul.f32.gmra.mxu2 %v6727_v50  ;;  %3277 = vmatmul.f32.gmra.mxu3 %v6730_v24  ;;  %v5828_v50 = vpop.f32.mrf.mxu0  ;;  %v6734_v14 = vand.u32 4294901760, %v5514_v11  ;;  %v5832_v2 = vpop.f32.mrf.mxu1 }
 0x35c   : > { %2672 = vmatmul.f32.gmra.mxu0 %v5493_v41 }
 0x35e   : > { %v2187_v51 = vpop.f32.mrf.mxu2  ;;  %v2464_v33 = vpop.f32.mrf.mxu3  ;;  %2923 = vmatmul.f32.gmra.mxu1 %v6731_v12 }
 0x35f   : > { %v2188_v22 = vadd.f32 %v5752_v49, %v2187_v51 }
 0x361   : > { %v5823_v5 = vadd.f32 %v2460_v25, %v2188_v22  ;;  %v6736_v25 = vld [vmem:[#allocation10_spill] sm:$0xff]  ;;  %v6737_v22 = vand.u32 4294901760, %v5535_v61 }
 0x363   : > { %6732 = vst [vmem:[#allocation50_spill] sm:$0xff] %v5823_v5  ;;  %3092 = vmatmul.f32.gmra.mxu2 %v6730_v24  ;;  %3281 = vmatmul.f32.gmra.mxu3 %v6733_v0  ;;  %v5842_v5 = vpop.f32.mrf.mxu0 }
 0x364   : > { %2677 = vmatmul.f32.gmra.mxu0 %v5514_v11 }
 0x366   : > { %v2195_v8 = vpop.f32.mrf.mxu2  ;;  %v2468_v28 = vpop.f32.mrf.mxu3  ;;  %2929 = vmatmul.f32.gmra.mxu1 %v6734_v14 }
 0x367   : > { %v2196_v41 = vadd.f32 %v5752_v49, %v2195_v8  ;;  %v5845_v14 = vpop.f32.mrf.mxu1 }
 0x369   : > { %v5835_v12 = vadd.f32 %v2464_v33, %v2196_v41  ;;  %v6739_v33 = vld [vmem:[#allocation17_spill] sm:$0xff] }
 0x36b   : > { %6735 = vst [vmem:[#allocation51_spill] sm:$0xff] %v5835_v12  ;;  %3096 = vmatmul.f32.gmra.mxu2 %v6733_v0  ;;  %3285 = vmatmul.f32.gmra.mxu3 %v6736_v25  ;;  %v6740_v12 = vand.u32 4294901760, %v5556_v29 }
 0x36c   : > { %2682 = vmatmul.f32.gmra.mxu0 %v5535_v61 }
 0x36e   : > { %v2203_v24 = vpop.f32.mrf.mxu2  ;;  %v2472_v51 = vpop.f32.mrf.mxu3  ;;  %2935 = vmatmul.f32.gmra.mxu1 %v6737_v22 }
 0x36f   : > { %v2204_v11 = vadd.f32 %v5752_v49, %v2203_v24  ;;  %v5855_v22 = vpop.f32.mrf.mxu0  ;;  %v5859_v53 = vpop.f32.mrf.mxu1 }
 0x371   : > { %v5847_v8 = vadd.f32 %v2468_v28, %v2204_v11  ;;  %v6742_v28 = vld [vmem:[#allocation19_spill] sm:$0xff] }
 0x373   : > { %6738 = vst [vmem:[#allocation52_spill] sm:$0xff] %v5847_v8  ;;  %3100 = vmatmul.f32.gmra.mxu2 %v6736_v25  ;;  %3289 = vmatmul.f32.gmra.mxu3 %v6739_v33  ;;  %v6743_v8 = vand.u32 4294901760, %v5577_v55 }
 0x374   : > { %2687 = vmatmul.f32.gmra.mxu0 %v5556_v29 }
 0x376   : > { %v2211_v0 = vpop.f32.mrf.mxu2  ;;  %v2476_v41 = vpop.f32.mrf.mxu3  ;;  %2941 = vmatmul.f32.gmra.mxu1 %v6740_v12 }
 0x377   : > { %v2212_v61 = vadd.f32 %v5752_v49, %v2211_v0  ;;  %v5869_v0 = vpop.f32.mrf.mxu0 }
 0x379   : > { %v5857_v24 = vadd.f32 %v2472_v51, %v2212_v61  ;;  %v6745_v51 = vld [vmem:[#allocation24_spill] sm:$0xff] }
 0x37b   : > { %6741 = vst [vmem:[#allocation53_spill] sm:$0xff] %v5857_v24  ;;  %3104 = vmatmul.f32.gmra.mxu2 %v6739_v33  ;;  %3293 = vmatmul.f32.gmra.mxu3 %v6742_v28  ;;  %v5874_v33 = vpop.f32.mrf.mxu1 }
 0x37c   : > { %2692 = vmatmul.f32.gmra.mxu0 %v5577_v55 }
 0x37e   : > { %v2219_v25 = vpop.f32.mrf.mxu2  ;;  %v2480_v11 = vpop.f32.mrf.mxu3  ;;  %2947 = vmatmul.f32.gmra.mxu1 %v6743_v8 }
 0x37f   : > { %v2220_v29 = vadd.f32 %v5752_v49, %v2219_v25 }
 0x381   : > { %v5867_v12 = vadd.f32 %v2476_v41, %v2220_v29  ;;  %v6748_v41 = vld [vmem:[#allocation27_spill] sm:$0xff]  ;;  %v6749_v29 = vand.u32 4294901760, %v5619_v62 }
 0x383   : > { %6744 = vst [vmem:[#allocation54_spill] sm:$0xff] %v5867_v12  ;;  %3108 = vmatmul.f32.gmra.mxu2 %v6742_v28  ;;  %3297 = vmatmul.f32.gmra.mxu3 %v6745_v51  ;;  %v5884_v28 = vpop.f32.mrf.mxu0 }
 0x384   : > { %2697 = vmatmul.f32.gmra.mxu0 %v5598_v35  ;;  %v5888_v35 = vpop.f32.mrf.mxu1 }
 0x386   : > { %v2227_v61 = vpop.f32.mrf.mxu2  ;;  %v2484_v24 = vpop.f32.mrf.mxu3  ;;  %2953 = vmatmul.f32.gmra.mxu1 %v6746_v30 }
 0x387   : > { %v2228_v55 = vadd.f32 %v5752_v49, %v2227_v61  ;;  %v6750_v61 = vld [vmem:[#allocation33_spill] sm:$0xff] }
 0x389   : > { %v5879_v8 = vadd.f32 %v2480_v11, %v2228_v55  ;;  %v2539_v11 = vadd.f32 %v5738_v23, %v6750_v61  ;;  %v2544_v23 = vadd.f32 %v5757_v3, %v5324_v58  ;;  %v6754_v58 = vand.u32 4294901760, %v5662_v6 }
 0x38b   : > { %6747 = vst [vmem:[#allocation55_spill] sm:$0xff] %v5879_v8  ;;  %3112 = vmatmul.f32.gmra.mxu2 %v6745_v51  ;;  %3301 = vmatmul.f32.gmra.mxu3 %v6748_v41  ;;  %v6751_v51 = vld [vmem:[#allocation30_spill] sm:$0xff] }
 0x38c   : > { %2702 = vmatmul.f32.gmra.mxu0 %v5619_v62  ;;  %v2763_v62 = vadd.f32 %v5742_v21, %v2539_v11  ;;  %v6753_v21 = vld [vmem:[#allocation20_spill] sm:$0xff]  ;;  %v2549_v11 = vadd.f32 %v5772_v54, %v5344_v56  ;;  %v6756_v56 = vand.u32 4294901760, %v5680_v20 }
 0x38e   : > { %v2235_v25 = vpop.f32.mrf.mxu2  ;;  %2959 = vmatmul.f32.gmra.mxu1 %v6749_v29  ;;  %v3238_v12 = vpop.f32.mrf.mxu3  ;;  %v6752_v29 = vand.u32 4294901760, %v5642_v38 }
 0x38f   : > { %v2236_v30 = vadd.f32 %v5752_v49, %v2235_v25  ;;  %v5902_v25 = vpop.f32.mrf.mxu0 }
 0x391   : > { %v5893_v55 = vadd.f32 %v2484_v24, %v2236_v30  ;;  %v5906_v24 = vpop.f32.mrf.mxu1 }
 0x393   : > { %3116 = vmatmul.f32.gmra.mxu2 %v6748_v41  ;;  %3305 = vmatmul.f32.gmra.mxu3 %v6751_v51 }
 0x394   : > { %2707 = vmatmul.f32.gmra.mxu0 %v5642_v38  ;;  %v2769_v38 = vadd.f32 %v5762_v63, %v2544_v23 }
 0x396   : > { %2965 = vmatmul.f32.gmra.mxu1 %v6752_v29  ;;  %v3053_v8 = vpop.f32.mrf.mxu2  ;;  %v3242_v1 = vpop.f32.mrf.mxu3 }
 0x397   : > { %v3054_v49 = vadd.f32 %v3053_v8, %v2763_v62  ;;  %v5920_v62 = vpop.f32.mrf.mxu0 }
 0x399   : > { %v3239_v41 = vadd.f32 %v3238_v12, %v3054_v49  ;;  %v5922_v63 = vpop.f32.mrf.mxu1  ;;  %v6755_v49 = vld [vmem:[#allocation35_spill] sm:$0xff] }
 0x39b   : > { %vm3389_vm7 = vcmp.gt.f32.partialorder %v3239_v41, 0.0  ;;  %v3427_v30 = vmul.f32 0.01, %v3239_v41  ;;  %3120 = vmatmul.f32.gmra.mxu2 %v6751_v51  ;;  %3309 = vmatmul.f32.gmra.mxu3 %v6753_v21 }
 0x39c   : > { %2712 = vmatmul.f32.gmra.mxu0 %v5662_v6  ;;  %v2775_v6 = vadd.f32 %v5776_v17, %v2549_v11  ;;  %v2559_v11 = vadd.f32 %v5799_v36, %v5385_v37 }
 0x39d   : > { %v3465_v8 = vsel %vm3389_vm7, %v3239_v41, %v3427_v30  ;;  %v2554_v30 = vadd.f32 %v5786_v42, %v5364_v44  ;;  %v6758_v44 = vand.u32 4294901760, %v5696_v57 }
 0x39e   : > { %3504 = vst.msk [vmem:[%s5912_s18] sm:$0xff] %vm3503_vm8, %v3465_v8  ;;  %2971 = vmatmul.f32.gmra.mxu1 %v6754_v58  ;;  %v3057_v3 = vpop.f32.mrf.mxu2  ;;  %v3246_v12 = vpop.f32.mrf.mxu3  ;;  %v6757_v8 = vld [vmem:[#allocation22_spill] sm:$0xff] }
 0x39f   : > { %v3058_v61 = vadd.f32 %v3057_v3, %v2769_v38  ;;  %v5936_v17 = vpop.f32.mrf.mxu0 }
 0x3a1   : > { %v3243_v51 = vadd.f32 %v3242_v1, %v3058_v61  ;;  %v5940_v58 = vpop.f32.mrf.mxu1 }
 0x3a3   : > { %vm3390_vm9 = vcmp.gt.f32.partialorder %v3243_v51, 0.0  ;;  %v3428_v29 = vmul.f32 0.01, %v3243_v51  ;;  %3124 = vmatmul.f32.gmra.mxu2 %v6753_v21  ;;  %3313 = vmatmul.f32.gmra.mxu3 %v6755_v49 }
 0x3a4   : > { %2717 = vmatmul.f32.gmra.mxu0 %v5680_v20  ;;  %v2781_v20 = vadd.f32 %v5789_v39, %v2554_v30  ;;  %v6759_v39 = vld [vmem:[#allocation36_spill] sm:$0xff] }
 0x3a5   : > { %v3466_v23 = vsel %vm3390_vm9, %v3243_v51, %v3428_v29 }
 0x3a6   : > { %3505 = vst.msk [vmem:[%s5912_s18 + $0x8] sm:$0xff] %vm3503_vm8, %v3466_v23  ;;  %2977 = vmatmul.f32.gmra.mxu1 %v6756_v56  ;;  %v3061_v1 = vpop.f32.mrf.mxu2  ;;  %v3250_v54 = vpop.f32.mrf.mxu3 }
 0x3a7   : > { %v3062_v41 = vadd.f32 %v3061_v1, %v2775_v6  ;;  %v2564_v1 = vadd.f32 %v5813_v18, %v5406_v45 }
 0x3a9   : > { %v3247_v21 = vadd.f32 %v3246_v12, %v3062_v41 }
 0x3ab   : > { %vm3391_vm10 = vcmp.gt.f32.partialorder %v3247_v21, 0.0  ;;  %v3429_v38 = vmul.f32 0.01, %v3247_v21  ;;  %3128 = vmatmul.f32.gmra.mxu2 %v6755_v49  ;;  %3317 = vmatmul.f32.gmra.mxu3 %v6757_v8  ;;  %v2787_v49 = vadd.f32 %v5803_v32, %v2559_v11  ;;  %v5974_v11 = vpop.f32.mrf.mxu0 }
 0x3ac   : > { %2722 = vmatmul.f32.gmra.mxu0 %v5696_v57 }
 0x3ad   : > { %v3467_v3 = vsel %vm3391_vm10, %v3247_v21, %v3429_v38  ;;  %v2569_v38 = vadd.f32 %v5828_v50, %v5427_v59 }
 0x3ae   : > { %3506 = vst.msk [vmem:[%s5912_s18 + $0x10] sm:$0xff] %vm3503_vm8, %v3467_v3  ;;  %2983 = vmatmul.f32.gmra.mxu1 %v6758_v44  ;;  %v3065_v42 = vpop.f32.mrf.mxu2  ;;  %v3254_v12 = vpop.f32.mrf.mxu3 }
 0x3af   : > { %v3066_v61 = vadd.f32 %v3065_v42, %v2781_v20  ;;  %v2574_v42 = vadd.f32 %v5842_v5, %v5448_v40  ;;  %v2579_v40 = vadd.f32 %v5855_v22, %v5469_v4  ;;  %v2584_v4 = vadd.f32 %v5869_v0, %v5490_v13 }
 0x3b0   : > { %v2589_v0 = vadd.f32 %v5884_v28, %v5511_v47  ;;  %v2594_v28 = vadd.f32 %v5902_v25, %v5532_v60  ;;  %v2599_v60 = vadd.f32 %v5920_v62, %v5553_v46  ;;  %v2604_v62 = vadd.f32 %v5936_v17, %v5574_v9 }
 0x3b1   : > { %v3251_v51 = vadd.f32 %v3250_v54, %v3066_v61  ;;  %v2793_v54 = vadd.f32 %v5818_v27, %v2564_v1  ;;  %v2609_v9 = vadd.f32 %v5974_v11, %v5595_v10 }
 0x3b3   : > { %vm3392_vm11 = vcmp.gt.f32.partialorder %v3251_v51, 0.0  ;;  %v3430_v29 = vmul.f32 0.01, %v3251_v51  ;;  %3132 = vmatmul.f32.gmra.mxu2 %v6757_v8  ;;  %3321 = vmatmul.f32.gmra.mxu3 %v6759_v39  ;;  %v2799_v8 = vadd.f32 %v5832_v2, %v2569_v38  ;;  %v5987_v22 = vpop.f32.mrf.mxu0 }
 0x3b4   : > { %v2614_v11 = vadd.f32 %v5987_v22, %v5616_v26  ;;  %v6762_v22 = vld [vmem:[#allocation69_spill] sm:$0xff] }
 0x3b5   : > { %v3468_v6 = vsel %vm3392_vm11, %v3251_v51, %v3430_v29  ;;  %v5978_v29 = vpop.f32.mrf.mxu1 }
 0x3b6   : > { %3507 = vst.msk [vmem:[%s5912_s18 + $0x18] sm:$0xff] %vm3503_vm8, %v3468_v6  ;;  %v3069_v57 = vpop.f32.mrf.mxu2  ;;  %v3258_v23 = vpop.f32.mrf.mxu3 }
 0x3b7   : > { %v3070_v56 = vadd.f32 %v3069_v57, %v2787_v49 }
 0x3b9   : > { %v3255_v37 = vadd.f32 %v3254_v12, %v3070_v56 }
 0x3bb   : > { %vm3393_vm12 = vcmp.gt.f32.partialorder %v3255_v37, 0.0  ;;  %v3431_v36 = vmul.f32 0.01, %v3255_v37  ;;  %3136 = vmatmul.f32.gmra.mxu2 %v6759_v39  ;;  %3325 = vmatmul.f32.gmra.mxu3 %v5383_v15 }
 0x3bd   : > { %v3469_v32 = vsel %vm3393_vm12, %v3255_v37, %v3431_v36 }
 0x3be   : > { %3508 = vst.msk [vmem:[%s5912_s18 + $0x20] sm:$0xff] %vm3503_vm8, %v3469_v32  ;;  %v3073_v41 = vpop.f32.mrf.mxu2  ;;  %v3262_v30 = vpop.f32.mrf.mxu3 }
 0x3bf   : > { %v3074_v21 = vadd.f32 %v3073_v41, %v2793_v54  ;;  %v5998_v32 = vpop.f32.mrf.mxu0 }
 0x3c1   : > { %v3259_v45 = vadd.f32 %v3258_v23, %v3074_v21 }
 0x3c3   : > { %vm3394_vm13 = vcmp.gt.f32.partialorder %v3259_v45, 0.0  ;;  %v3432_v18 = vmul.f32 0.01, %v3259_v45  ;;  %3140 = vmatmul.f32.gmra.mxu2 %v5383_v15  ;;  %3329 = vmatmul.f32.gmra.mxu3 %v5404_v7  ;;  %v2805_v15 = vadd.f32 %v5845_v14, %v2574_v42  ;;  %v2811_v14 = vadd.f32 %v5859_v53, %v2579_v40  ;;  %v5992_v53 = vpop.f32.mrf.mxu1 }
 0x3c5   : > { %v3470_v27 = vsel %vm3394_vm13, %v3259_v45, %v3432_v18 }
 0x3c6   : > { %3509 = vst.msk [vmem:[%s5912_s18 + $0x28] sm:$0xff] %vm3503_vm8, %v3470_v27  ;;  %v3077_v20 = vpop.f32.mrf.mxu2  ;;  %v3266_v3 = vpop.f32.mrf.mxu3 }
 0x3c7   : > { %v3078_v44 = vadd.f32 %v3077_v20, %v2799_v8 }
 0x3c9   : > { %v3263_v59 = vadd.f32 %v3262_v30, %v3078_v44 }
 0x3cb   : > { %vm3395_vm14 = vcmp.gt.f32.partialorder %v3263_v59, 0.0  ;;  %v3433_v50 = vmul.f32 0.01, %v3263_v59  ;;  %3144 = vmatmul.f32.gmra.mxu2 %v5404_v7  ;;  %3333 = vmatmul.f32.gmra.mxu3 %v5425_v19  ;;  %v6005_v38 = vpop.f32.mrf.mxu1 }
 0x3cd   : > { %v3471_v2 = vsel %vm3395_vm14, %v3263_v59, %v3433_v50 }
 0x3ce   : > { %3510 = vst.msk [vmem:[%s5912_s18 + $0x30] sm:$0xff] %vm3503_vm8, %v3471_v2  ;;  %v3081_v12 = vpop.f32.mrf.mxu2  ;;  %v3270_v61 = vpop.f32.mrf.mxu3 }
 0x3cf   : > { %v3082_v51 = vadd.f32 %v3081_v12, %v2805_v15 }
 0x3d1   : > { %v3267_v5 = vadd.f32 %v3266_v3, %v3082_v51 }
 0x3d3   : > { %vm3396_vm15 = vcmp.gt.f32.partialorder %v3267_v5, 0.0  ;;  %v3434_v7 = vmul.f32 0.01, %v3267_v5  ;;  %3148 = vmatmul.f32.gmra.mxu2 %v5425_v19  ;;  %3337 = vmatmul.f32.gmra.mxu3 %v5446_v43  ;;  %v2817_v19 = vadd.f32 %v5874_v33, %v2584_v4  ;;  %v2823_v33 = vadd.f32 %v5888_v35, %v2589_v0  ;;  %v6012_v35 = vpop.f32.mrf.mxu0  ;;  %v6018_v25 = vpop.f32.mrf.mxu1 }
 0x3d5   : > { %v3472_v39 = vsel %vm3396_vm15, %v3267_v5, %v3434_v7 }
 0x3d6   : > { %3511 = vst.msk [vmem:[%s5912_s18 + $0x38] sm:$0xff] %vm3503_vm8, %v3472_v39  ;;  %v3085_v49 = vpop.f32.mrf.mxu2  ;;  %v3274_v6 = vpop.f32.mrf.mxu3 }
 0x3d7   : > { %v3086_v57 = vadd.f32 %v3085_v49, %v2811_v14 }
 0x3d9   : > { %v3271_v23 = vadd.f32 %v3270_v61, %v3086_v57 }
 0x3db   : > { %vm3397_vm0 = vcmp.gt.f32.partialorder %v3271_v23, 0.0  ;;  %v3435_v56 = vmul.f32 0.01, %v3271_v23  ;;  %3152 = vmatmul.f32.gmra.mxu2 %v5446_v43  ;;  %3341 = vmatmul.f32.gmra.mxu3 %v5467_v48  ;;  %v6025_v15 = vpop.f32.mrf.mxu0  ;;  %v6029_v12 = vpop.f32.mrf.mxu1 }
 0x3dd   : > { %v3473_v1 = vsel %vm3397_vm0, %v3271_v23, %v3435_v56  ;;  %v2853_v56 = vadd.f32 %v5992_v53, %v2614_v11  ;;  %v6771_v11 = vld [vmem:[#allocation74_spill] sm:$0xff] }
 0x3de   : > { %3512 = vst.msk [vmem:[%s5912_s18 + $0x40] sm:$0xff] %vm3503_vm8, %v3473_v1  ;;  %v3089_v37 = vpop.f32.mrf.mxu2  ;;  %v3278_v36 = vpop.f32.mrf.mxu3 }
 0x3df   : > { %v3090_v13 = vadd.f32 %v3089_v37, %v2817_v19 }
 0x3e1   : > { %v3275_v54 = vadd.f32 %v3274_v6, %v3090_v13  ;;  %v2619_v13 = vadd.f32 %v5998_v32, %v6762_v22 }
 0x3e3   : > { %vm3398_vm1 = vcmp.gt.f32.partialorder %v3275_v54, 0.0  ;;  %v3436_v43 = vmul.f32 0.01, %v3275_v54  ;;  %3156 = vmatmul.f32.gmra.mxu2 %v5467_v48  ;;  %3345 = vmatmul.f32.gmra.mxu3 %v5488_v31  ;;  %v2829_v48 = vadd.f32 %v5906_v24, %v2594_v28  ;;  %v2835_v24 = vadd.f32 %v5922_v63, %v2599_v60  ;;  %v6038_v17 = vpop.f32.mrf.mxu0  ;;  %v6043_v39 = vpop.f32.mrf.mxu1  ;;  %v6764_v28 = vld [vmem:[#allocation28_spill] sm:$0xff] }
 0x3e4   : > { %v2841_v63 = vadd.f32 %v5940_v58, %v2604_v62  ;;  %v2847_v58 = vadd.f32 %v5978_v29, %v2609_v9  ;;  %v6761_v29 = vld [vmem:[#allocation25_spill] sm:$0xff]  ;;  %v2859_v53 = vadd.f32 %v6005_v38, %v2619_v13  ;;  %v2624_v32 = vadd.f32 %v6012_v35, %v6764_v28 }
 0x3e5   : > { %v3474_v41 = vsel %vm3398_vm1, %v3275_v54, %v3436_v43  ;;  %v6763_v43 = vld [vmem:[#allocation62_spill] sm:$0xff] }
 0x3e6   : > { %3513 = vst.msk [vmem:[%s5912_s18 + $0x48] sm:$0xff] %vm3503_vm8, %v3474_v41  ;;  %v3093_v30 = vpop.f32.mrf.mxu2  ;;  %v3282_v21 = vpop.f32.mrf.mxu3  ;;  %v2865_v38 = vadd.f32 %v6018_v25, %v2624_v32 }
 0x3e7   : > { %v3094_v47 = vadd.f32 %v3093_v30, %v2823_v33 }
 0x3e9   : > { %v3279_v45 = vadd.f32 %v3278_v36, %v3094_v47 }
 0x3eb   : > { %vm3399_vm2 = vcmp.gt.f32.partialorder %v3279_v45, 0.0  ;;  %v3437_v18 = vmul.f32 0.01, %v3279_v45  ;;  %3160 = vmatmul.f32.gmra.mxu2 %v5488_v31  ;;  %3349 = vmatmul.f32.gmra.mxu3 %v5509_v34  ;;  %v6049_v23 = vpop.f32.mrf.mxu0  ;;  %v6056_v36 = vpop.f32.mrf.mxu1 }
 0x3ed   : > { %v3475_v8 = vsel %vm3399_vm2, %v3279_v45, %v3437_v18 }
 0x3ee   : > { %3514 = vst.msk [vmem:[%s5912_s18 + $0x50] sm:$0xff] %vm3503_vm8, %v3475_v8  ;;  %v3097_v27 = vpop.f32.mrf.mxu2  ;;  %v3286_v20 = vpop.f32.mrf.mxu3  ;;  %v6765_v8 = vld [vmem:[#allocation39_spill] sm:$0xff] }
 0x3ef   : > { %v3098_v3 = vadd.f32 %v3097_v27, %v2829_v48 }
 0x3f1   : > { %v3283_v44 = vadd.f32 %v3282_v21, %v3098_v3 }
 0x3f3   : > { %vm3400_vm3 = vcmp.gt.f32.partialorder %v3283_v44, 0.0  ;;  %v3438_v31 = vmul.f32 0.01, %v3283_v44  ;;  %3164 = vmatmul.f32.gmra.mxu2 %v5509_v34  ;;  %3353 = vmatmul.f32.gmra.mxu3 %v5530_v52  ;;  %v2643_v33 = vpop.f32.mrf.mxu0  ;;  %v2888_v45 = vpop.f32.mrf.mxu1 }
 0x3f5   : > { %v3476_v42 = vsel %vm3400_vm3, %v3283_v44, %v3438_v31  ;;  %v6766_v31 = vld [vmem:[#allocation41_spill] sm:$0xff] }
 0x3f6   : > { %3515 = vst.msk [vmem:[%s5912_s18 + $0x58] sm:$0xff] %vm3503_vm8, %v3476_v42  ;;  %v3101_v59 = vpop.f32.mrf.mxu2  ;;  %v3290_v50 = vpop.f32.mrf.mxu3  ;;  %v2629_v35 = vadd.f32 %v6025_v15, %v6766_v31 }
 0x3f7   : > { %v3102_v46 = vadd.f32 %v3101_v59, %v2835_v24 }
 0x3f8   : > { %v2871_v25 = vadd.f32 %v6029_v12, %v2629_v35 }
 0x3f9   : > { %v3287_v2 = vadd.f32 %v3286_v20, %v3102_v46 }
 0x3fb   : > { %vm3401_vm4 = vcmp.gt.f32.partialorder %v3287_v2, 0.0  ;;  %v3439_v34 = vmul.f32 0.01, %v3287_v2  ;;  %3168 = vmatmul.f32.gmra.mxu2 %v5530_v52  ;;  %3357 = vmatmul.f32.gmra.mxu3 %v5551_v16  ;;  %v6760_v52 = vld [vmem:[#allocation38_spill] sm:$0xff]  ;;  %v2648_v60 = vpop.f32.mrf.mxu0  ;;  %v2894_v42 = vpop.f32.mrf.mxu1 }
 0x3fd   : > { %v3477_v61 = vsel %vm3401_vm4, %v3287_v2, %v3439_v34 }
 0x3fe   : > { %3516 = vst.msk [vmem:[%s5912_s18 + $0x60] sm:$0xff] %vm3503_vm8, %v3477_v61  ;;  %v3105_v51 = vpop.f32.mrf.mxu2  ;;  %v3294_v40 = vpop.f32.mrf.mxu3 }
 0x3ff   : > { %v3106_v5 = vadd.f32 %v3105_v51, %v2841_v63  ;;  %v6768_v63 = vld [vmem:[#allocation42_spill] sm:$0xff] }
 0x400   : > { %v2634_v15 = vadd.f32 %v6038_v17, %v6768_v63 }
 0x401   : > { %v3291_v7 = vadd.f32 %v3290_v50, %v3106_v5  ;;  %v6767_v50 = vld [vmem:[#allocation40_spill] sm:$0xff]  ;;  %v6769_v5 = vld [vmem:[#allocation66_spill] sm:$0xff] }
 0x402   : > { %v2877_v12 = vadd.f32 %v6043_v39, %v2634_v15 }
 0x403   : > { %vm3402_vm5 = vcmp.gt.f32.partialorder %v3291_v7, 0.0  ;;  %v3440_v14 = vmul.f32 0.01, %v3291_v7  ;;  %3172 = vmatmul.f32.gmra.mxu2 %v5551_v16  ;;  %3361 = vmatmul.f32.gmra.mxu3 %v6760_v52  ;;  %v2653_v61 = vpop.f32.mrf.mxu0  ;;  %v2900_v9 = vpop.f32.mrf.mxu1 }
 0x405   : > { %v3478_v49 = vsel %vm3402_vm5, %v3291_v7, %v3440_v14 }
 0x406   : > { %3517 = vst.msk [vmem:[%s5912_s18 + $0x68] sm:$0xff] %vm3503_vm8, %v3478_v49  ;;  %v3109_v6 = vpop.f32.mrf.mxu2  ;;  %v3298_v57 = vpop.f32.mrf.mxu3  ;;  %v6770_v49 = vld [vmem:[#allocation31_spill] sm:$0xff] }
 0x407   : > { %v3110_v10 = vadd.f32 %v3109_v6, %v2847_v58  ;;  %v2639_v17 = vadd.f32 %v6049_v23, %v6770_v49 }
 0x409   : > { %v3295_v4 = vadd.f32 %v3294_v40, %v3110_v10  ;;  %v2883_v39 = vadd.f32 %v6056_v36, %v2639_v17 }
 0x40b   : > { %vm3403_vm6 = vcmp.gt.f32.partialorder %v3295_v4, 0.0  ;;  %v3441_v16 = vmul.f32 0.01, %v3295_v4  ;;  %3176 = vmatmul.f32.gmra.mxu2 %v6760_v52  ;;  %3365 = vmatmul.f32.gmra.mxu3 %v6761_v29 }
 0x40d   : > { %v3479_v19 = vsel %vm3403_vm6, %v3295_v4, %v3441_v16 }
 0x40e   : > { %3518 = vst.msk [vmem:[%s5912_s18 + $0x70] sm:$0xff] %vm3503_vm8, %v3479_v19  ;;  %v3113_v1 = vpop.f32.mrf.mxu2  ;;  %v3302_v37 = vpop.f32.mrf.mxu3 }
 0x40f   : > { %v3114_v26 = vadd.f32 %v3113_v1, %v2853_v56  ;;  %v2906_v56 = vpop.f32.mrf.mxu1  ;;  %v6772_v1 = vld [vmem:[#allocation71_spill] sm:$0xff] }
 0x410   : > { %v2644_v23 = vadd.f32 %v2643_v33, %v6772_v1  ;;  %v6778_v1 = vld [vmem:[#allocation37_spill] sm:$0xff] }
 0x411   : > { %v3299_v0 = vadd.f32 %v3298_v57, %v3114_v26  ;;  %v2658_v57 = vpop.f32.mrf.mxu0 }
 0x412   : > { %v2889_v22 = vadd.f32 %v2888_v45, %v2644_v23 }
 0x413   : > { %vm3404_vm7 = vcmp.gt.f32.partialorder %v3299_v0, 0.0  ;;  %v3442_v54 = vmul.f32 0.01, %v3299_v0  ;;  %3180 = vmatmul.f32.gmra.mxu2 %v6761_v29  ;;  %3369 = vmatmul.f32.gmra.mxu3 %v6763_v43 }
 0x415   : > { %v3480_v41 = vsel %vm3404_vm7, %v3299_v0, %v3442_v54 }
 0x416   : > { %3519 = vst.msk [vmem:[%s5912_s18 + $0x78] sm:$0xff] %vm3503_vm8, %v3480_v41  ;;  %v3117_v30 = vpop.f32.mrf.mxu2  ;;  %v3306_v21 = vpop.f32.mrf.mxu3 }
 0x417   : > { %v3118_v47 = vadd.f32 %v3117_v30, %v2859_v53  ;;  %v6773_v53 = vld [vmem:[#allocation43_spill] sm:$0xff]  ;;  %v2912_v30 = vpop.f32.mrf.mxu1 }
 0x418   : > { %v2649_v41 = vadd.f32 %v2648_v60, %v6773_v53 }
 0x419   : > { %v3303_v18 = vadd.f32 %v3302_v37, %v3118_v47  ;;  %v2663_v13 = vpop.f32.mrf.mxu0 }
 0x41a   : > { %v2895_v47 = vadd.f32 %v2894_v42, %v2649_v41  ;;  %v6775_v42 = vld [vmem:[#allocation34_spill] sm:$0xff]  ;;  %v6779_v41 = vld [vmem:[#allocation47_spill] sm:$0xff] }
 0x41b   : > { %vm3405_vm9 = vcmp.gt.f32.partialorder %v3303_v18, 0.0  ;;  %v3443_v48 = vmul.f32 0.01, %v3303_v18  ;;  %3184 = vmatmul.f32.gmra.mxu2 %v6763_v43  ;;  %3373 = vmatmul.f32.gmra.mxu3 %v6765_v8 }
 0x41d   : > { %v3481_v27 = vsel %vm3405_vm9, %v3303_v18, %v3443_v48 }
 0x41e   : > { %3520 = vst.msk [vmem:[%s5912_s18 + $0x80] sm:$0xff] %vm3503_vm8, %v3481_v27  ;;  %v3121_v20 = vpop.f32.mrf.mxu2  ;;  %v3310_v3 = vpop.f32.mrf.mxu3 }
 0x41f   : > { %v3122_v44 = vadd.f32 %v3121_v20, %v2865_v38  ;;  %v2918_v20 = vpop.f32.mrf.mxu1 }
 0x421   : > { %v3307_v24 = vadd.f32 %v3306_v21, %v3122_v44  ;;  %v2668_v18 = vpop.f32.mrf.mxu0 }
 0x423   : > { %vm3406_vm10 = vcmp.gt.f32.partialorder %v3307_v24, 0.0  ;;  %v3444_v59 = vmul.f32 0.01, %v3307_v24  ;;  %3188 = vmatmul.f32.gmra.mxu2 %v6765_v8  ;;  %3377 = vmatmul.f32.gmra.mxu3 %v6767_v50  ;;  %v6774_v8 = vld [vmem:[#allocation44_spill] sm:$0xff] }
 0x424   : > { %v2654_v38 = vadd.f32 %v2653_v61, %v6774_v8  ;;  %v6780_v8 = vld [vmem:[#allocation48_spill] sm:$0xff] }
 0x425   : > { %v3482_v46 = vsel %vm3406_vm10, %v3307_v24, %v3444_v59  ;;  %v2659_v59 = vadd.f32 %v2658_v57, %v6775_v42 }
 0x426   : > { %3521 = vst.msk [vmem:[%s5912_s18 + $0x88] sm:$0xff] %vm3503_vm8, %v3482_v46  ;;  %v3125_v62 = vpop.f32.mrf.mxu2  ;;  %v3314_v2 = vpop.f32.mrf.mxu3  ;;  %v2901_v60 = vadd.f32 %v2900_v9, %v2654_v38 }
 0x427   : > { %v3126_v34 = vadd.f32 %v3125_v62, %v2871_v25  ;;  %v2907_v62 = vadd.f32 %v2906_v56, %v2659_v59  ;;  %v6781_v59 = vld [vmem:[#allocation49_spill] sm:$0xff] }
 0x429   : > { %v3311_v51 = vadd.f32 %v3310_v3, %v3126_v34 }
 0x42b   : > { %vm3407_vm11 = vcmp.gt.f32.partialorder %v3311_v51, 0.0  ;;  %v3445_v40 = vmul.f32 0.01, %v3311_v51  ;;  %3192 = vmatmul.f32.gmra.mxu2 %v6767_v50  ;;  %3381 = vmatmul.f32.gmra.mxu3 %v6769_v5  ;;  %v2673_v50 = vpop.f32.mrf.mxu0 }
 0x42c   : > { %v2674_v23 = vadd.f32 %v2673_v50, %v6778_v1 }
 0x42d   : > { %v3483_v7 = vsel %vm3407_vm11, %v3311_v51, %v3445_v40  ;;  %v6776_v51 = vld [vmem:[#allocation45_spill] sm:$0xff] }
 0x42e   : > { %3522 = vst.msk [vmem:[%s5912_s18 + $0x90] sm:$0xff] %vm3503_vm8, %v3483_v7  ;;  %v3129_v14 = vpop.f32.mrf.mxu2  ;;  %v3318_v52 = vpop.f32.mrf.mxu3  ;;  %v2664_v40 = vadd.f32 %v2663_v13, %v6776_v51 }
 0x42f   : > { %v3130_v58 = vadd.f32 %v3129_v14, %v2877_v12 }
 0x430   : > { %v2913_v7 = vadd.f32 %v2912_v30, %v2664_v40  ;;  %v6782_v40 = vld [vmem:[#allocation50_spill] sm:$0xff] }
 0x431   : > { %v3315_v6 = vadd.f32 %v3314_v2, %v3130_v58  ;;  %v2924_v2 = vpop.f32.mrf.mxu1 }
 0x432   : > { %v2925_v13 = vadd.f32 %v2924_v2, %v2674_v23  ;;  %v6784_v23 = vld [vmem:[#allocation52_spill] sm:$0xff] }
 0x433   : > { %vm3408_vm12 = vcmp.gt.f32.partialorder %v3315_v6, 0.0  ;;  %v3446_v10 = vmul.f32 0.01, %v3315_v6  ;;  %3196 = vmatmul.f32.gmra.mxu2 %v6769_v5  ;;  %3385 = vmatmul.f32.gmra.mxu3 %v6771_v11  ;;  %v2678_v12 = vpop.f32.mrf.mxu0 }
 0x434   : > { %v2679_v30 = vadd.f32 %v2678_v12, %v6779_v41 }
 0x435   : > { %v3484_v4 = vsel %vm3408_vm12, %v3315_v6, %v3446_v10  ;;  %v6777_v6 = vld [vmem:[#allocation46_spill] sm:$0xff] }
 0x436   : > { %3523 = vst.msk [vmem:[%s5912_s18 + $0x98] sm:$0xff] %vm3503_vm8, %v3484_v4  ;;  %v3133_v16 = vpop.f32.mrf.mxu2  ;;  %v3322_v29 = vpop.f32.mrf.mxu3  ;;  %v2669_v57 = vadd.f32 %v2668_v18, %v6777_v6  ;;  %v6783_v6 = vld [vmem:[#allocation51_spill] sm:$0xff] }
 0x437   : > { %v3134_v19 = vadd.f32 %v3133_v16, %v2883_v39 }
 0x438   : > { %v2919_v39 = vadd.f32 %v2918_v20, %v2669_v57 }
 0x439   : > { %v3319_v37 = vadd.f32 %v3318_v52, %v3134_v19  ;;  %v2930_v49 = vpop.f32.mrf.mxu1 }
 0x43b   : > { %vm3409_vm13 = vcmp.gt.f32.partialorder %v3319_v37, 0.0  ;;  %v3447_v26 = vmul.f32 0.01, %v3319_v37  ;;  %3200 = vmatmul.f32.gmra.mxu2 %v6771_v11  ;;  %v2683_v4 = vpop.f32.mrf.mxu0 }
 0x43c   : > { %v2684_v38 = vadd.f32 %v2683_v4, %v6780_v8  ;;  %v6786_v8 = vld [vmem:[#allocation54_spill] sm:$0xff] }
 0x43d   : > { %v3485_v0 = vsel %vm3409_vm13, %v3319_v37, %v3447_v26 }
 0x43e   : > { %3524 = vst.msk [vmem:[%s5912_s18 + $0xa0] sm:$0xff] %vm3503_vm8, %v3485_v0  ;;  %v3137_v36 = vpop.f32.mrf.mxu2  ;;  %v3326_v54 = vpop.f32.mrf.mxu3 }
 0x43f   : > { %v3138_v43 = vadd.f32 %v3137_v36, %v2889_v22 }
 0x441   : > { %v3323_v21 = vadd.f32 %v3322_v29, %v3138_v43  ;;  %v2936_v37 = vpop.f32.mrf.mxu1 }
 0x443   : > { %vm3410_vm14 = vcmp.gt.f32.partialorder %v3323_v21, 0.0  ;;  %v3448_v33 = vmul.f32 0.01, %v3323_v21  ;;  %v2688_v43 = vpop.f32.mrf.mxu0 }
 0x444   : > { %v2689_v50 = vadd.f32 %v2688_v43, %v6781_v59  ;;  %v6787_v59 = vld [vmem:[#allocation55_spill] sm:$0xff] }
 0x445   : > { %v3486_v28 = vsel %vm3410_vm14, %v3323_v21, %v3448_v33 }
 0x446   : > { %3525 = vst.msk [vmem:[%s5912_s18 + $0xa8] sm:$0xff] %vm3503_vm8, %v3486_v28  ;;  %v3141_v32 = vpop.f32.mrf.mxu2  ;;  %v3330_v45 = vpop.f32.mrf.mxu3  ;;  %v2931_v28 = vadd.f32 %v2930_v49, %v2679_v30 }
 0x447   : > { %v3142_v48 = vadd.f32 %v3141_v32, %v2895_v47 }
 0x449   : > { %v3327_v27 = vadd.f32 %v3326_v54, %v3142_v48  ;;  %v2942_v33 = vpop.f32.mrf.mxu1 }
 0x44a   : > { %v2943_v2 = vadd.f32 %v2942_v33, %v2689_v50 }
 0x44b   : > { %vm3411_vm15 = vcmp.gt.f32.partialorder %v3327_v27, 0.0  ;;  %v3449_v3 = vmul.f32 0.01, %v3327_v27 }
 0x44d   : > { %v3487_v44 = vsel %vm3411_vm15, %v3327_v27, %v3449_v3  ;;  %v2693_v27 = vpop.f32.mrf.mxu0 }
 0x44e   : > { %3526 = vst.msk [vmem:[%s5912_s18 + $0xb0] sm:$0xff] %vm3503_vm8, %v3487_v44  ;;  %v3145_v31 = vpop.f32.mrf.mxu2  ;;  %v3334_v35 = vpop.f32.mrf.mxu3 }
 0x44f   : > { %v3146_v24 = vadd.f32 %v3145_v31, %v2901_v60  ;;  %v2937_v60 = vadd.f32 %v2936_v37, %v2684_v38 }
 0x451   : > { %v3331_v25 = vadd.f32 %v3330_v45, %v3146_v24  ;;  %v2948_v44 = vpop.f32.mrf.mxu1 }
 0x453   : > { %vm3412_vm0 = vcmp.gt.f32.partialorder %v3331_v25, 0.0  ;;  %v3450_v46 = vmul.f32 0.01, %v3331_v25 }
 0x455   : > { %v3488_v34 = vsel %vm3412_vm0, %v3331_v25, %v3450_v46  ;;  %v2698_v46 = vpop.f32.mrf.mxu0 }
 0x456   : > { %3527 = vst.msk [vmem:[%s5912_s18 + $0xb8] sm:$0xff] %vm3503_vm8, %v3488_v34  ;;  %v3149_v63 = vpop.f32.mrf.mxu2  ;;  %v3338_v15 = vpop.f32.mrf.mxu3  ;;  %v2699_v57 = vadd.f32 %v2698_v46, %v6783_v6 }
 0x457   : > { %v3150_v61 = vadd.f32 %v3149_v63, %v2907_v62 }
 0x459   : > { %v3335_v5 = vadd.f32 %v3334_v35, %v3150_v61  ;;  %v2954_v51 = vpop.f32.mrf.mxu1 }
 0x45a   : > { %v2955_v4 = vadd.f32 %v2954_v51, %v2699_v57 }
 0x45b   : > { %vm3413_vm1 = vcmp.gt.f32.partialorder %v3335_v5, 0.0  ;;  %v3451_v9 = vmul.f32 0.01, %v3335_v5 }
 0x45d   : > { %v3489_v14 = vsel %vm3413_vm1, %v3335_v5, %v3451_v9  ;;  %v2694_v5 = vadd.f32 %v2693_v27, %v6782_v40 }
 0x45e   : > { %3528 = vst.msk [vmem:[%s5912_s18 + $0xc0] sm:$0xff] %vm3503_vm8, %v3489_v14  ;;  %v3153_v52 = vpop.f32.mrf.mxu2  ;;  %v3342_v58 = vpop.f32.mrf.mxu3 }
 0x45f   : > { %v3154_v17 = vadd.f32 %v3153_v52, %v2913_v7  ;;  %v2949_v7 = vadd.f32 %v2948_v44, %v2694_v5  ;;  %v2703_v14 = vpop.f32.mrf.mxu0 }
 0x460   : > { %v2704_v37 = vadd.f32 %v2703_v14, %v6784_v23 }
 0x461   : > { %v3339_v10 = vadd.f32 %v3338_v15, %v3154_v17 }
 0x463   : > { %vm3414_vm2 = vcmp.gt.f32.partialorder %v3339_v10, 0.0  ;;  %v3452_v11 = vmul.f32 0.01, %v3339_v10 }
 0x465   : > { %v3490_v16 = vsel %vm3414_vm2, %v3339_v10, %v3452_v11  ;;  %v2960_v11 = vpop.f32.mrf.mxu1 }
 0x466   : > { %3529 = vst.msk [vmem:[%s5912_s18 + $0xc8] sm:$0xff] %vm3503_vm8, %v3490_v16  ;;  %v3157_v29 = vpop.f32.mrf.mxu2  ;;  %v3346_v56 = vpop.f32.mrf.mxu3 }
 0x467   : > { %v3158_v19 = vadd.f32 %v3157_v29, %v2919_v39 }
 0x469   : > { %v3343_v26 = vadd.f32 %v3342_v58, %v3158_v19 }
 0x46b   : > { %vm3415_vm3 = vcmp.gt.f32.partialorder %v3343_v26, 0.0  ;;  %v3453_v22 = vmul.f32 0.01, %v3343_v26 }
 0x46d   : > { %v3491_v0 = vsel %vm3415_vm3, %v3343_v26, %v3453_v22 }
 0x46e   : > { %3530 = vst.msk [vmem:[%s5912_s18 + $0xd0] sm:$0xff] %vm3503_vm8, %v3491_v0  ;;  %v3161_v36 = vpop.f32.mrf.mxu2  ;;  %v3350_v54 = vpop.f32.mrf.mxu3  ;;  %v2961_v0 = vadd.f32 %v2960_v11, %v2704_v37 }
 0x46f   : > { %v3162_v53 = vadd.f32 %v3161_v36, %v2925_v13  ;;  %v2966_v13 = vpop.f32.mrf.mxu1 }
 0x471   : > { %v3347_v21 = vadd.f32 %v3346_v56, %v3162_v53  ;;  %v2708_v56 = vpop.f32.mrf.mxu0  ;;  %v6785_v53 = vld [vmem:[#allocation53_spill] sm:$0xff] }
 0x472   : > { %v2709_v41 = vadd.f32 %v2708_v56, %v6785_v53 }
 0x473   : > { %vm3416_vm4 = vcmp.gt.f32.partialorder %v3347_v21, 0.0  ;;  %v3454_v47 = vmul.f32 0.01, %v3347_v21 }
 0x475   : > { %v3492_v32 = vsel %vm3416_vm4, %v3347_v21, %v3454_v47 }
 0x476   : > { %3531 = vst.msk [vmem:[%s5912_s18 + $0xd8] sm:$0xff] %vm3503_vm8, %v3492_v32  ;;  %v3165_v45 = vpop.f32.mrf.mxu2  ;;  %v3354_v18 = vpop.f32.mrf.mxu3 }
 0x477   : > { %v3166_v48 = vadd.f32 %v3165_v45, %v2931_v28  ;;  %v2967_v28 = vadd.f32 %v2966_v13, %v2709_v41  ;;  %v2972_v45 = vpop.f32.mrf.mxu1 }
 0x479   : > { %v3351_v20 = vadd.f32 %v3350_v54, %v3166_v48  ;;  %v2713_v30 = vpop.f32.mrf.mxu0 }
 0x47a   : > { %v2714_v38 = vadd.f32 %v2713_v30, %v6786_v8 }
 0x47b   : > { %vm3417_vm5 = vcmp.gt.f32.partialorder %v3351_v20, 0.0  ;;  %v3455_v3 = vmul.f32 0.01, %v3351_v20 }
 0x47c   : > { %v2973_v44 = vadd.f32 %v2972_v45, %v2714_v38 }
 0x47d   : > { %v3493_v31 = vsel %vm3417_vm5, %v3351_v20, %v3455_v3 }
 0x47e   : > { %3532 = vst.msk [vmem:[%s5912_s18 + $0xe0] sm:$0xff] %vm3503_vm8, %v3493_v31  ;;  %v3169_v35 = vpop.f32.mrf.mxu2  ;;  %v3358_v24 = vpop.f32.mrf.mxu3 }
 0x47f   : > { %v3170_v42 = vadd.f32 %v3169_v35, %v2937_v60 }
 0x481   : > { %v3355_v25 = vadd.f32 %v3354_v18, %v3170_v42  ;;  %v2718_v20 = vpop.f32.mrf.mxu0  ;;  %v2978_v42 = vpop.f32.mrf.mxu1 }
 0x482   : > { %v2719_v50 = vadd.f32 %v2718_v20, %v6787_v59 }
 0x483   : > { %vm3418_vm6 = vcmp.gt.f32.partialorder %v3355_v25, 0.0  ;;  %v3456_v62 = vmul.f32 0.01, %v3355_v25 }
 0x485   : > { %v3494_v34 = vsel %vm3418_vm6, %v3355_v25, %v3456_v62  ;;  %v2979_v62 = vadd.f32 %v2978_v42, %v2719_v50 }
 0x486   : > { %3533 = vst.msk [vmem:[%s5912_s18 + $0xe8] sm:$0xff] %vm3503_vm8, %v3494_v34  ;;  %v3173_v63 = vpop.f32.mrf.mxu2  ;;  %v3362_v15 = vpop.f32.mrf.mxu3 }
 0x487   : > { %v3174_v61 = vadd.f32 %v3173_v63, %v2943_v2 }
 0x489   : > { %v3359_v12 = vadd.f32 %v3358_v24, %v3174_v61  ;;  %v2723_v2 = vpop.f32.mrf.mxu0  ;;  %v2984_v5 = vpop.f32.mrf.mxu1 }
 0x48a   : > { %v2724_v51 = vadd.f32 %v2723_v2, %v5893_v55 }
 0x48b   : > { %vm3419_vm7 = vcmp.gt.f32.partialorder %v3359_v12, 0.0  ;;  %v3457_v9 = vmul.f32 0.01, %v3359_v12 }
 0x48d   : > { %v3495_v52 = vsel %vm3419_vm7, %v3359_v12, %v3457_v9  ;;  %v2985_v9 = vadd.f32 %v2984_v5, %v2724_v51 }
 0x48e   : > { %3534 = vst.msk [vmem:[%s5912_s18 + $0xf0] sm:$0xff] %vm3503_vm8, %v3495_v52  ;;  %v3177_v58 = vpop.f32.mrf.mxu2  ;;  %v3366_v49 = vpop.f32.mrf.mxu3 }
 0x48f   : > { %v3178_v17 = vadd.f32 %v3177_v58, %v2949_v7 }
 0x491   : > { %v3363_v10 = vadd.f32 %v3362_v15, %v3178_v17 }
 0x493   : > { %vm3420_vm9 = vcmp.gt.f32.partialorder %v3363_v10, 0.0  ;;  %v3458_v39 = vmul.f32 0.01, %v3363_v10 }
 0x495   : > { %v3496_v16 = vsel %vm3420_vm9, %v3363_v10, %v3458_v39 }
 0x496   : > { %3535 = vst.msk [vmem:[%s5912_s18 + $0xf8] sm:$0xff] %vm3503_vm8, %v3496_v16  ;;  %v3181_v29 = vpop.f32.mrf.mxu2  ;;  %v3370_v1 = vpop.f32.mrf.mxu3 }
 0x497   : > { %v3182_v19 = vadd.f32 %v3181_v29, %v2955_v4 }
 0x499   : > { %v3367_v26 = vadd.f32 %v3366_v49, %v3182_v19 }
 0x49b   : > { %vm3421_vm10 = vcmp.gt.f32.partialorder %v3367_v26, 0.0  ;;  %v3459_v22 = vmul.f32 0.01, %v3367_v26 }
 0x49d   : > { %v3497_v36 = vsel %vm3421_vm10, %v3367_v26, %v3459_v22 }
 0x49e   : > { %3536 = vst.msk [vmem:[%s5912_s18 + $0x100] sm:$0xff] %vm3503_vm8, %v3497_v36  ;;  %v3185_v54 = vpop.f32.mrf.mxu2  ;;  %v3374_v33 = vpop.f32.mrf.mxu3 }
 0x49f   : > { %v3186_v43 = vadd.f32 %v3185_v54, %v2961_v0 }
 0x4a1   : > { %v3371_v21 = vadd.f32 %v3370_v1, %v3186_v43 }
 0x4a3   : > { %vm3422_vm11 = vcmp.gt.f32.partialorder %v3371_v21, 0.0  ;;  %v3460_v47 = vmul.f32 0.01, %v3371_v21 }
 0x4a5   : > { %v3498_v32 = vsel %vm3422_vm11, %v3371_v21, %v3460_v47 }
 0x4a6   : > { %3537 = vst.msk [vmem:[%s5912_s18 + $0x108] sm:$0xff] %vm3503_vm8, %v3498_v32  ;;  %v3189_v18 = vpop.f32.mrf.mxu2  ;;  %v3378_v60 = vpop.f32.mrf.mxu3 }
 0x4a7   : > { %v3190_v48 = vadd.f32 %v3189_v18, %v2967_v28 }
 0x4a9   : > { %v3375_v27 = vadd.f32 %v3374_v33, %v3190_v48 }
 0x4ab   : > { %vm3423_vm12 = vcmp.gt.f32.partialorder %v3375_v27, 0.0  ;;  %v3461_v3 = vmul.f32 0.01, %v3375_v27 }
 0x4ad   : > { %v3499_v31 = vsel %vm3423_vm12, %v3375_v27, %v3461_v3 }
 0x4ae   : > { %3538 = vst.msk [vmem:[%s5912_s18 + $0x110] sm:$0xff] %vm3503_vm8, %v3499_v31  ;;  %v3193_v35 = vpop.f32.mrf.mxu2  ;;  %v3382_v63 = vpop.f32.mrf.mxu3 }
 0x4af   : > { %v3194_v24 = vadd.f32 %v3193_v35, %v2973_v44 }
 0x4b1   : > { %v3379_v25 = vadd.f32 %v3378_v60, %v3194_v24 }
 0x4b3   : > { %vm3424_vm13 = vcmp.gt.f32.partialorder %v3379_v25, 0.0  ;;  %v3462_v46 = vmul.f32 0.01, %v3379_v25 }
 0x4b5   : > { %v3500_v34 = vsel %vm3424_vm13, %v3379_v25, %v3462_v46 }
 0x4b6   : > { %3539 = vst.msk [vmem:[%s5912_s18 + $0x118] sm:$0xff] %vm3503_vm8, %v3500_v34  ;;  %v3197_v15 = vpop.f32.mrf.mxu2  ;;  %v3386_v58 = vpop.f32.mrf.mxu3 }
 0x4b7   : > { %v3198_v61 = vadd.f32 %v3197_v15, %v2979_v62 }
 0x4b9   : > { %v3383_v40 = vadd.f32 %v3382_v63, %v3198_v61 }
 0x4bb   : > { %vm3425_vm14 = vcmp.gt.f32.partialorder %v3383_v40, 0.0  ;;  %v3463_v12 = vmul.f32 0.01, %v3383_v40 }
 0x4bd   : > { %v3501_v7 = vsel %vm3425_vm14, %v3383_v40, %v3463_v12 }
 0x4be   : > { %3540 = vst.msk [vmem:[%s5912_s18 + $0x120] sm:$0xff] %vm3503_vm8, %v3501_v7  ;;  %v3201_v14 = vpop.f32.mrf.mxu2 }
 0x4bf   : > { %v3202_v52 = vadd.f32 %v3201_v14, %v2985_v9 }
 0x4c1   : > { %v3387_v49 = vadd.f32 %v3386_v58, %v3202_v52 }
 0x4c2   : > { %3548 = sbr.rel (!%p4142_p4) target bundleno = 1287 (0x507), region = 44 }
 0x4c3   : > { %vm3426_vm15 = vcmp.gt.f32.partialorder %v3387_v49, 0.0  ;;  %v3464_v17 = vmul.f32 0.01, %v3387_v49 }
 0x4c5   : > { %v3502_v6 = vsel %vm3426_vm15, %v3387_v49, %v3464_v17 }
 0x4c6   : > { %3541 = vst.msk [vmem:[%s5912_s18 + $0x128] sm:$0xff] %vm3503_vm8, %v3502_v6 }
 0x4c7   : > { %s6797_s10 = smov (!%p3551_p8, %s3550_s10), 38 }
 0x4c8   : > { %s3887_s15 = sshll.u32 %s6797_s10, 3 }
 0x4c9   : > { %p3890_p9 = scmp.eq.s32.totalorder %s3887_s15, 0 }
 0x4ca   : > { %s6160_s16 = sshrl.u32 (!%p3890_p9), %s6797_s10, 5 }
 0x4cb   : > { %3559 = sbr.rel (%p3890_p9) target bundleno = 1287 (0x507), region = 48  ;;  %p3891_p10 = scmp.le.s32.totalorder (!%p3890_p9), %s6160_s16, 0 }
 0x4d0   : > { %3838 = sbr.rel (%p3891_p10) target bundleno = 1270 (0x4f6), region = 124  ;;  %s6788_s21 = smov (!%p3891_p10), %s6154_s14 }
 0x4d1   : > { %s6789_s26 = smov (!%p3891_p10), %s5912_s18  ;;  %s6169_s8 = smov (!%p3891_p10), 0  }
 0x4d2   : > { %s6171_s17 = smov (!%p3891_p10), 0  }
 0x4d5 LB: >> { %v3684_v55 = vld [vmem:[%s4061_s26] sm:$0xff]  ;;  %v3686_v57 = vld [vmem:[%s4061_s26 + $0x8] sm:$0xff]  ;;  %v3688_v10 = vld [vmem:[%s4061_s26 + $0x10] sm:$0xff]  ;;  %s3748_s20 = sadd.s32 1, %s4065_s8  ;;  %s3678_s17 = sadd.s32 1, %s4069_s17   ;;  %s4069_s17 = sphi %s6171_s17, %s3678_s17   ;;  %s4065_s8 = sphi %s6169_s8, %s6792_s8   ;;  %s4061_s26 = sphi %s6789_s26, %s6791_s26   ;;  %s4057_s21 = sphi %s6788_s21, %s6790_s21  }
 0x4d6   : >> { %3685 = vst [vmem:[%s4057_s21] sm:$0xff] %v3684_v55  ;;  %v3690_v11 = vld [vmem:[%s4061_s26 + $0x18] sm:$0xff]  ;;  %p3749_p11 = scmp.ge.s32.totalorder %s3748_s20, %s6160_s16  ;;  %v3692_v39 = vld [vmem:[%s4061_s26 + $0x20] sm:$0xff]  ;;  %v3694_v4 = vld [vmem:[%s4061_s26 + $0x28] sm:$0xff]  ;;  %p3677_p12 = scmp.ge.s32.totalorder %s3678_s17, %s6160_s16 }
 0x4d7   : >> { %3687 = vst [vmem:[%s4057_s21 + $0x8] sm:$0xff] %v3686_v57  ;;  %v3696_v16 = vld [vmem:[%s4061_s26 + $0x30] sm:$0xff]  ;;  %v3698_v29 = vld [vmem:[%s4061_s26 + $0x38] sm:$0xff]  ;;  %v3700_v56 = vld [vmem:[%s4061_s26 + $0x40] sm:$0xff] }
 0x4d8   : >> { %3689 = vst [vmem:[%s4057_s21 + $0x10] sm:$0xff] %v3688_v10  ;;  %s6799_s20 = smov (%p3749_p11, %s3748_s20), 0  ;;  %v3702_v19 = vld [vmem:[%s4061_s26 + $0x48] sm:$0xff]  ;;  %v3704_v1 = vld [vmem:[%s4061_s26 + $0x50] sm:$0xff]  ;;  %v3706_v23 = vld [vmem:[%s4061_s26 + $0x58] sm:$0xff] }
 0x4d9   : >> { %3691 = vst [vmem:[%s4057_s21 + $0x18] sm:$0xff] %v3690_v11  ;;  %s3892_s24 = sshll.u32 %s6799_s20, 8  ;;  %v3708_v37 = vld [vmem:[%s4061_s26 + $0x60] sm:$0xff]  ;;  %v3710_v26 = vld [vmem:[%s4061_s26 + $0x68] sm:$0xff]  ;;  %v3712_v22 = vld [vmem:[%s4061_s26 + $0x70] sm:$0xff]  ;;  %s6792_s8 = smov %s6799_s20 }
 0x4da   : >> { %3693 = vst [vmem:[%s4057_s21 + $0x20] sm:$0xff] %v3692_v39  ;;  %s6203_s27 = scalar_lea.vmem %s5912_s18, %s3892_s24 [#allocation2]   ;;  %s6206_s28 = scalar_lea.vmem %s6154_s14, %s3892_s24   ;;  %v3714_v13 = vld [vmem:[%s4061_s26 + $0x78] sm:$0xff]  ;;  %v3716_v0 = vld [vmem:[%s4061_s26 + $0x80] sm:$0xff]  ;;  %v3718_v36 = vld [vmem:[%s4061_s26 + $0x88] sm:$0xff] }
 0x4db   : >> { %3695 = vst [vmem:[%s4057_s21 + $0x28] sm:$0xff] %v3694_v4  ;;  %v3720_v54 = vld [vmem:[%s4061_s26 + $0x90] sm:$0xff]  ;;  %v3722_v43 = vld [vmem:[%s4061_s26 + $0x98] sm:$0xff]  ;;  %v3724_v53 = vld [vmem:[%s4061_s26 + $0xa0] sm:$0xff] }
 0x4dc   : >> { %3697 = vst [vmem:[%s4057_s21 + $0x30] sm:$0xff] %v3696_v16  ;;  %v3726_v41 = vld [vmem:[%s4061_s26 + $0xa8] sm:$0xff]  ;;  %v3728_v30 = vld [vmem:[%s4061_s26 + $0xb0] sm:$0xff]  ;;  %v3730_v21 = vld [vmem:[%s4061_s26 + $0xb8] sm:$0xff] }
 0x4dd   : >> { %3699 = vst [vmem:[%s4057_s21 + $0x38] sm:$0xff] %v3698_v29  ;;  %v3732_v33 = vld [vmem:[%s4061_s26 + $0xc0] sm:$0xff]  ;;  %v3734_v47 = vld [vmem:[%s4061_s26 + $0xc8] sm:$0xff]  ;;  %v3736_v28 = vld [vmem:[%s4061_s26 + $0xd0] sm:$0xff] }
 0x4de   : >> { %3701 = vst [vmem:[%s4057_s21 + $0x40] sm:$0xff] %v3700_v56  ;;  %v3738_v32 = vld [vmem:[%s4061_s26 + $0xd8] sm:$0xff]  ;;  %v3740_v45 = vld [vmem:[%s4061_s26 + $0xe0] sm:$0xff]  ;;  %v3742_v18 = vld [vmem:[%s4061_s26 + $0xe8] sm:$0xff] }
 0x4df   : >> { %3703 = vst [vmem:[%s4057_s21 + $0x48] sm:$0xff] %v3702_v19  ;;  %v3744_v48 = vld [vmem:[%s4061_s26 + $0xf0] sm:$0xff]  ;;  %v3746_v8 = vld [vmem:[%s4061_s26 + $0xf8] sm:$0xff]  ;;  %s6791_s26 = smov %s6203_s27 }
 0x4e0   : >> { %3705 = vst [vmem:[%s4057_s21 + $0x50] sm:$0xff] %v3704_v1 }
 0x4e1   : >> { %3707 = vst [vmem:[%s4057_s21 + $0x58] sm:$0xff] %v3706_v23 }
 0x4e2   : >> { %3709 = vst [vmem:[%s4057_s21 + $0x60] sm:$0xff] %v3708_v37 }
 0x4e3   : >> { %3711 = vst [vmem:[%s4057_s21 + $0x68] sm:$0xff] %v3710_v26 }
 0x4e4   : >> { %3713 = vst [vmem:[%s4057_s21 + $0x70] sm:$0xff] %v3712_v22 }
 0x4e5   : >> { %3715 = vst [vmem:[%s4057_s21 + $0x78] sm:$0xff] %v3714_v13 }
 0x4e6   : >> { %3717 = vst [vmem:[%s4057_s21 + $0x80] sm:$0xff] %v3716_v0 }
 0x4e7   : >> { %3719 = vst [vmem:[%s4057_s21 + $0x88] sm:$0xff] %v3718_v36 }
 0x4e8   : >> { %3721 = vst [vmem:[%s4057_s21 + $0x90] sm:$0xff] %v3720_v54 }
 0x4e9   : >> { %3723 = vst [vmem:[%s4057_s21 + $0x98] sm:$0xff] %v3722_v43 }
 0x4ea   : >> { %3725 = vst [vmem:[%s4057_s21 + $0xa0] sm:$0xff] %v3724_v53 }
 0x4eb   : >> { %3727 = vst [vmem:[%s4057_s21 + $0xa8] sm:$0xff] %v3726_v41 }
 0x4ec   : >> { %3729 = vst [vmem:[%s4057_s21 + $0xb0] sm:$0xff] %v3728_v30 }
 0x4ed   : >> { %3731 = vst [vmem:[%s4057_s21 + $0xb8] sm:$0xff] %v3730_v21 }
 0x4ee   : >> { %3733 = vst [vmem:[%s4057_s21 + $0xc0] sm:$0xff] %v3732_v33 }
 0x4ef   : >> { %3735 = vst [vmem:[%s4057_s21 + $0xc8] sm:$0xff] %v3734_v47 }
 0x4f0   : >> { %3737 = vst [vmem:[%s4057_s21 + $0xd0] sm:$0xff] %v3736_v28 }
 0x4f1   : >> { %3739 = vst [vmem:[%s4057_s21 + $0xd8] sm:$0xff] %v3738_v32  ;;  %3680 = sbr.rel (!%p3677_p12) target bundleno = 1237 (0x4d5), region = 130 }
 0x4f2   : >> { %3741 = vst [vmem:[%s4057_s21 + $0xe0] sm:$0xff] %v3740_v45 }
 0x4f3   : >> { %3743 = vst [vmem:[%s4057_s21 + $0xe8] sm:$0xff] %v3742_v18 }
 0x4f4   : >> { %3745 = vst [vmem:[%s4057_s21 + $0xf0] sm:$0xff] %v3744_v48 }
 0x4f5   : >> { %3747 = vst [vmem:[%s4057_s21 + $0xf8] sm:$0xff] %v3746_v8  ;;  %s6790_s21 = smov %s6206_s28 }
 0x4f6 PF: > { %s6271_s23 = sand.u32 31, %s6797_s10   ;;  %s3903_s29 = sshll.u32 %s6160_s16, 8 }
 0x4f7   : > { %s3759_s30 = scalar_lea.vmem %s5912_s18, %s3903_s29 [#allocation2]   ;;  %s3761_s6 = scalar_lea.vmem %s6154_s14, %s3903_s29  }
 0x4f8   : > { %p3897_p13 = scmp.le.s32.totalorder %s6271_s23, 0 }
 0x4f9   : > { %s4071_s7 = smov (!%p3897_p13), %s3761_s6   ;;  %s4075_s9 = smov (!%p3897_p13), %s3759_s30  }
 0x4fa   : > { %3852 = sbr.rel (%p3897_p13) target bundleno = 1287 (0x507), region = 135  ;;  %s4079_s11 = smov (!%p3897_p13), 0  }
 0x4fb   : > { %s4083_s12 = smov (!%p3897_p13), 0  }
 0x4ff LB: >> { %v3771_v38 = vld [vmem:[%s4077_s9] sm:$0xff]  ;;  %s3773_s10 = sadd.s32 1, %s4081_s11  ;;  %s3765_s12 = sadd.s32 1, %s4085_s12   ;;  %s4085_s12 = sphi %s4083_s12, %s3765_s12   ;;  %s4081_s11 = sphi %s4079_s11, %s4080_s11   ;;  %s4077_s9 = sphi %s4075_s9, %s3778_s9   ;;  %s4073_s7 = sphi %s4071_s7, %s3779_s7  }
 0x500   : >> { %3772 = vst [vmem:[%s4073_s7] sm:$0xff] %v3771_v38  ;;  %p3774_p0 = scmp.ge.s32.totalorder %s3773_s10, %s6271_s23  ;;  %p3764_p1 = scmp.ge.s32.totalorder %s3765_s12, %s6271_s23 }
 0x502   : >> { %s6801_s10 = smov (%p3774_p0, %s3773_s10), 0  ;;  %3767 = sbr.rel (!%p3764_p1) target bundleno = 1279 (0x4ff), region = 141 }
 0x503   : >> { %s3898_s18 = sshll.u32 %s6801_s10, 3  ;;  %s4080_s11 = smov %s6801_s10  }
 0x504   : >> { %s3778_s9 = scalar_lea.vmem %s3759_s30, %s3898_s18 [#allocation2]   ;;  %s3779_s7 = scalar_lea.vmem %s3761_s6, %s3898_s18  }
 0x507 PF: > { %p12_p2 = scmp.ge.s32.totalorder %s4132_s22, 4   ;;  %s6793_s18 = smov %s4049_s19 }
 0x508   : > { %s6794_s19 = smov %s4140_s25  ;;  %s6795_s20 = smov %s4132_s22 }
 0x509   :  { %14 = sbr.rel (!%p12_p2) target bundleno = 2 (0x2), region = 152 }

</bundles_post_ra>
